<compile_context>
chip_gen: v6e
topology: v6e:2x2x1
jax: 0.10.0
libtpu: 0.0.40
codegen_flags: <defaults>
</compile_context>

<pallas_src>
import functools

import jax
import jax.numpy as jnp
import numpy as np
from jax.experimental import pallas as pl
from jax.experimental.pallas import tpu as pltpu


def _round_up(x, m):
    return (x + m - 1) // m * m


# ---------------------------------------------------------------------------
# Host-side weight packing (bias folding + per-gate lane padding)
# ---------------------------------------------------------------------------
def _pack_gru(gru, H, Hp):
    """Returns (w_ih, w_hh, b_i, b_hn) with each gate padded from H to Hp lanes.

      w_ih, w_hh : (Hp, 3*Hp)   zero-padded rows (>= H) and per-gate columns
      b_i        : (1, 3*Hp)    = b_ih + [b_hh_r, b_hh_z, 0]   (gi-side bias)
      b_hn       : (1, Hp)      = b_hh_n  (added inside the n gate only)
    """
    w_ih, w_hh = gru["w_ih"], gru["w_hh"]        # (H, 3H)
    b_ih, b_hh = gru["b_ih"], gru["b_hh"]        # (1, 3H)
    b_i = jnp.concatenate(
        [b_ih[:, :2 * H] + b_hh[:, :2 * H], b_ih[:, 2 * H:]], axis=1)
    b_hn = b_hh[:, 2 * H:]

    def pad_w(w):
        if Hp == H:
            return w
        w = w.reshape(H, 3, H)
        w = jnp.pad(w, ((0, Hp - H), (0, 0), (0, Hp - H)))
        return w.reshape(Hp, 3 * Hp)

    def pad_b(b):
        if Hp == H:
            return b
        b = b.reshape(1, 3, H)
        b = jnp.pad(b, ((0, 0), (0, 0), (0, Hp - H)))
        return b.reshape(1, 3 * Hp)

    b_hn_p = b_hn if Hp == H else jnp.pad(b_hn, ((0, 0), (0, Hp - H)))
    return pad_w(w_ih), pad_w(w_hh), pad_b(b_i), b_hn_p


# ---------------------------------------------------------------------------
# In-kernel GRU math (torch.nn.GRUCell semantics)
# ---------------------------------------------------------------------------
def _gru_gates(gi, gh, h, b_hn, Hp):
    # gi already contains b_ih (+ b_hh for r,z); gh is bias-free except b_hn.
    r = jax.nn.sigmoid(gi[:, :Hp] + gh[:, :Hp])
    z = jax.nn.sigmoid(gi[:, Hp:2 * Hp] + gh[:, Hp:2 * Hp])
    n = jnp.tanh(gi[:, 2 * Hp:3 * Hp] + r * (gh[:, 2 * Hp:3 * Hp] + b_hn))
    return n + z * (h - n)


def _maybe_dropout(x, p, training, seed):
    # Eval-mode dropout is identity (matches F.dropout(training=False)).
    # TODO(synk): training-mode dropout uses the TPU hardware PRNG; it matches
    # torch's dropout distribution but not its RNG stream.
    if p > 0.0 and training:
        pltpu.prng_seed(seed + pl.program_id(0))
        bits = pltpu.bitcast(pltpu.prng_random_bits(x.shape), jnp.uint32)
        keep_prob = 1.0 - p
        # ~2^-32 keep-probability bias at the saturation edge; negligible.
        threshold = jnp.uint32(min(keep_prob * 4294967296.0, 4294967295.0))
        x = jnp.where(bits < threshold, x * (1.0 / keep_prob), jnp.zeros_like(x))
    return x


# ---------------------------------------------------------------------------
# Pallas kernels
# ---------------------------------------------------------------------------
def _typed_kernel(Hp, dropout, training, seed,
                  msg_ref, h_ref, t_ref, wih_ref, whh_ref, bi_ref, bhn_ref,
                  out_ref):
    x = msg_ref[...]
    h = h_ref[...]
    w_ih = wih_ref[...]                 # (Hp, 6*Hp): [gru0 r|z|n | gru1 r|z|n]
    w_hh = whh_ref[...]
    # One fused matmul pair for both GRUCells (halves MXU pushes & weight DMAs).
    gi = jnp.dot(x.astype(w_ih.dtype), w_ih,
                 preferred_element_type=jnp.float32) + bi_ref[...]
    gh = jnp.dot(h.astype(w_hh.dtype), w_hh,
                 preferred_element_type=jnp.float32)
    out0 = _gru_gates(gi[:, :3 * Hp], gh[:, :3 * Hp], h, bhn_ref[:, :Hp], Hp)
    out1 = _gru_gates(gi[:, 3 * Hp:], gh[:, 3 * Hp:], h, bhn_ref[:, Hp:], Hp)
    t = t_ref[...]                      # (tile, 1) int32, broadcasts over Hp
    out = jnp.where(t == 0, out0,
                    jnp.where(t == 1, out1, jnp.zeros_like(out0)))
    out_ref[...] = _maybe_dropout(out, dropout, training, seed).astype(out_ref.dtype)


def _untyped_kernel(Hp, dropout, training, seed,
                    msg_ref, h_ref, wih_ref, whh_ref, bi_ref, bhn_ref, out_ref):
    x = msg_ref[...]
    h = h_ref[...]
    w_ih = wih_ref[...]
    w_hh = whh_ref[...]
    gi = jnp.dot(x.astype(w_ih.dtype), w_ih,
                 preferred_element_type=jnp.float32) + bi_ref[...]
    gh = jnp.dot(h.astype(w_hh.dtype), w_hh,
                 preferred_element_type=jnp.float32)
    out = _gru_gates(gi, gh, h, bhn_ref[...], Hp)
    out_ref[...] = _maybe_dropout(out, dropout, training, seed).astype(out_ref.dtype)


# ---------------------------------------------------------------------------
# Wrapper
# ---------------------------------------------------------------------------
def ggnn_layer_forward(params, messages, node_states, node_types=None, *,
                       dropout=0.0, use_typed_nodes=False, training=False,
                       seed=0, tile_nodes=None, compute_dtype=None):
    N, H = messages.shape
    assert node_states.shape == (N, H)
    f32 = jnp.float32

    # Lane-align the per-gate hidden dim to 128 -> whole-vreg gate slices and
    # unmasked, lane-dense output stores.
    Hp = _round_up(H, 128)

    # Auto tile: large node tiles amortize the ~0.35us/grid-step overhead, but
    # keep >= 2 grid steps (v7x megacore) and cap double-buffered VMEM usage.
    if tile_nodes is None:
        per_row = (3 * Hp + 128) * 4 * 2          # msg + h + out + types, x2 bufs
        cap = max(8, min(1024, (8 * 2 ** 20 // per_row) // 8 * 8))
        tile_nodes = cap
        while tile_nodes > 8 and pl.cdiv(N, tile_nodes) < 2:
            tile_nodes //= 2
        tile_nodes = max(8, tile_nodes // 8 * 8)
    assert tile_nodes % 8 == 0

    Np = _round_up(N, tile_nodes)
    grid = (Np // tile_nodes,)

    def pad_nodes(x):
        return jnp.pad(x, ((0, Np - N), (0, Hp - H)))

    msg_p = pad_nodes(messages.astype(f32))
    h_p = pad_nodes(node_states.astype(f32))

    n_gru = 2 if use_typed_nodes else 1
    node_spec = pl.BlockSpec((tile_nodes, Hp), lambda i: (i, 0))

    if use_typed_nodes:
        assert node_types is not None, \
            "Need to provide node_types <N> if `use_typed_nodes=True`"
        # Pad rows with type=2 so they select the all-zeros branch.
        t_p = jnp.pad(node_types.reshape(N, 1).astype(jnp.int32),
                      ((0, Np - N), (0, 0)), constant_values=2)
        type_spec = pl.BlockSpec((tile_nodes, 1), lambda i: (i, 0))
        wi0, wh0, bi0, bn0 = _pack_gru(params["gru"], H, Hp)
        wi1, wh1, bi1, bn1 = _pack_gru(params["id_gru"], H, Hp)
        w_ih = jnp.concatenate([wi0, wi1], axis=1)     # (Hp, 6*Hp)
        w_hh = jnp.concatenate([wh0, wh1], axis=1)
        b_i = jnp.concatenate([bi0, bi1], axis=1)      # (1, 6*Hp)
        b_hn = jnp.concatenate([bn0, bn1], axis=1)     # (1, 2*Hp)
        if compute_dtype is not None:                  # e.g. bf16 on v6e
            w_ih, w_hh = w_ih.astype(compute_dtype), w_hh.astype(compute_dtype)
        operands = [msg_p, h_p, t_p, w_ih, w_hh, b_i, b_hn]
        kernel = functools.partial(_typed_kernel, Hp, dropout, training, seed)
    else:
        type_spec = None
        w_ih, w_hh, b_i, b_hn = _pack_gru(params["gru"], H, Hp)
        if compute_dtype is not None:
            w_ih, w_hh = w_ih.astype(compute_dtype), w_hh.astype(compute_dtype)
        operands = [msg_p, h_p, w_ih, w_hh, b_i, b_hn]
        kernel = functools.partial(_untyped_kernel, Hp, dropout, training, seed)

    # Explicit VMEM budget: above v5e's 16 MiB scoped default, below v7x's
    # 64 MiB physical VMEM.
    weight_bytes = (2 * Hp * 3 * n_gru * Hp + 4 * n_gru * Hp) * 4
    node_bytes = tile_nodes * (3 * Hp + 128) * 4
    vmem_limit = int(min(max(2 * (weight_bytes + 4 * node_bytes), 32 * 2 ** 20),
                         48 * 2 ** 20))
    cparams = pltpu.CompilerParams(dimension_semantics=("parallel",),
                                   vmem_limit_bytes=vmem_limit)
    out_shape = jax.ShapeDtypeStruct((Np, Hp), messages.dtype)

    def build_specs(wmode):
        kw = {} if wmode is None else {"pipeline_mode": wmode}
        w_spec = pl.BlockSpec((Hp, 3 * n_gru * Hp), lambda i: (0, 0), **kw)
        bi_spec = pl.BlockSpec((1, 3 * n_gru * Hp), lambda i: (0, 0), **kw)
        bhn_spec = pl.BlockSpec((1, n_gru * Hp), lambda i: (0, 0), **kw)
        specs = [node_spec, node_spec]
        if use_typed_nodes:
            specs.append(type_spec)
        return specs + [w_spec, w_spec, bi_spec, bhn_spec]

    def run(wmode):
        return pl.pallas_call(
            kernel,
            out_shape=out_shape,
            grid_spec=pltpu.PrefetchScalarGridSpec(
                num_scalar_prefetch=0,
                grid=grid,
                in_specs=build_specs(wmode),
                out_specs=node_spec),
            compiler_params=cparams,
        )(*operands)

    try:
        # Weights/biases have a constant index_map -> single-buffer them.
        out = run(pl.Buffered(1))
    except Exception:  # fall back to default double-buffering if unsupported
        out = run(None)

    # TODO(synk): on v5e with very large H, a type-sorted grouping via scalar
    # prefetch (one GRU per tile) would avoid the 2x redundant matmul work.
    return out[:N, :H]


# ---------------------------------------------------------------------------
# Pure-JAX reference (for correctness check)
# ---------------------------------------------------------------------------
def _gru_ref(x, h, w_ih, w_hh, b_ih, b_hh):
    H = h.shape[1]
    gi = x @ w_ih + b_ih
    gh = h @ w_hh + b_hh
    r = jax.nn.sigmoid(gi[:, :H] + gh[:, :H])
    z = jax.nn.sigmoid(gi[:, H:2 * H] + gh[:, H:2 * H])
    n = jnp.tanh(gi[:, 2 * H:] + r * gh[:, 2 * H:])
    return n + z * (h - n)


def _reference(params, messages, node_states, node_types, use_typed_nodes):
    g = params["gru"]
    out0 = _gru_ref(messages, node_states, g["w_ih"], g["w_hh"], g["b_ih"], g["b_hh"])
    if not use_typed_nodes:
        return out0
    ig = params["id_gru"]
    out1 = _gru_ref(messages, node_states, ig["w_ih"], ig["w_hh"], ig["b_ih"], ig["b_hh"])
    t = node_types.reshape(-1, 1)
    return jnp.where(t == 0, out0, jnp.where(t == 1, out1, jnp.zeros_like(out0)))


# ---------------------------------------------------------------------------
if __name__ == "__main__":
    H = 32          # hidden_size
    N = 64          # number of graph nodes
    dropout = 0.5   # module config; forward runs in eval mode -> dropout is identity

    key = jax.random.PRNGKey(0)
    keys = jax.random.split(key, 11)
    bound = 1.0 / float(np.sqrt(H))

    def u(k, shape):
        return jax.random.uniform(k, shape, jnp.float32, -bound, bound)

    params = {
        "gru": dict(w_ih=u(keys[0], (H, 3 * H)), w_hh=u(keys[1], (H, 3 * H)),
                    b_ih=u(keys[2], (1, 3 * H)), b_hh=u(keys[3], (1, 3 * H))),
        "id_gru": dict(w_ih=u(keys[4], (H, 3 * H)), w_hh=u(keys[5], (H, 3 * H)),
                       b_ih=u(keys[6], (1, 3 * H)), b_hh=u(keys[7], (1, 3 * H))),
    }

    messages = jax.random.normal(keys[8], (N, H), jnp.float32)
    node_states = jax.random.normal(keys[9], (N, H), jnp.float32)
    node_types = jax.random.randint(keys[10], (N,), 0, 2).astype(jnp.int32)

    # Typed-node path (two GRUCells fused into one matmul pair, selected by type).
    out_typed = ggnn_layer_forward(params, messages, node_states, node_types,
                                   dropout=dropout, use_typed_nodes=True,
                                   training=False)
    jax.block_until_ready(out_typed)
    ref_typed = _reference(params, messages, node_states, node_types, True)
    np.testing.assert_allclose(np.asarray(out_typed), np.asarray(ref_typed),
                               rtol=1e-5, atol=1e-5)

    # Untyped path (single GRUCell on all nodes).
    out_plain = ggnn_layer_forward(params, messages, node_states,
                                   dropout=dropout, use_typed_nodes=False,
                                   training=False)
    jax.block_until_ready(out_plain)
    ref_plain = _reference(params, messages, node_states, node_types, False)
    np.testing.assert_allclose(np.asarray(out_plain), np.asarray(ref_plain),
                               rtol=1e-5, atol=1e-5)

    print("KERNEL_OK")
</pallas_src>

<mosaic_0001>
module attributes {stable_mosaic.version = 11 : i64} {
  func.func @_typed_kernel(%arg0: i32, %arg1: memref<32x128xf32, #tpu.memory_space<vmem>>, %arg2: memref<32x128xf32, #tpu.memory_space<vmem>>, %arg3: memref<32x1xi32, #tpu.memory_space<vmem>>, %arg4: memref<128x768xf32, #tpu.memory_space<vmem>>, %arg5: memref<128x768xf32, #tpu.memory_space<vmem>>, %arg6: memref<1x768xf32, #tpu.memory_space<vmem>>, %arg7: memref<1x256xf32, #tpu.memory_space<vmem>>, %arg8: memref<32x128xf32, #tpu.memory_space<vmem>>) attributes {dimension_semantics = [#tpu.dimension_semantics<parallel>], iteration_bounds = array<i64: 2>, scalar_prefetch = 0 : i64, scratch_operands = 0 : i64, tpu.core_type = #tpu.core_type<tc>, window_params = [{transform_indices = @transform_0, window_bounds = array<i64: 32, 128>}, {transform_indices = @transform_1, window_bounds = array<i64: 32, 128>}, {transform_indices = @transform_2, window_bounds = array<i64: 32, 1>}, {pipeline_mode = #tpu.pipeline_mode<synchronous>, transform_indices = @transform_3, window_bounds = array<i64: 128, 768>}, {pipeline_mode = #tpu.pipeline_mode<synchronous>, transform_indices = @transform_4, window_bounds = array<i64: 128, 768>}, {pipeline_mode = #tpu.pipeline_mode<synchronous>, transform_indices = @transform_5, window_bounds = array<i64: 1, 768>}, {pipeline_mode = #tpu.pipeline_mode<synchronous>, transform_indices = @transform_6, window_bounds = array<i64: 1, 256>}, {transform_indices = @transform_7, window_bounds = array<i64: 32, 128>}]} {
    %c0 = arith.constant 0 : index
    %c0_0 = arith.constant 0 : index
    %0 = vector.load %arg1[%c0, %c0_0] : memref<32x128xf32, #tpu.memory_space<vmem>>, vector<32x128xf32>
    %c0_1 = arith.constant 0 : index
    %c0_2 = arith.constant 0 : index
    %1 = vector.load %arg2[%c0_1, %c0_2] : memref<32x128xf32, #tpu.memory_space<vmem>>, vector<32x128xf32>
    %c0_3 = arith.constant 0 : index
    %c0_4 = arith.constant 0 : index
    %2 = vector.load %arg4[%c0_3, %c0_4] : memref<128x768xf32, #tpu.memory_space<vmem>>, vector<128x768xf32>
    %c0_5 = arith.constant 0 : index
    %c0_6 = arith.constant 0 : index
    %3 = vector.load %arg5[%c0_5, %c0_6] : memref<128x768xf32, #tpu.memory_space<vmem>>, vector<128x768xf32>
    %cst = arith.constant dense<0.000000e+00> : vector<32x768xf32>
    %4 = tpu.matmul %0, %2, %cst {dimension_numbers = #tpu.dot_dimension_numbers<[1], [0], [0], [1], [0, 0, 1, 1], [], []>} : vector<32x128xf32>, vector<128x768xf32>, vector<32x768xf32> -> vector<32x768xf32>
    %c0_7 = arith.constant 0 : index
    %c0_8 = arith.constant 0 : index
    %5 = vector.load %arg6[%c0_7, %c0_8] : memref<1x768xf32, #tpu.memory_space<vmem>>, vector<1x768xf32>
    %6 = vector.broadcast %5 : vector<1x768xf32> to vector<32x768xf32>
    %7 = arith.addf %4, %6 : vector<32x768xf32>
    %cst_9 = arith.constant dense<0.000000e+00> : vector<32x768xf32>
    %8 = tpu.matmul %1, %3, %cst_9 {dimension_numbers = #tpu.dot_dimension_numbers<[1], [0], [0], [1], [0, 0, 1, 1], [], []>} : vector<32x128xf32>, vector<128x768xf32>, vector<32x768xf32> -> vector<32x768xf32>
    %9 = vector.extract_strided_slice %7 {offsets = [0, 0], sizes = [32, 384], strides = [1, 1]} : vector<32x768xf32> to vector<32x384xf32>
    %10 = vector.extract_strided_slice %8 {offsets = [0, 0], sizes = [32, 384], strides = [1, 1]} : vector<32x768xf32> to vector<32x384xf32>
    %c0_10 = arith.constant 0 : index
    %c0_11 = arith.constant 0 : index
    %11 = vector.load %arg7[%c0_10, %c0_11] : memref<1x256xf32, #tpu.memory_space<vmem>>, vector<1x128xf32>
    %12 = vector.extract_strided_slice %9 {offsets = [0, 0], sizes = [32, 128], strides = [1, 1]} : vector<32x384xf32> to vector<32x128xf32>
    %13 = vector.extract_strided_slice %10 {offsets = [0, 0], sizes = [32, 128], strides = [1, 1]} : vector<32x384xf32> to vector<32x128xf32>
    %14 = arith.addf %12, %13 : vector<32x128xf32>
    %15 = arith.negf %14 : vector<32x128xf32>
    %16 = math.exp %15 : vector<32x128xf32>
    %cst_12 = arith.constant 1.000000e+00 : f32
    %17 = vector.broadcast %cst_12 : f32 to vector<32x128xf32>
    %18 = arith.addf %17, %16 : vector<32x128xf32>
    %19 = arith.divf %17, %18 : vector<32x128xf32>
    %20 = vector.extract_strided_slice %9 {offsets = [0, 128], sizes = [32, 128], strides = [1, 1]} : vector<32x384xf32> to vector<32x128xf32>
    %21 = vector.extract_strided_slice %10 {offsets = [0, 128], sizes = [32, 128], strides = [1, 1]} : vector<32x384xf32> to vector<32x128xf32>
    %22 = arith.addf %20, %21 : vector<32x128xf32>
    %23 = arith.negf %22 : vector<32x128xf32>
    %24 = math.exp %23 : vector<32x128xf32>
    %cst_13 = arith.constant 1.000000e+00 : f32
    %25 = vector.broadcast %cst_13 : f32 to vector<32x128xf32>
    %26 = arith.addf %25, %24 : vector<32x128xf32>
    %27 = arith.divf %25, %26 : vector<32x128xf32>
    %28 = vector.extract_strided_slice %9 {offsets = [0, 256], sizes = [32, 128], strides = [1, 1]} : vector<32x384xf32> to vector<32x128xf32>
    %29 = vector.extract_strided_slice %10 {offsets = [0, 256], sizes = [32, 128], strides = [1, 1]} : vector<32x384xf32> to vector<32x128xf32>
    %30 = vector.broadcast %11 : vector<1x128xf32> to vector<32x128xf32>
    %31 = arith.addf %29, %30 : vector<32x128xf32>
    %32 = arith.mulf %19, %31 : vector<32x128xf32>
    %33 = arith.addf %28, %32 : vector<32x128xf32>
    %34 = math.tanh %33 : vector<32x128xf32>
    %35 = arith.subf %1, %34 : vector<32x128xf32>
    %36 = arith.mulf %27, %35 : vector<32x128xf32>
    %37 = arith.addf %34, %36 : vector<32x128xf32>
    %38 = vector.extract_strided_slice %7 {offsets = [0, 384], sizes = [32, 384], strides = [1, 1]} : vector<32x768xf32> to vector<32x384xf32>
    %39 = vector.extract_strided_slice %8 {offsets = [0, 384], sizes = [32, 384], strides = [1, 1]} : vector<32x768xf32> to vector<32x384xf32>
    %c0_14 = arith.constant 0 : index
    %c128 = arith.constant 128 : index
    %40 = vector.load %arg7[%c0_14, %c128] : memref<1x256xf32, #tpu.memory_space<vmem>>, vector<1x128xf32>
    %41 = vector.extract_strided_slice %38 {offsets = [0, 0], sizes = [32, 128], strides = [1, 1]} : vector<32x384xf32> to vector<32x128xf32>
    %42 = vector.extract_strided_slice %39 {offsets = [0, 0], sizes = [32, 128], strides = [1, 1]} : vector<32x384xf32> to vector<32x128xf32>
    %43 = arith.addf %41, %42 : vector<32x128xf32>
    %44 = arith.negf %43 : vector<32x128xf32>
    %45 = math.exp %44 : vector<32x128xf32>
    %cst_15 = arith.constant 1.000000e+00 : f32
    %46 = vector.broadcast %cst_15 : f32 to vector<32x128xf32>
    %47 = arith.addf %46, %45 : vector<32x128xf32>
    %48 = arith.divf %46, %47 : vector<32x128xf32>
    %49 = vector.extract_strided_slice %38 {offsets = [0, 128], sizes = [32, 128], strides = [1, 1]} : vector<32x384xf32> to vector<32x128xf32>
    %50 = vector.extract_strided_slice %39 {offsets = [0, 128], sizes = [32, 128], strides = [1, 1]} : vector<32x384xf32> to vector<32x128xf32>
    %51 = arith.addf %49, %50 : vector<32x128xf32>
    %52 = arith.negf %51 : vector<32x128xf32>
    %53 = math.exp %52 : vector<32x128xf32>
    %cst_16 = arith.constant 1.000000e+00 : f32
    %54 = vector.broadcast %cst_16 : f32 to vector<32x128xf32>
    %55 = arith.addf %54, %53 : vector<32x128xf32>
    %56 = arith.divf %54, %55 : vector<32x128xf32>
    %57 = vector.extract_strided_slice %38 {offsets = [0, 256], sizes = [32, 128], strides = [1, 1]} : vector<32x384xf32> to vector<32x128xf32>
    %58 = vector.extract_strided_slice %39 {offsets = [0, 256], sizes = [32, 128], strides = [1, 1]} : vector<32x384xf32> to vector<32x128xf32>
    %59 = vector.broadcast %40 : vector<1x128xf32> to vector<32x128xf32>
    %60 = arith.addf %58, %59 : vector<32x128xf32>
    %61 = arith.mulf %48, %60 : vector<32x128xf32>
    %62 = arith.addf %57, %61 : vector<32x128xf32>
    %63 = math.tanh %62 : vector<32x128xf32>
    %64 = arith.subf %1, %63 : vector<32x128xf32>
    %65 = arith.mulf %56, %64 : vector<32x128xf32>
    %66 = arith.addf %63, %65 : vector<32x128xf32>
    %c0_17 = arith.constant 0 : index
    %c0_18 = arith.constant 0 : index
    %67 = vector.load %arg3[%c0_17, %c0_18] : memref<32x1xi32, #tpu.memory_space<vmem>>, vector<32x1xi32>
    %c0_i32 = arith.constant 0 : i32
    %68 = vector.broadcast %c0_i32 : i32 to vector<32x1xi32>
    %69 = arith.cmpi eq, %67, %68 : vector<32x1xi32>
    %c1_i32 = arith.constant 1 : i32
    %70 = vector.broadcast %c1_i32 : i32 to vector<32x1xi32>
    %71 = arith.cmpi eq, %67, %70 : vector<32x1xi32>
    %cst_19 = arith.constant 0.000000e+00 : f32
    %72 = vector.broadcast %cst_19 : f32 to vector<32x128xf32>
    %73 = vector.shape_cast %71 : vector<32x1xi1> to vector<32x1xi1>
    %74 = vector.broadcast %73 : vector<32x1xi1> to vector<32x128xi1>
    %75 = arith.select %74, %66, %72 : vector<32x128xi1>, vector<32x128xf32>
    %76 = vector.shape_cast %69 : vector<32x1xi1> to vector<32x1xi1>
    %77 = vector.broadcast %76 : vector<32x1xi1> to vector<32x128xi1>
    %78 = arith.select %77, %37, %75 : vector<32x128xi1>, vector<32x128xf32>
    %c0_20 = arith.constant 0 : index
    %c0_21 = arith.constant 0 : index
    %79 = vector.load %arg8[%c0_20, %c0_21] : memref<32x128xf32, #tpu.memory_space<vmem>>, vector<32x128xf32>
    tpu.vector_store %arg8[%c0_20, %c0_21], %78 {strides = array<i32>} : memref<32x128xf32, #tpu.memory_space<vmem>>, vector<32x128xf32>,
    return
  }
  func.func @transform_0(%arg0: i32) -> (i32, i32) {
    %c0_i32 = arith.constant 0 : i32
    %c0_i32_0 = arith.constant 0 : i32
    return %arg0, %c0_i32 : i32, i32
  }
  func.func @transform_1(%arg0: i32) -> (i32, i32) {
    %c0_i32 = arith.constant 0 : i32
    %c0_i32_0 = arith.constant 0 : i32
    return %arg0, %c0_i32 : i32, i32
  }
  func.func @transform_2(%arg0: i32) -> (i32, i32) {
    %c0_i32 = arith.constant 0 : i32
    %c0_i32_0 = arith.constant 0 : i32
    return %arg0, %c0_i32 : i32, i32
  }
  func.func @transform_3(%arg0: i32) -> (i32, i32) {
    %c0_i32 = arith.constant 0 : i32
    %c0_i32_0 = arith.constant 0 : i32
    %c0_i32_1 = arith.constant 0 : i32
    return %c0_i32, %c0_i32_0 : i32, i32
  }
  func.func @transform_4(%arg0: i32) -> (i32, i32) {
    %c0_i32 = arith.constant 0 : i32
    %c0_i32_0 = arith.constant 0 : i32
    %c0_i32_1 = arith.constant 0 : i32
    return %c0_i32, %c0_i32_0 : i32, i32
  }
  func.func @transform_5(%arg0: i32) -> (i32, i32) {
    %c0_i32 = arith.constant 0 : i32
    %c0_i32_0 = arith.constant 0 : i32
    %c0_i32_1 = arith.constant 0 : i32
    return %c0_i32, %c0_i32_0 : i32, i32
  }
  func.func @transform_6(%arg0: i32) -> (i32, i32) {
    %c0_i32 = arith.constant 0 : i32
    %c0_i32_0 = arith.constant 0 : i32
    %c0_i32_1 = arith.constant 0 : i32
    return %c0_i32, %c0_i32_0 : i32, i32
  }
  func.func @transform_7(%arg0: i32) -> (i32, i32) {
    %c0_i32 = arith.constant 0 : i32
    %c0_i32_0 = arith.constant 0 : i32
    return %arg0, %c0_i32 : i32, i32
  }
}

module attributes {stable_mosaic.version = 11 : i64} {
  func.func @_typed_kernel(%arg0: i32, %arg1: memref<32x128xf32, #tpu.memory_space<vmem>>, %arg2: memref<32x128xf32, #tpu.memory_space<vmem>>, %arg3: memref<32x1xi32, #tpu.memory_space<vmem>>, %arg4: memref<128x768xf32, #tpu.memory_space<vmem>>, %arg5: memref<128x768xf32, #tpu.memory_space<vmem>>, %arg6: memref<1x768xf32, #tpu.memory_space<vmem>>, %arg7: memref<1x256xf32, #tpu.memory_space<vmem>>, %arg8: memref<32x128xf32, #tpu.memory_space<vmem>>) attributes {dimension_semantics = [#tpu.dimension_semantics<parallel>], iteration_bounds = array<i64: 2>, scalar_prefetch = 0 : i64, scratch_operands = 0 : i64, tpu.core_type = #tpu.core_type<tc>, window_params = [{transform_indices = @transform_0, window_bounds = array<i64: 32, 128>}, {transform_indices = @transform_1, window_bounds = array<i64: 32, 128>}, {transform_indices = @transform_2, window_bounds = array<i64: 32, 1>}, {pipeline_mode = #tpu.pipeline_mode<synchronous>, transform_indices = @transform_3, window_bounds = array<i64: 128, 768>}, {pipeline_mode = #tpu.pipeline_mode<synchronous>, transform_indices = @transform_4, window_bounds = array<i64: 128, 768>}, {pipeline_mode = #tpu.pipeline_mode<synchronous>, transform_indices = @transform_5, window_bounds = array<i64: 1, 768>}, {pipeline_mode = #tpu.pipeline_mode<synchronous>, transform_indices = @transform_6, window_bounds = array<i64: 1, 256>}, {transform_indices = @transform_7, window_bounds = array<i64: 32, 128>}]} {
    %c0 = arith.constant 0 : index
    %c0_0 = arith.constant 0 : index
    %0 = vector.load %arg1[%c0, %c0_0] : memref<32x128xf32, #tpu.memory_space<vmem>>, vector<32x128xf32>
    %c0_1 = arith.constant 0 : index
    %c0_2 = arith.constant 0 : index
    %1 = vector.load %arg2[%c0_1, %c0_2] : memref<32x128xf32, #tpu.memory_space<vmem>>, vector<32x128xf32>
    %c0_3 = arith.constant 0 : index
    %c0_4 = arith.constant 0 : index
    %2 = vector.load %arg4[%c0_3, %c0_4] : memref<128x768xf32, #tpu.memory_space<vmem>>, vector<128x768xf32>
    %c0_5 = arith.constant 0 : index
    %c0_6 = arith.constant 0 : index
    %3 = vector.load %arg5[%c0_5, %c0_6] : memref<128x768xf32, #tpu.memory_space<vmem>>, vector<128x768xf32>
    %cst = arith.constant dense<0.000000e+00> : vector<32x768xf32>
    %4 = tpu.matmul %0, %2, %cst {dimension_numbers = #tpu.dot_dimension_numbers<[1], [0], [0], [1], [0, 0, 1, 1], [], []>} : vector<32x128xf32>, vector<128x768xf32>, vector<32x768xf32> -> vector<32x768xf32>
    %c0_7 = arith.constant 0 : index
    %c0_8 = arith.constant 0 : index
    %5 = vector.load %arg6[%c0_7, %c0_8] : memref<1x768xf32, #tpu.memory_space<vmem>>, vector<1x768xf32>
    %6 = vector.broadcast %5 : vector<1x768xf32> to vector<32x768xf32>
    %7 = arith.addf %4, %6 : vector<32x768xf32>
    %cst_9 = arith.constant dense<0.000000e+00> : vector<32x768xf32>
    %8 = tpu.matmul %1, %3, %cst_9 {dimension_numbers = #tpu.dot_dimension_numbers<[1], [0], [0], [1], [0, 0, 1, 1], [], []>} : vector<32x128xf32>, vector<128x768xf32>, vector<32x768xf32> -> vector<32x768xf32>
    %9 = vector.extract_strided_slice %7 {offsets = [0, 0], sizes = [32, 384], strides = [1, 1]} : vector<32x768xf32> to vector<32x384xf32>
    %10 = vector.extract_strided_slice %8 {offsets = [0, 0], sizes = [32, 384], strides = [1, 1]} : vector<32x768xf32> to vector<32x384xf32>
    %c0_10 = arith.constant 0 : index
    %c0_11 = arith.constant 0 : index
    %11 = vector.load %arg7[%c0_10, %c0_11] : memref<1x256xf32, #tpu.memory_space<vmem>>, vector<1x128xf32>
    %12 = vector.extract_strided_slice %9 {offsets = [0, 0], sizes = [32, 128], strides = [1, 1]} : vector<32x384xf32> to vector<32x128xf32>
    %13 = vector.extract_strided_slice %10 {offsets = [0, 0], sizes = [32, 128], strides = [1, 1]} : vector<32x384xf32> to vector<32x128xf32>
    %14 = arith.addf %12, %13 : vector<32x128xf32>
    %15 = arith.negf %14 : vector<32x128xf32>
    %16 = math.exp %15 : vector<32x128xf32>
    %cst_12 = arith.constant 1.000000e+00 : f32
    %17 = vector.broadcast %cst_12 : f32 to vector<32x128xf32>
    %18 = arith.addf %17, %16 : vector<32x128xf32>
    %19 = arith.divf %17, %18 : vector<32x128xf32>
    %20 = vector.extract_strided_slice %9 {offsets = [0, 128], sizes = [32, 128], strides = [1, 1]} : vector<32x384xf32> to vector<32x128xf32>
    %21 = vector.extract_strided_slice %10 {offsets = [0, 128], sizes = [32, 128], strides = [1, 1]} : vector<32x384xf32> to vector<32x128xf32>
    %22 = arith.addf %20, %21 : vector<32x128xf32>
    %23 = arith.negf %22 : vector<32x128xf32>
    %24 = math.exp %23 : vector<32x128xf32>
    %cst_13 = arith.constant 1.000000e+00 : f32
    %25 = vector.broadcast %cst_13 : f32 to vector<32x128xf32>
    %26 = arith.addf %25, %24 : vector<32x128xf32>
    %27 = arith.divf %25, %26 : vector<32x128xf32>
    %28 = vector.extract_strided_slice %9 {offsets = [0, 256], sizes = [32, 128], strides = [1, 1]} : vector<32x384xf32> to vector<32x128xf32>
    %29 = vector.extract_strided_slice %10 {offsets = [0, 256], sizes = [32, 128], strides = [1, 1]} : vector<32x384xf32> to vector<32x128xf32>
    %30 = vector.broadcast %11 : vector<1x128xf32> to vector<32x128xf32>
    %31 = arith.addf %29, %30 : vector<32x128xf32>
    %32 = arith.mulf %19, %31 : vector<32x128xf32>
    %33 = arith.addf %28, %32 : vector<32x128xf32>
    %34 = math.tanh %33 : vector<32x128xf32>
    %35 = arith.subf %1, %34 : vector<32x128xf32>
    %36 = arith.mulf %27, %35 : vector<32x128xf32>
    %37 = arith.addf %34, %36 : vector<32x128xf32>
    %38 = vector.extract_strided_slice %7 {offsets = [0, 384], sizes = [32, 384], strides = [1, 1]} : vector<32x768xf32> to vector<32x384xf32>
    %39 = vector.extract_strided_slice %8 {offsets = [0, 384], sizes = [32, 384], strides = [1, 1]} : vector<32x768xf32> to vector<32x384xf32>
    %c0_14 = arith.constant 0 : index
    %c128 = arith.constant 128 : index
    %40 = vector.load %arg7[%c0_14, %c128] : memref<1x256xf32, #tpu.memory_space<vmem>>, vector<1x128xf32>
    %41 = vector.extract_strided_slice %38 {offsets = [0, 0], sizes = [32, 128], strides = [1, 1]} : vector<32x384xf32> to vector<32x128xf32>
    %42 = vector.extract_strided_slice %39 {offsets = [0, 0], sizes = [32, 128], strides = [1, 1]} : vector<32x384xf32> to vector<32x128xf32>
    %43 = arith.addf %41, %42 : vector<32x128xf32>
    %44 = arith.negf %43 : vector<32x128xf32>
    %45 = math.exp %44 : vector<32x128xf32>
    %cst_15 = arith.constant 1.000000e+00 : f32
    %46 = vector.broadcast %cst_15 : f32 to vector<32x128xf32>
    %47 = arith.addf %46, %45 : vector<32x128xf32>
    %48 = arith.divf %46, %47 : vector<32x128xf32>
    %49 = vector.extract_strided_slice %38 {offsets = [0, 128], sizes = [32, 128], strides = [1, 1]} : vector<32x384xf32> to vector<32x128xf32>
    %50 = vector.extract_strided_slice %39 {offsets = [0, 128], sizes = [32, 128], strides = [1, 1]} : vector<32x384xf32> to vector<32x128xf32>
    %51 = arith.addf %49, %50 : vector<32x128xf32>
    %52 = arith.negf %51 : vector<32x128xf32>
    %53 = math.exp %52 : vector<32x128xf32>
    %cst_16 = arith.constant 1.000000e+00 : f32
    %54 = vector.broadcast %cst_16 : f32 to vector<32x128xf32>
    %55 = arith.addf %54, %53 : vector<32x128xf32>
    %56 = arith.divf %54, %55 : vector<32x128xf32>
    %57 = vector.extract_strided_slice %38 {offsets = [0, 256], sizes = [32, 128], strides = [1, 1]} : vector<32x384xf32> to vector<32x128xf32>
    %58 = vector.extract_strided_slice %39 {offsets = [0, 256], sizes = [32, 128], strides = [1, 1]} : vector<32x384xf32> to vector<32x128xf32>
    %59 = vector.broadcast %40 : vector<1x128xf32> to vector<32x128xf32>
    %60 = arith.addf %58, %59 : vector<32x128xf32>
    %61 = arith.mulf %48, %60 : vector<32x128xf32>
    %62 = arith.addf %57, %61 : vector<32x128xf32>
    %63 = math.tanh %62 : vector<32x128xf32>
    %64 = arith.subf %1, %63 : vector<32x128xf32>
    %65 = arith.mulf %56, %64 : vector<32x128xf32>
    %66 = arith.addf %63, %65 : vector<32x128xf32>
    %c0_17 = arith.constant 0 : index
    %c0_18 = arith.constant 0 : index
    %67 = vector.load %arg3[%c0_17, %c0_18] : memref<32x1xi32, #tpu.memory_space<vmem>>, vector<32x1xi32>
    %c0_i32 = arith.constant 0 : i32
    %68 = vector.broadcast %c0_i32 : i32 to vector<32x1xi32>
    %69 = arith.cmpi eq, %67, %68 : vector<32x1xi32>
    %c1_i32 = arith.constant 1 : i32
    %70 = vector.broadcast %c1_i32 : i32 to vector<32x1xi32>
    %71 = arith.cmpi eq, %67, %70 : vector<32x1xi32>
    %cst_19 = arith.constant 0.000000e+00 : f32
    %72 = vector.broadcast %cst_19 : f32 to vector<32x128xf32>
    %73 = vector.shape_cast %71 : vector<32x1xi1> to vector<32x1xi1>
    %74 = vector.broadcast %73 : vector<32x1xi1> to vector<32x128xi1>
    %75 = arith.select %74, %66, %72 : vector<32x128xi1>, vector<32x128xf32>
    %76 = vector.shape_cast %69 : vector<32x1xi1> to vector<32x1xi1>
    %77 = vector.broadcast %76 : vector<32x1xi1> to vector<32x128xi1>
    %78 = arith.select %77, %37, %75 : vector<32x128xi1>, vector<32x128xf32>
    %c0_20 = arith.constant 0 : index
    %c0_21 = arith.constant 0 : index
    %79 = vector.load %arg8[%c0_20, %c0_21] : memref<32x128xf32, #tpu.memory_space<vmem>>, vector<32x128xf32>
    tpu.vector_store %arg8[%c0_20, %c0_21], %78 {strides = array<i32>} : memref<32x128xf32, #tpu.memory_space<vmem>>, vector<32x128xf32>,
    return
  }
  func.func @transform_0(%arg0: i32) -> (i32, i32) {
    %c0_i32 = arith.constant 0 : i32
    %c0_i32_0 = arith.constant 0 : i32
    return %arg0, %c0_i32 : i32, i32
  }
  func.func @transform_1(%arg0: i32) -> (i32, i32) {
    %c0_i32 = arith.constant 0 : i32
    %c0_i32_0 = arith.constant 0 : i32
    return %arg0, %c0_i32 : i32, i32
  }
  func.func @transform_2(%arg0: i32) -> (i32, i32) {
    %c0_i32 = arith.constant 0 : i32
    %c0_i32_0 = arith.constant 0 : i32
    return %arg0, %c0_i32 : i32, i32
  }
  func.func @transform_3(%arg0: i32) -> (i32, i32) {
    %c0_i32 = arith.constant 0 : i32
    %c0_i32_0 = arith.constant 0 : i32
    %c0_i32_1 = arith.constant 0 : i32
    return %c0_i32, %c0_i32_0 : i32, i32
  }
  func.func @transform_4(%arg0: i32) -> (i32, i32) {
    %c0_i32 = arith.constant 0 : i32
    %c0_i32_0 = arith.constant 0 : i32
    %c0_i32_1 = arith.constant 0 : i32
    return %c0_i32, %c0_i32_0 : i32, i32
  }
  func.func @transform_5(%arg0: i32) -> (i32, i32) {
    %c0_i32 = arith.constant 0 : i32
    %c0_i32_0 = arith.constant 0 : i32
    %c0_i32_1 = arith.constant 0 : i32
    return %c0_i32, %c0_i32_0 : i32, i32
  }
  func.func @transform_6(%arg0: i32) -> (i32, i32) {
    %c0_i32 = arith.constant 0 : i32
    %c0_i32_0 = arith.constant 0 : i32
    %c0_i32_1 = arith.constant 0 : i32
    return %c0_i32, %c0_i32_0 : i32, i32
  }
  func.func @transform_7(%arg0: i32) -> (i32, i32) {
    %c0_i32 = arith.constant 0 : i32
    %c0_i32_0 = arith.constant 0 : i32
    return %arg0, %c0_i32 : i32, i32
  }
}

</mosaic_0001>

<bundles_post_ra>
// kernel: tpu_custom_call.1
= control target key start
LH: loop header
LB: loop body
LE: loop exit
PB: predicated region body
PF: predicated region fallthrough
CT: control target
= control target key end

     0   :  { %s2344_s0 = inlined_call_operand.vmem [shape: f32[64,128], index: 0, kind: input, shape index: {}]   ;;  %s2345_s1 = inlined_call_operand.hbm [shape: f32[64,128], index: 1, kind: input, shape index: {}]   ;;  %s2346_s2 = inlined_call_operand.vmem [shape: s32[64,1], index: 2, kind: input, shape index: {}]   ;;  %s2347_s3 = inlined_call_operand.hbm [shape: f32[128,768], index: 3, kind: input, shape index: {}]   ;;  %s2348_s4 = inlined_call_operand.hbm [shape: f32[128,768], index: 4, kind: input, shape index: {}]   ;;  %s2349_s5 = inlined_call_operand.vmem [shape: f32[1,768], index: 5, kind: input, shape index: {}]   ;;  %s2350_s6 = inlined_call_operand.vmem [shape: f32[1,256], index: 6, kind: input, shape index: {}]   ;;  %s2351_s7 = inlined_call_operand.hbm [shape: f32[64,128], index: 7, kind: output, shape index: {}]  }
   0x1   :  { %2356 = sst [smem:[#allocation12_spill]] %s2347_s3 }
   0x2   :  { %12 = vsyncpa [#allocation3], 0 }
   0x3   :  { %14 = vsyncpa [#allocation3 + $0x1], 0 }
   0x4   :  { %15 = vsyncpa [#allocation6], 0 }
   0x5   :  { %16 = vsyncpa [#allocation4], 0 }
   0x6   :  { %18 = vsyncpa [#allocation4 + $0x1], 0  ;;  %s1915_s24 = smov 0   ;;  %s1917_s25 = smov 0  }
   0x7   :  { %s1919_s26 = smov 0   ;;  %s1921_s27 = smov 0  }
   0x8 LB: > { %s1936_s28 = sadd.s32 4294967295, %s1861_s27   ;;  %s1514_s29 = sadd.s32 4294967294, %s1861_s27   ;;  %s1861_s27 = sphi %s1921_s27, %s2376_s27   ;;  %s1857_s26 = sphi %s1919_s26, %s2375_s26   ;;  %s1853_s25 = sphi %s1917_s25, %s2374_s25   ;;  %s1849_s24 = sphi %s1915_s24, %s2373_s24  }
   0x9   : > { %p70_p0 = scmp.ne.s32.totalorder %s1853_s25, %s1849_s24  ;;  %p2352_p1 = scmp.eq.s32.totalorder %s1936_s28, 0 }
   0xa   : > { %p210_p3 = scmp.eq.s32.totalorder %s1514_s29, 1  ;;  %p1515_p5 = scmp.ge.s32.totalorder %s1861_s27, 1 }
   0xb   : > { %p1945_p4 = por %p2352_p1, %p70_p0  ;;  %p217_p7 = scmp.lt.s32.totalorder %s1861_s27, 3 }
   0xc   : > { %p1950_p6 = por %p210_p3, %p70_p0  ;;  %s1863_s10 = smov [#allocation5]  }
   0xd   : > { %s2357_s30 = scalar_select %p1945_p4, 1, 0 }
   0xe   : > { %s2358_s8 = scalar_select %p1950_p6, 1, 0 }
   0xf   : > { %p1955_p8 = pnand %p1515_p5, %p217_p7  ;;  %s229_s11 = sshll.u32 %s1863_s10, 4  ;;  %s230_s11 = int_to_ptr.vmem [resolvable:$true] %s229_s11 }
  0x10   : > { %s1864_s13 = smov [#allocation7]   ;;  %s1724_s15 = scalar_lea.vmem %s230_s11, 12288 }
  0x11   : > { %s2359_s9 = scalar_select %p1955_p8, 1, 0 }
  0x12   : > { %p1568_p9 = pneg %p1955_p8  ;;  %s242_s14 = sshll.u32 %s1864_s13, 4  ;;  %s243_s14 = int_to_ptr.vmem [resolvable:$true] %s242_s14 }
  0x13   : > { %p1725_p13 = scmp.ne.s32.totalorder %s230_s11, %s1724_s15  ;;  %p1732_p5 = scmp.lt.s32.totalorder %s230_s11, %s230_s11 }
  0x14   : > { %p1964_p11 = pnand %p1568_p9, %p2352_p1  ;;  %p1733_p7 = scmp.lt.s32.totalorder %s1724_s15, %s1724_s15 }
  0x16   : > { %p1715_p12 = pneg %p1964_p11  ;;  %p1734_p10 = por %p1733_p7, %p1732_p5 }
  0x18   : > { %p1727_p0 = pnand %p1725_p13, %p1715_p12 }
  0x1a   : > { %p1728_p3 = pneg %p1727_p0 }
  0x1c   : > { %p1735_p9 = pnand %p1734_p10, %p1728_p3 }
  0x1e   : > { %1738 = shalt.err (!%p1735_p9)
}
  0x1f   : > { %s1865_s16 = smov 768   ;;  %s1866_s17 = smov 48  }
  0x20   : > { %s2361_s3 = sld [smem:[#allocation12_spill]]  ;;  %s1750_s20 = scalar_lea.vmem %s243_s14, 12288 }
  0x21   : > { %p1751_p1 = scmp.ne.s32.totalorder %s243_s14, %s1750_s20  ;;  %p1758_p2 = scmp.lt.s32.totalorder %s243_s14, %s243_s14 }
  0x22   : > { %p1759_p6 = scmp.lt.s32.totalorder %s1750_s20, %s1750_s20 }
  0x23   : > { %p1753_p13 = pnand %p1751_p1, %p1715_p12 }
  0x24   : > { %p1760_p5 = por %p1759_p6, %p1758_p2 }
  0x25   : > { %p1754_p0 = pneg %p1753_p13 }
  0x26   : > { %1571 = dma.hbm_to_vmem [thread:$0]  (!%p1964_p11), %s2361_s3, 12288, %s230_s11, [#allocation6], %s1865_s16, %s1865_s16, %s1866_s17  }
  0x27   : > { %p1761_p10 = pnand %p1760_p5, %p1754_p0 }
  0x29   : > { %1764 = shalt.err (!%p1761_p10)
}
  0x2a   : > { %1574 = dma.hbm_to_vmem [thread:$0]  (!%p1964_p11), %s2348_s4, 12288, %s243_s14, [#allocation6], %s1865_s16, %s1865_s16, %s1866_s17  }
  0x2b   : > { %s1987_s23 = sadd.s32 1, %s1861_s27   ;;  %s57_s29 = sadd.s32 1, %s1857_s26 }
  0x2c   : > { %s54_s10 = ssub.s32 %s1861_s27, %s1987_s23  ;;  %p64_p1 = scmp.ne.s32.totalorder %s1857_s26, %s1853_s25 }
  0x2d   : > { %p55_p2 = scmp.eq.s32.totalorder %s54_s10, 0  ;;  %p65_p6 = scmp.eq.s32.totalorder %s1861_s27, 0 }
  0x2e   : > { %p2362_p12 = scmp.eq.s32.totalorder %s1936_s28, 1  ;;  %p1585_p7 = scmp.lt.s32.totalorder %s1861_s27, 2 }
  0x2f   : > { %s2003_s12 = scalar_select %p55_p2, %s1857_s26, %s57_s29  }
  0x30   : > { %p1997_p3 = por %p2362_p12, %p64_p1  ;;  %p66_p9 = por %p65_p6, %p64_p1 }
  0x31   : > { %s271_s13 = sand.u32 1, %s1857_s26   ;;  %s1554_s14 = sshll.u32 %s1861_s27, 9 }
  0x32   : > { %s2363_s11 = scalar_select %p1997_p3, 1, 0 }
  0x33   : > { %s1519_s15 = sshll.u32 %s271_s13, 5  ;;  %s2010_s18 = scalar_lea.hbm %s2345_s1, %s1554_s14 }
  0x34   : > { %s275_s19 = scalar_lea.vmem [#allocation2], %s1519_s15  ;;  %p2014_p11 = pnand %p1585_p7, %p66_p9 }
  0x35   : > { %s282_s20 = sshll.u32 %s275_s19, 4  ;;  %s2018_s22 = scalar_lea.sflag [#allocation3], %s271_s13  ;;  %s2012_s20 = int_to_ptr.vmem [resolvable:$true] %s282_s20 }
  0x36   : > { %s1765_s29 = scalar_lea.hbm %s2010_s18, 512  ;;  %p1767_p0 = pneg %p2014_p11 }
  0x37   : > { %p1766_p13 = scmp.ne.s32.totalorder %s2010_s18, %s1765_s29  ;;  %s1770_s15 = scalar_lea.hbm %s2345_s1, 1024 }
  0x38   : > { %p1771_p1 = scmp.lt.s32.totalorder %s2010_s18, %s2345_s1  ;;  %p1772_p2 = scmp.lt.s32.totalorder %s1770_s15, %s1765_s29 }
  0x39   : > { %p1768_p5 = pnand %p1767_p0, %p1766_p13 }
  0x3a   : > { %p1773_p6 = por %p1772_p2, %p1771_p1 }
  0x3b   : > { %p1769_p10 = pneg %p1768_p5 }
  0x3d   : > { %p1774_p12 = pnand %p1773_p6, %p1769_p10 }
  0x3f   : > { %1777 = shalt.err (!%p1774_p12)
}
  0x40   : > { %s1778_s13 = scalar_lea.vmem %s2012_s20, 512  ;;  %s1867_s19 = smov [#allocation2]  }
  0x41   : > { %p1779_p7 = scmp.ne.s32.totalorder %s2012_s20, %s1778_s13  ;;  %s1783_s3 = sshll.u32 %s1867_s19, 4  ;;  %s1784_s3 = int_to_ptr.vmem [resolvable:$false] %s1783_s3 }
  0x42   : > { %s1785_s10 = scalar_lea.vmem %s1784_s3, 1024  ;;  %p1786_p5 = scmp.lt.s32.totalorder %s2012_s20, %s1784_s3 }
  0x43   : > { %p1781_p9 = pnand %p1779_p7, %p1767_p0  ;;  %p1787_p3 = scmp.lt.s32.totalorder %s1785_s10, %s1778_s13 }
  0x45   : > { %p1782_p13 = pneg %p1781_p9  ;;  %p1788_p4 = por %p1787_p3, %p1786_p5 }
  0x47   : > { %p1789_p8 = pnand %p1788_p4, %p1782_p13 }
  0x49   : > { %1792 = shalt.err (!%p1789_p8)
}
  0x4a   : > { %s1868_s29 = smov 128   ;;  %s1869_s14 = smov 8  }
  0x4b   : > { %1578 = dma.hbm_to_vmem [thread:$0]  (!%p2014_p11), %s2010_s18, 512, %s2012_s20, %s2018_s22, %s1868_s29, %s1868_s29, %s1869_s14  }
  0x4c   : > { %p2365_p0 = scmp.ne.s32.totalorder %s2359_s9, 0 }
  0x4d   : > { %s2042_s15 = sand.u32 (!%p2365_p0), 1, %s1853_s25   ;;  %p2366_p4 = scmp.ne.s32.totalorder (!%p2365_p0), %s2357_s30, 0 }
  0x4e   : > { %303 = sbr.rel (%p2365_p0) target bundleno = 483 (0x1e3), region = 48  ;;  %s1523_s3 = sshll.u32 (!%p2365_p0), %s2042_s15, 5 }
  0x4f   : > { %s306_s16 = scalar_lea.sflag (!%p2365_p0), [#allocation3], %s2042_s15  ;;  %s2048_s17 = scalar_lea.vmem (!%p2365_p0), [#allocation2], %s1523_s3 }
  0x53   : > { %1836 = dma.done.wait (%p2366_p4), %s306_s16, 512  }
  0x54   : > { %1838 = vsyncadd (%p2366_p4), %s306_s16, 4294966784  ;;  %p2367_p8 = scmp.eq.s32.totalorder %s1936_s28, 0 }
  0x56   : > { %1840 = dma.done.wait (%p2367_p8), [#allocation6], 24576   ;;  %p2368_p3 = pmov %p2367_p8 }
  0x57   : > { %v1870_v0 = vmov 0.0   ;;  %v1871_v1 = vmov 0   ;;  %v471_v2 = vld [vmem:[#allocation5 + $0x2d8] sm:$0xff]  ;;  %v473_v3 = vld [vmem:[#allocation5 + $0x2e8] sm:$0xff]  ;;  %v470_v4 = vld [vmem:[#allocation5 + $0x2d0] sm:$0xff]  ;;  %s1527_s30 = sshll.u32 %s1936_s28, 2 }
  0x58   : > { %1842 = vsyncadd (%p2368_p3), [#allocation6], 4294942720  ;;  %668 = vmatprep.mubr.f32.mxu0 %v1870_v0  ;;  %757 = vmatprep.mubr.f32.mxu1 %v1870_v0  ;;  %v472_v5 = vld [vmem:[#allocation5 + $0x2e0] sm:$0xff]  ;;  %v465_v6 = vld [vmem:[#allocation5 + $0x2a8] sm:$0xff]  ;;  %p2065_p11 = scmp.lt.s32.totalorder %s1527_s30, 7  ;;  %s1555_s20 = sshll.u32 %s1936_s28, 9 }
  0x59   : > { %1632 = vset.pattern.permute.xlu1 %v1871_v1  ;;  %1631 = vset.pattern.permute.xlu0 %v1871_v1  ;;  %v467_v7 = vld [vmem:[#allocation5 + $0x2b8] sm:$0xff]  ;;  %v464_v8 = vld [vmem:[#allocation5 + $0x2a0] sm:$0xff]  ;;  %v466_v9 = vld [vmem:[#allocation5 + $0x2b0] sm:$0xff]  ;;  %s2300_s13 = scalar_lea.hbm %s2351_s7, %s1555_s20  ;;  %s1385_s28 = scalar_lea.sflag [#allocation4], %s2042_s15 }
  0x5a   : > { %604 = vmatprep.subr.mxu0 %v471_v2  ;;  %693 = vmatprep.subr.mxu1 %v473_v3  ;;  %v459_v10 = vld [vmem:[#allocation5 + $0x278] sm:$0xff]  ;;  %v461_v11 = vld [vmem:[#allocation5 + $0x288] sm:$0xff]  ;;  %v458_v12 = vld [vmem:[#allocation5 + $0x270] sm:$0xff]  ;;  %s2378_s30 = smov (!%p2065_p11, %s1527_s30), 7  ;;  %p2370_p1 = scmp.ne.s32.totalorder %s2363_s11, 0 }
  0x5b   : > { %605 = vmatpush1.msra.mxu0 %v470_v4  ;;  %694 = vmatpush1.msra.mxu1 %v472_v5  ;;  %v460_v13 = vld [vmem:[#allocation5 + $0x280] sm:$0xff]  ;;  %v453_v14 = vld [vmem:[#allocation5 + $0x248] sm:$0xff]  ;;  %v455_v15 = vld [vmem:[#allocation5 + $0x258] sm:$0xff]  ;;  %s1528_s18 = sshll.u32 %s2378_s30, 3 }
  0x5c   : > { %606 = vmatprep.subr.mxu0 %v465_v6  ;;  %695 = vmatprep.subr.mxu1 %v467_v7  ;;  %v452_v16 = vld [vmem:[#allocation5 + $0x240] sm:$0xff]  ;;  %v454_v17 = vld [vmem:[#allocation5 + $0x250] sm:$0xff]  ;;  %v447_v18 = vld [vmem:[#allocation5 + $0x218] sm:$0xff]  ;;  %s2081_s22 = scalar_lea.vmem %s2344_s0, %s1528_s18  ;;  %s369_s10 = scalar_lea.vmem %s2346_s2, %s1528_s18 }
  0x5d   : > { %607 = vmatpush1.msra.mxu0 %v464_v8  ;;  %696 = vmatpush1.msra.mxu1 %v466_v9  ;;  %v449_v19 = vld [vmem:[#allocation5 + $0x228] sm:$0xff]  ;;  %v446_v20 = vld [vmem:[#allocation5 + $0x210] sm:$0xff]  ;;  %v448_v21 = vld [vmem:[#allocation5 + $0x220] sm:$0xff]  ;;  %s2286_s18 = scalar_lea.vmem [#allocation8], %s1523_s3 }
  0x5e   : > { %608 = vmatprep.subr.mxu0 %v459_v10  ;;  %697 = vmatprep.subr.mxu1 %v461_v11  ;;  %v441_v22 = vld [vmem:[#allocation5 + $0x1e8] sm:$0xff]  ;;  %v443_v23 = vld [vmem:[#allocation5 + $0x1f8] sm:$0xff]  ;;  %v440_v24 = vld [vmem:[#allocation5 + $0x1e0] sm:$0xff]  ;;  %s1398_s3 = sshll.u32 %s2286_s18, 4  ;;  %s2294_s3 = int_to_ptr.vmem [resolvable:$true] %s1398_s3 }
  0x5f   : > { %609 = vmatpush1.msra.mxu0 %v458_v12  ;;  %698 = vmatpush1.msra.mxu1 %v460_v13  ;;  %v442_v25 = vld [vmem:[#allocation5 + $0x1f0] sm:$0xff]  ;;  %v435_v26 = vld [vmem:[#allocation5 + $0x1b8] sm:$0xff]  ;;  %v437_v27 = vld [vmem:[#allocation5 + $0x1c8] sm:$0xff]  ;;  %s1793_s19 = scalar_lea.vmem %s2294_s3, 512 }
  0x60   : > { %610 = vmatprep.subr.mxu0 %v453_v14  ;;  %699 = vmatprep.subr.mxu1 %v455_v15  ;;  %v434_v28 = vld [vmem:[#allocation5 + $0x1b0] sm:$0xff]  ;;  %v436_v29 = vld [vmem:[#allocation5 + $0x1c0] sm:$0xff]  ;;  %v429_v30 = vld [vmem:[#allocation5 + $0x188] sm:$0xff]  ;;  %p1794_p10 = scmp.ne.s32.totalorder %s2294_s3, %s1793_s19 }
  0x61   : > { %611 = vmatpush1.msra.mxu0 %v452_v16  ;;  %700 = vmatpush1.msra.mxu1 %v454_v17  ;;  %v431_v31 = vld [vmem:[#allocation5 + $0x198] sm:$0xff]  ;;  %v428_v32 = vld [vmem:[#allocation5 + $0x180] sm:$0xff]  ;;  %v430_v33 = vld [vmem:[#allocation5 + $0x190] sm:$0xff] }
  0x62   : > { %612 = vmatprep.subr.mxu0 %v447_v18  ;;  %701 = vmatprep.subr.mxu1 %v449_v19  ;;  %v423_v34 = vld [vmem:[#allocation5 + $0x158] sm:$0xff]  ;;  %v425_v35 = vld [vmem:[#allocation5 + $0x168] sm:$0xff]  ;;  %v422_v36 = vld [vmem:[#allocation5 + $0x150] sm:$0xff]  ;;  %p1795_p2 = pnand %p1794_p10, %p2370_p1 }
  0x63   : > { %613 = vmatpush1.msra.mxu0 %v446_v20  ;;  %702 = vmatpush1.msra.mxu1 %v448_v21  ;;  %v424_v37 = vld [vmem:[#allocation5 + $0x160] sm:$0xff]  ;;  %v417_v38 = vld [vmem:[#allocation5 + $0x128] sm:$0xff]  ;;  %v419_v39 = vld [vmem:[#allocation5 + $0x138] sm:$0xff] }
  0x64   : > { %614 = vmatprep.subr.mxu0 %v441_v22  ;;  %703 = vmatprep.subr.mxu1 %v443_v23  ;;  %v416_v40 = vld [vmem:[#allocation5 + $0x120] sm:$0xff]  ;;  %v418_v41 = vld [vmem:[#allocation5 + $0x130] sm:$0xff]  ;;  %v411_v42 = vld [vmem:[#allocation5 + $0xf8] sm:$0xff]  ;;  %p1796_p6 = pneg %p1795_p2 }
  0x65   : > { %615 = vmatpush1.msra.mxu0 %v440_v24  ;;  %704 = vmatpush1.msra.mxu1 %v442_v25  ;;  %v413_v43 = vld [vmem:[#allocation5 + $0x108] sm:$0xff]  ;;  %v410_v44 = vld [vmem:[#allocation5 + $0xf0] sm:$0xff]  ;;  %v412_v45 = vld [vmem:[#allocation5 + $0x100] sm:$0xff] }
  0x66   : > { %616 = vmatprep.subr.mxu0 %v435_v26  ;;  %705 = vmatprep.subr.mxu1 %v437_v27  ;;  %v405_v46 = vld [vmem:[#allocation5 + $0xc8] sm:$0xff]  ;;  %v407_v47 = vld [vmem:[#allocation5 + $0xd8] sm:$0xff]  ;;  %v404_v48 = vld [vmem:[#allocation5 + $0xc0] sm:$0xff] }
  0x67   : > { %617 = vmatpush1.msra.mxu0 %v434_v28  ;;  %706 = vmatpush1.msra.mxu1 %v436_v29  ;;  %v406_v49 = vld [vmem:[#allocation5 + $0xd0] sm:$0xff]  ;;  %v399_v50 = vld [vmem:[#allocation5 + $0x98] sm:$0xff]  ;;  %v401_v51 = vld [vmem:[#allocation5 + $0xa8] sm:$0xff] }
  0x68   : > { %618 = vmatprep.subr.mxu0 %v429_v30  ;;  %707 = vmatprep.subr.mxu1 %v431_v31  ;;  %v398_v52 = vld [vmem:[#allocation5 + $0x90] sm:$0xff]  ;;  %v400_v53 = vld [vmem:[#allocation5 + $0xa0] sm:$0xff]  ;;  %v393_v54 = vld [vmem:[#allocation5 + $0x68] sm:$0xff] }
  0x69   : > { %619 = vmatpush1.msra.mxu0 %v428_v32  ;;  %708 = vmatpush1.msra.mxu1 %v430_v33  ;;  %v395_v55 = vld [vmem:[#allocation5 + $0x78] sm:$0xff]  ;;  %v392_v56 = vld [vmem:[#allocation5 + $0x60] sm:$0xff]  ;;  %v394_v57 = vld [vmem:[#allocation5 + $0x70] sm:$0xff] }
  0x6a   : > { %620 = vmatprep.subr.mxu0 %v423_v34  ;;  %709 = vmatprep.subr.mxu1 %v425_v35  ;;  %v387_v58 = vld [vmem:[#allocation5 + $0x38] sm:$0xff]  ;;  %v389_v59 = vld [vmem:[#allocation5 + $0x48] sm:$0xff]  ;;  %v386_v60 = vld [vmem:[#allocation5 + $0x30] sm:$0xff] }
  0x6b   : > { %621 = vmatpush1.msra.mxu0 %v422_v36  ;;  %710 = vmatpush1.msra.mxu1 %v424_v37  ;;  %v388_v61 = vld [vmem:[#allocation5 + $0x40] sm:$0xff]  ;;  %v381_v62 = vld [vmem:[#allocation5 + $0x8] sm:$0xff]  ;;  %v383_v63 = vld [vmem:[#allocation5 + $0x18] sm:$0xff] }
  0x6c   : > { %622 = vmatprep.subr.mxu0 %v417_v38  ;;  %711 = vmatprep.subr.mxu1 %v419_v39  ;;  %v380_v2 = vld [vmem:[#allocation5] sm:$0xff]  ;;  %v382_v3 = vld [vmem:[#allocation5 + $0x10] sm:$0xff]  ;;  %v475_v5 = vld [vmem:[#allocation5 + $0x2f8] sm:$0xff] }
  0x6d   : > { %623 = vmatpush1.msra.mxu0 %v416_v40  ;;  %712 = vmatpush1.msra.mxu1 %v418_v41  ;;  %v2084_v4 = vld [vmem:[%s2081_s22] sm:$0xff]  ;;  %v567_v6 = vld [vmem:[#allocation7 + $0x2d8] sm:$0xff]  ;;  %v474_v7 = vld [vmem:[#allocation5 + $0x2f0] sm:$0xff] }
  0x6e   : > { %624 = vmatprep.subr.mxu0 %v411_v42  ;;  %713 = vmatprep.subr.mxu1 %v413_v43  ;;  %v566_v8 = vld [vmem:[#allocation7 + $0x2d0] sm:$0xff]  ;;  %v469_v9 = vld [vmem:[#allocation5 + $0x2c8] sm:$0xff]  ;;  %v468_v11 = vld [vmem:[#allocation5 + $0x2c0] sm:$0xff] }
  0x6f   : > { %625 = vmatpush1.msra.mxu0 %v410_v44  ;;  %714 = vmatpush1.msra.mxu1 %v412_v45  ;;  %v561_v10 = vld [vmem:[#allocation7 + $0x2a8] sm:$0xff]  ;;  %v560_v12 = vld [vmem:[#allocation7 + $0x2a0] sm:$0xff]  ;;  %v463_v13 = vld [vmem:[#allocation5 + $0x298] sm:$0xff] }
  0x70   : > { %626 = vmatprep.subr.mxu0 %v405_v46  ;;  %715 = vmatprep.subr.mxu1 %v407_v47  ;;  %v555_v14 = vld [vmem:[#allocation7 + $0x278] sm:$0xff]  ;;  %v462_v15 = vld [vmem:[#allocation5 + $0x290] sm:$0xff]  ;;  %v457_v17 = vld [vmem:[#allocation5 + $0x268] sm:$0xff] }
  0x71   : > { %627 = vmatpush1.msra.mxu0 %v404_v48  ;;  %716 = vmatpush1.msra.mxu1 %v406_v49  ;;  %v554_v16 = vld [vmem:[#allocation7 + $0x270] sm:$0xff]  ;;  %v549_v18 = vld [vmem:[#allocation7 + $0x248] sm:$0xff]  ;;  %v456_v19 = vld [vmem:[#allocation5 + $0x260] sm:$0xff] }
  0x72   : > { %628 = vmatprep.subr.mxu0 %v399_v50  ;;  %717 = vmatprep.subr.mxu1 %v401_v51  ;;  %v548_v20 = vld [vmem:[#allocation7 + $0x240] sm:$0xff]  ;;  %v451_v21 = vld [vmem:[#allocation5 + $0x238] sm:$0xff]  ;;  %v450_v23 = vld [vmem:[#allocation5 + $0x230] sm:$0xff] }
  0x73   : > { %629 = vmatpush1.msra.mxu0 %v398_v52  ;;  %718 = vmatpush1.msra.mxu1 %v400_v53  ;;  %v543_v22 = vld [vmem:[#allocation7 + $0x218] sm:$0xff]  ;;  %v542_v24 = vld [vmem:[#allocation7 + $0x210] sm:$0xff]  ;;  %v445_v25 = vld [vmem:[#allocation5 + $0x208] sm:$0xff] }
  0x74   : > { %630 = vmatprep.subr.mxu0 %v393_v54  ;;  %719 = vmatprep.subr.mxu1 %v395_v55  ;;  %v537_v26 = vld [vmem:[#allocation7 + $0x1e8] sm:$0xff]  ;;  %v444_v27 = vld [vmem:[#allocation5 + $0x200] sm:$0xff]  ;;  %v439_v29 = vld [vmem:[#allocation5 + $0x1d8] sm:$0xff] }
  0x75   : > { %631 = vmatpush1.msra.mxu0 %v392_v56  ;;  %720 = vmatpush1.msra.mxu1 %v394_v57  ;;  %v536_v28 = vld [vmem:[#allocation7 + $0x1e0] sm:$0xff]  ;;  %v531_v30 = vld [vmem:[#allocation7 + $0x1b8] sm:$0xff]  ;;  %v438_v31 = vld [vmem:[#allocation5 + $0x1d0] sm:$0xff] }
  0x76   : > { %632 = vmatprep.subr.mxu0 %v387_v58  ;;  %721 = vmatprep.subr.mxu1 %v389_v59  ;;  %v530_v32 = vld [vmem:[#allocation7 + $0x1b0] sm:$0xff]  ;;  %v433_v33 = vld [vmem:[#allocation5 + $0x1a8] sm:$0xff]  ;;  %v432_v35 = vld [vmem:[#allocation5 + $0x1a0] sm:$0xff] }
  0x77   : > { %633 = vmatpush1.msra.mxu0 %v386_v60  ;;  %722 = vmatpush1.msra.mxu1 %v388_v61  ;;  %v525_v34 = vld [vmem:[#allocation7 + $0x188] sm:$0xff]  ;;  %v524_v36 = vld [vmem:[#allocation7 + $0x180] sm:$0xff]  ;;  %v427_v37 = vld [vmem:[#allocation5 + $0x178] sm:$0xff] }
  0x78   : > { %634 = vmatprep.subr.mxu0 %v381_v62  ;;  %723 = vmatprep.subr.mxu1 %v383_v63  ;;  %v519_v38 = vld [vmem:[#allocation7 + $0x158] sm:$0xff]  ;;  %v426_v39 = vld [vmem:[#allocation5 + $0x170] sm:$0xff]  ;;  %v421_v41 = vld [vmem:[#allocation5 + $0x148] sm:$0xff] }
  0x79   : > { %635 = vmatpush1.msra.mxu0 %v380_v2  ;;  %724 = vmatpush1.msra.mxu1 %v382_v3  ;;  %v518_v40 = vld [vmem:[#allocation7 + $0x150] sm:$0xff]  ;;  %v513_v42 = vld [vmem:[#allocation7 + $0x128] sm:$0xff]  ;;  %v420_v44 = vld [vmem:[#allocation5 + $0x140] sm:$0xff] }
  0x7a   : > { %669 = vmatmul.mubr.f32.vlgmr.msra.gmra.mxu0 %v2084_v4  ;;  %782 = vmatprep.subr.mxu0 %v475_v5  ;;  %v2089_v43 = vld [vmem:[%s2081_s22 + $0x8] sm:$0xff]  ;;  %v512_v45 = vld [vmem:[#allocation7 + $0x120] sm:$0xff]  ;;  %v415_v46 = vld [vmem:[#allocation5 + $0x118] sm:$0xff] }
  0x7b   : > { %871 = vmatprep.subr.mxu1 %v567_v6  ;;  %758 = vmatmul.mubr.f32.vlgmr.msra.gmra.mxu1 %v2084_v4  ;;  %v507_v47 = vld [vmem:[#allocation7 + $0xf8] sm:$0xff]  ;;  %v414_v48 = vld [vmem:[#allocation5 + $0x110] sm:$0xff]  ;;  %v409_v50 = vld [vmem:[#allocation5 + $0xe8] sm:$0xff] }
  0x7c   : > { %783 = vmatpush1.msra.mxu0 %v474_v7  ;;  %872 = vmatpush1.msra.mxu1 %v566_v8  ;;  %v506_v49 = vld [vmem:[#allocation7 + $0xf0] sm:$0xff]  ;;  %v501_v51 = vld [vmem:[#allocation7 + $0xc8] sm:$0xff]  ;;  %v408_v53 = vld [vmem:[#allocation5 + $0xe0] sm:$0xff] }
  0x7d   : > { %784 = vmatprep.subr.mxu0 %v469_v9  ;;  %873 = vmatprep.subr.mxu1 %v561_v10  ;;  %v2096_v52 = vld [vmem:[%s2081_s22 + $0x10] sm:$0xff]  ;;  %v500_v54 = vld [vmem:[#allocation7 + $0xc0] sm:$0xff]  ;;  %v403_v55 = vld [vmem:[#allocation5 + $0xb8] sm:$0xff] }
  0x7e   : > { %785 = vmatpush1.msra.mxu0 %v468_v11  ;;  %874 = vmatpush1.msra.mxu1 %v560_v12  ;;  %v495_v56 = vld [vmem:[#allocation7 + $0x98] sm:$0xff]  ;;  %v402_v57 = vld [vmem:[#allocation5 + $0xb0] sm:$0xff]  ;;  %v397_v59 = vld [vmem:[#allocation5 + $0x88] sm:$0xff] }
  0x7f   : > { %786 = vmatprep.subr.mxu0 %v463_v13  ;;  %875 = vmatprep.subr.mxu1 %v555_v14  ;;  %v494_v58 = vld [vmem:[#allocation7 + $0x90] sm:$0xff]  ;;  %v489_v60 = vld [vmem:[#allocation7 + $0x68] sm:$0xff]  ;;  %v2103_v61 = vld [vmem:[%s2081_s22 + $0x18] sm:$0xff] }
  0x80   : > { %787 = vmatpush1.msra.mxu0 %v462_v15  ;;  %876 = vmatpush1.msra.mxu1 %v554_v16  ;;  %v396_v62 = vld [vmem:[#allocation5 + $0x80] sm:$0xff]  ;;  %v391_v2 = vld [vmem:[#allocation5 + $0x58] sm:$0xff]  ;;  %v390_v5 = vld [vmem:[#allocation5 + $0x50] sm:$0xff] }
  0x81   : > { %788 = vmatprep.subr.mxu0 %v457_v17  ;;  %877 = vmatprep.subr.mxu1 %v549_v18  ;;  %v488_v63 = vld [vmem:[#allocation7 + $0x60] sm:$0xff]  ;;  %v483_v3 = vld [vmem:[#allocation7 + $0x38] sm:$0xff]  ;;  %v482_v6 = vld [vmem:[#allocation7 + $0x30] sm:$0xff] }
  0x82   : > { %789 = vmatpush1.msra.mxu0 %v456_v19  ;;  %878 = vmatpush1.msra.mxu1 %v548_v20  ;;  %v385_v7 = vld [vmem:[#allocation5 + $0x28] sm:$0xff]  ;;  %v384_v9 = vld [vmem:[#allocation5 + $0x20] sm:$0xff]  ;;  %v571_v13 = vld [vmem:[#allocation7 + $0x2f8] sm:$0xff] }
  0x83   : > { %790 = vmatprep.subr.mxu0 %v451_v21  ;;  %879 = vmatprep.subr.mxu1 %v543_v22  ;;  %v477_v8 = vld [vmem:[#allocation7 + $0x8] sm:$0xff]  ;;  %v476_v10 = vld [vmem:[#allocation7] sm:$0xff]  ;;  %v570_v15 = vld [vmem:[#allocation7 + $0x2f0] sm:$0xff] }
  0x84   : > { %791 = vmatpush1.msra.mxu0 %v450_v23  ;;  %880 = vmatpush1.msra.mxu1 %v542_v24  ;;  %v2110_v11 = vld [vmem:[%s2048_s17] sm:$0xff]  ;;  %v569_v12 = vld [vmem:[#allocation7 + $0x2e8] sm:$0xff]  ;;  %v563_v16 = vld [vmem:[#allocation7 + $0x2b8] sm:$0xff] }
  0x85   : > { %792 = vmatprep.subr.mxu0 %v445_v25  ;;  %881 = vmatprep.subr.mxu1 %v537_v26  ;;  %v568_v14 = vld [vmem:[#allocation7 + $0x2e0] sm:$0xff]  ;;  %v565_v17 = vld [vmem:[#allocation7 + $0x2c8] sm:$0xff]  ;;  %v562_v18 = vld [vmem:[#allocation7 + $0x2b0] sm:$0xff] }
  0x86   : > { %793 = vmatpush1.msra.mxu0 %v444_v27  ;;  %882 = vmatpush1.msra.mxu1 %v536_v28  ;;  %v564_v19 = vld [vmem:[#allocation7 + $0x2c0] sm:$0xff]  ;;  %v557_v20 = vld [vmem:[#allocation7 + $0x288] sm:$0xff]  ;;  %v559_v22 = vld [vmem:[#allocation7 + $0x298] sm:$0xff] }
  0x87   : > { %794 = vmatprep.subr.mxu0 %v439_v29  ;;  %883 = vmatprep.subr.mxu1 %v531_v30  ;;  %v2117_v21 = vld [vmem:[%s2048_s17 + $0x8] sm:$0xff]  ;;  %v558_v23 = vld [vmem:[#allocation7 + $0x290] sm:$0xff]  ;;  %v551_v24 = vld [vmem:[#allocation7 + $0x258] sm:$0xff] }
  0x88   : > { %795 = vmatpush1.msra.mxu0 %v438_v31  ;;  %884 = vmatpush1.msra.mxu1 %v530_v32  ;;  %v553_v25 = vld [vmem:[#allocation7 + $0x268] sm:$0xff]  ;;  %v550_v26 = vld [vmem:[#allocation7 + $0x250] sm:$0xff]  ;;  %v552_v27 = vld [vmem:[#allocation7 + $0x260] sm:$0xff] }
  0x89   : > { %796 = vmatprep.subr.mxu0 %v433_v33  ;;  %885 = vmatprep.subr.mxu1 %v525_v34  ;;  %v545_v28 = vld [vmem:[#allocation7 + $0x228] sm:$0xff]  ;;  %v2122_v29 = vld [vmem:[%s2048_s17 + $0x10] sm:$0xff]  ;;  %v547_v30 = vld [vmem:[#allocation7 + $0x238] sm:$0xff] }
  0x8a   : > { %797 = vmatpush1.msra.mxu0 %v432_v35  ;;  %886 = vmatpush1.msra.mxu1 %v524_v36  ;;  %v544_v31 = vld [vmem:[#allocation7 + $0x220] sm:$0xff]  ;;  %v546_v32 = vld [vmem:[#allocation7 + $0x230] sm:$0xff]  ;;  %v539_v33 = vld [vmem:[#allocation7 + $0x1f8] sm:$0xff] }
  0x8b   : > { %798 = vmatprep.subr.mxu0 %v427_v37  ;;  %887 = vmatprep.subr.mxu1 %v519_v38  ;;  %v541_v34 = vld [vmem:[#allocation7 + $0x208] sm:$0xff]  ;;  %v538_v35 = vld [vmem:[#allocation7 + $0x1f0] sm:$0xff]  ;;  %v540_v36 = vld [vmem:[#allocation7 + $0x200] sm:$0xff] }
  0x8c   : > { %799 = vmatpush1.msra.mxu0 %v426_v39  ;;  %888 = vmatpush1.msra.mxu1 %v518_v40  ;;  %v533_v37 = vld [vmem:[#allocation7 + $0x1c8] sm:$0xff]  ;;  %v2127_v38 = vld [vmem:[%s2048_s17 + $0x18] sm:$0xff]  ;;  %v532_v40 = vld [vmem:[#allocation7 + $0x1c0] sm:$0xff] }
  0x8d   : > { %674 = vmatprep.mubr.f32.mxu0 %v1870_v0  ;;  %800 = vmatprep.subr.mxu0 %v421_v41  ;;  %v535_v39 = vld [vmem:[#allocation7 + $0x1d8] sm:$0xff]  ;;  %v534_v41 = vld [vmem:[#allocation7 + $0x1d0] sm:$0xff] }
  0x8e   : > { %889 = vmatprep.subr.mxu1 %v513_v42  ;;  %675 = vmatmul.mubr.f32.gmra.mxu0 %v2089_v43  ;;  %v527_v42 = vld [vmem:[#allocation7 + $0x198] sm:$0xff] }
  0x8f   : > { %763 = vmatprep.mubr.f32.mxu1 %v1870_v0  ;;  %801 = vmatpush1.msra.mxu0 %v420_v44  ;;  %v529_v44 = vld [vmem:[#allocation7 + $0x1a8] sm:$0xff] }
  0x90   : > { %890 = vmatpush1.msra.mxu1 %v512_v45  ;;  %802 = vmatprep.subr.mxu0 %v415_v46  ;;  %v526_v45 = vld [vmem:[#allocation7 + $0x190] sm:$0xff]  ;;  %v528_v46 = vld [vmem:[#allocation7 + $0x1a0] sm:$0xff] }
  0x91   : > { %764 = vmatmul.mubr.f32.gmra.mxu1 %v2089_v43  ;;  %891 = vmatprep.subr.mxu1 %v507_v47  ;;  %v521_v47 = vld [vmem:[#allocation7 + $0x168] sm:$0xff] }
  0x92   : > { %803 = vmatpush1.msra.mxu0 %v414_v48  ;;  %892 = vmatpush1.msra.mxu1 %v506_v49  ;;  %v523_v48 = vld [vmem:[#allocation7 + $0x178] sm:$0xff]  ;;  %v520_v49 = vld [vmem:[#allocation7 + $0x160] sm:$0xff] }
  0x93   : > { %680 = vmatprep.mubr.f32.mxu0 %v1870_v0  ;;  %804 = vmatprep.subr.mxu0 %v409_v50  ;;  %v522_v50 = vld [vmem:[#allocation7 + $0x170] sm:$0xff] }
  0x94   : > { %893 = vmatprep.subr.mxu1 %v501_v51  ;;  %681 = vmatmul.mubr.f32.gmra.mxu0 %v2096_v52  ;;  %v515_v51 = vld [vmem:[#allocation7 + $0x138] sm:$0xff] }
  0x95   : > { %769 = vmatprep.mubr.f32.mxu1 %v1870_v0  ;;  %805 = vmatpush1.msra.mxu0 %v408_v53  ;;  %v517_v53 = vld [vmem:[#allocation7 + $0x148] sm:$0xff] }
  0x96   : > { %894 = vmatpush1.msra.mxu1 %v500_v54  ;;  %806 = vmatprep.subr.mxu0 %v403_v55  ;;  %v514_v54 = vld [vmem:[#allocation7 + $0x130] sm:$0xff]  ;;  %v516_v55 = vld [vmem:[#allocation7 + $0x140] sm:$0xff] }
  0x97   : > { %770 = vmatmul.mubr.f32.gmra.mxu1 %v2096_v52  ;;  %895 = vmatprep.subr.mxu1 %v495_v56  ;;  %v509_v56 = vld [vmem:[#allocation7 + $0x108] sm:$0xff] }
  0x98   : > { %807 = vmatpush1.msra.mxu0 %v402_v57  ;;  %896 = vmatpush1.msra.mxu1 %v494_v58  ;;  %v511_v57 = vld [vmem:[#allocation7 + $0x118] sm:$0xff]  ;;  %v508_v58 = vld [vmem:[#allocation7 + $0x100] sm:$0xff] }
  0x99   : > { %686 = vmatprep.mubr.f32.mxu0 %v1870_v0  ;;  %808 = vmatprep.subr.mxu0 %v397_v59  ;;  %v510_v59 = vld [vmem:[#allocation7 + $0x110] sm:$0xff] }
  0x9a   : > { %897 = vmatprep.subr.mxu1 %v489_v60  ;;  %687 = vmatmul.mubr.f32.gmra.mxu0 %v2103_v61  ;;  %v503_v60 = vld [vmem:[#allocation7 + $0xd8] sm:$0xff] }
  0x9b   : > { %775 = vmatprep.mubr.f32.mxu1 %v1870_v0  ;;  %809 = vmatpush1.msra.mxu0 %v396_v62  ;;  %v505_v62 = vld [vmem:[#allocation7 + $0xe8] sm:$0xff] }
  0x9c   : > { %898 = vmatpush1.msra.mxu1 %v488_v63  ;;  %810 = vmatprep.subr.mxu0 %v391_v2  ;;  %v502_v63 = vld [vmem:[#allocation7 + $0xd0] sm:$0xff]  ;;  %v504_v2 = vld [vmem:[#allocation7 + $0xe0] sm:$0xff] }
  0x9d   : > { %776 = vmatmul.mubr.f32.gmra.mxu1 %v2103_v61  ;;  %899 = vmatprep.subr.mxu1 %v483_v3  ;;  %v499_v3 = vld [vmem:[#allocation7 + $0xb8] sm:$0xff] }
  0x9e   : > { %811 = vmatpush1.msra.mxu0 %v390_v5  ;;  %900 = vmatpush1.msra.mxu1 %v482_v6  ;;  %v496_v5 = vld [vmem:[#allocation7 + $0xa0] sm:$0xff]  ;;  %v498_v6 = vld [vmem:[#allocation7 + $0xb0] sm:$0xff] }
  0x9f   : > { %812 = vmatprep.subr.mxu0 %v385_v7  ;;  %901 = vmatprep.subr.mxu1 %v477_v8  ;;  %v491_v7 = vld [vmem:[#allocation7 + $0x78] sm:$0xff]  ;;  %v493_v8 = vld [vmem:[#allocation7 + $0x88] sm:$0xff] }
  0xa0   : > { %813 = vmatpush1.msra.mxu0 %v384_v9  ;;  %846 = vmatprep.mubr.f32.mxu0 %v1870_v0  ;;  %v492_v9 = vld [vmem:[#allocation7 + $0x80] sm:$0xff] }
  0xa1   : > { %902 = vmatpush1.msra.mxu1 %v476_v10  ;;  %935 = vmatprep.mubr.f32.mxu1 %v1870_v0  ;;  %v485_v10 = vld [vmem:[#allocation7 + $0x48] sm:$0xff] }
  0xa2   : > { %847 = vmatmul.mubr.f32.vlgmr.msra.gmra.mxu0 %v2084_v4  ;;  %936 = vmatmul.mubr.f32.vlgmr.msra.gmra.mxu1 %v2110_v11  ;;  %v556_v4 = vld [vmem:[#allocation7 + $0x280] sm:$0xff] }
  0xa3   : > { %960 = vmatprep.subr.mxu0 %v569_v12  ;;  %1049 = vmatprep.subr.mxu1 %v571_v13  ;;  %v487_v12 = vld [vmem:[#allocation7 + $0x58] sm:$0xff]  ;;  %v484_v13 = vld [vmem:[#allocation7 + $0x40] sm:$0xff] }
  0xa4   : > { %961 = vmatpush1.msra.mxu0 %v568_v14  ;;  %1050 = vmatpush1.msra.mxu1 %v570_v15  ;;  %v486_v14 = vld [vmem:[#allocation7 + $0x50] sm:$0xff] }
  0xa5   : > { %962 = vmatprep.subr.mxu0 %v563_v16  ;;  %1051 = vmatprep.subr.mxu1 %v565_v17  ;;  %v1322_v15 = vld [vmem:[%s369_s10 + $0x10] sm:$0xff]  ;;  %v1320_v16 = vld [vmem:[%s369_s10] sm:$0xff]  ;;  %v479_v17 = vld [vmem:[#allocation7 + $0x18] sm:$0xff] }
  0xa6   : > { %941 = vmatprep.mubr.f32.mxu1 %v1870_v0  ;;  %963 = vmatpush1.msra.mxu0 %v562_v18  ;;  %v481_v18 = vld [vmem:[#allocation7 + $0x28] sm:$0xff]  ;;  %vm1330_vm0 = vcmp.eq.s32.totalorder %v1322_v15, 1  ;;  %vm1328_vm1 = vcmp.eq.s32.totalorder %v1320_v16, 1  ;;  %vm1324_vm5 = vcmp.eq.s32.totalorder %v1320_v16, 0  ;;  %vm1326_vm7 = vcmp.eq.s32.totalorder %v1322_v15, 0 }
  0xa7   : > { %1052 = vmatpush1.msra.mxu1 %v564_v19  ;;  %964 = vmatprep.subr.mxu0 %v557_v20  ;;  %v478_v19 = vld [vmem:[#allocation7 + $0x10] sm:$0xff]  ;;  %v480_v20 = vld [vmem:[#allocation7 + $0x20] sm:$0xff] }
  0xa8   : > { %942 = vmatmul.mubr.f32.gmra.mxu1 %v2117_v21  ;;  %1053 = vmatprep.subr.mxu1 %v559_v22  ;;  %v1321_v22 = vld [vmem:[%s369_s10 + $0x8] sm:$0xff] }
  0xa9   : > { %965 = vmatpush1.msra.mxu0 %v556_v4  ;;  %1054 = vmatpush1.msra.mxu1 %v558_v23  ;;  %v1334_v4 = vsel %vm1330_vm0, 1, %v1871_v1  ;;  %v1332_v23 = vsel %vm1328_vm1, 1, %v1871_v1  ;;  %vm1329_vm3 = vcmp.eq.s32.totalorder %v1321_v22, 1  ;;  %vm1325_vm4 = vcmp.eq.s32.totalorder %v1321_v22, 0 }
  0xaa   : > { %966 = vmatprep.subr.mxu0 %v551_v24  ;;  %1055 = vmatprep.subr.mxu1 %v553_v25  ;;  %v1333_v25 = vsel %vm1329_vm3, 1, %v1871_v1 }
  0xab   : > { %947 = vmatprep.mubr.f32.mxu1 %v1870_v0  ;;  %967 = vmatpush1.msra.mxu0 %v550_v26  ;;  %v1357_v26 = vsel %vm1325_vm4, 1, %v1871_v1 }
  0xac   : > { %1056 = vmatpush1.msra.mxu1 %v552_v27  ;;  %968 = vmatprep.subr.mxu0 %v545_v28  ;;  %v1356_v27 = vsel %vm1324_vm5, 1, %v1871_v1 }
  0xad   : > { %948 = vmatmul.mubr.f32.gmra.mxu1 %v2122_v29  ;;  %1057 = vmatprep.subr.mxu1 %v547_v30  ;;  %v1358_v30 = vsel %vm1326_vm7, 1, %v1871_v1 }
  0xae   : > { %969 = vmatpush1.msra.mxu0 %v544_v31  ;;  %1058 = vmatpush1.msra.mxu1 %v546_v32 }
  0xaf   : > { %970 = vmatprep.subr.mxu0 %v539_v33  ;;  %1059 = vmatprep.subr.mxu1 %v541_v34 }
  0xb0   : > { %953 = vmatprep.mubr.f32.mxu1 %v1870_v0  ;;  %971 = vmatpush1.msra.mxu0 %v538_v35 }
  0xb1   : > { %1060 = vmatpush1.msra.mxu1 %v540_v36  ;;  %972 = vmatprep.subr.mxu0 %v533_v37 }
  0xb2   : > { %954 = vmatmul.mubr.f32.gmra.mxu1 %v2127_v38  ;;  %1061 = vmatprep.subr.mxu1 %v535_v39 }
  0xb3   : > { %973 = vmatpush1.msra.mxu0 %v532_v40  ;;  %1062 = vmatpush1.msra.mxu1 %v534_v41 }
  0xb4   : > { %974 = vmatprep.subr.mxu0 %v527_v42  ;;  %1063 = vmatprep.subr.mxu1 %v529_v44 }
  0xb5   : > { %975 = vmatpush1.msra.mxu0 %v526_v45  ;;  %1064 = vmatpush1.msra.mxu1 %v528_v46  ;;  %v574_v45 = vlaneseq }
  0xb6   : > { %976 = vmatprep.subr.mxu0 %v521_v47  ;;  %1065 = vmatprep.subr.mxu1 %v523_v48 }
  0xb7   : > { %852 = vmatprep.mubr.f32.mxu0 %v1870_v0  ;;  %977 = vmatpush1.msra.mxu0 %v520_v49  ;;  %v2184_v48 = vshrl.u32 %v574_v45, 7 }
  0xb8   : > { %1066 = vmatpush1.msra.mxu1 %v522_v50  ;;  %853 = vmatmul.mubr.f32.gmra.mxu0 %v2089_v43  ;;  %v497_v43 = vld [vmem:[#allocation7 + $0xa8] sm:$0xff] }
  0xb9   : > { %978 = vmatprep.subr.mxu0 %v515_v51  ;;  %1067 = vmatprep.subr.mxu1 %v517_v53  ;;  %v576_v51 = vsub.s32 0, %v2184_v48  ;;  %v2194_v53 = vld [vmem:[%s2349_s5] sm:$0x3f] }
  0xba   : > { %979 = vmatpush1.msra.mxu0 %v514_v54  ;;  %1068 = vmatpush1.msra.mxu1 %v516_v55 }
  0xbb   : > { %980 = vmatprep.subr.mxu0 %v509_v56  ;;  %1069 = vmatprep.subr.mxu1 %v511_v57  ;;  %v577_v56 = vrot.slane %v2194_v53, %v576_v51 }
  0xbc   : > { %858 = vmatprep.mubr.f32.mxu0 %v1870_v0  ;;  %981 = vmatpush1.msra.mxu0 %v508_v58 }
  0xbd   : > { %1070 = vmatpush1.msra.mxu1 %v510_v59  ;;  %859 = vmatmul.mubr.f32.gmra.mxu0 %v2096_v52  ;;  %v490_v52 = vld [vmem:[#allocation7 + $0x70] sm:$0xff] }
  0xbe   : > { %982 = vmatprep.subr.mxu0 %v503_v60  ;;  %1071 = vmatprep.subr.mxu1 %v505_v62 }
  0xbf   : > { %983 = vmatpush1.msra.mxu0 %v502_v63  ;;  %1072 = vmatpush1.msra.mxu1 %v504_v2 }
  0xc0   : > { %984 = vmatprep.subr.mxu0 %v497_v43  ;;  %1073 = vmatprep.subr.mxu1 %v499_v3 }
  0xc1   : > { %864 = vmatprep.mubr.f32.mxu0 %v1870_v0  ;;  %985 = vmatpush1.msra.mxu0 %v496_v5 }
  0xc2   : > { %1074 = vmatpush1.msra.mxu1 %v498_v6  ;;  %865 = vmatmul.mubr.f32.gmra.mxu0 %v2103_v61  ;;  %v1323_v61 = vld [vmem:[%s369_s10 + $0x18] sm:$0xff]  ;;  %s1872_s10 = smov [#allocation8]  }
  0xc3   : > { %986 = vmatprep.subr.mxu0 %v491_v7  ;;  %1075 = vmatprep.subr.mxu1 %v493_v8  ;;  %vm1331_vm2 = vcmp.eq.s32.totalorder %v1323_v61, 1  ;;  %vm1327_vm6 = vcmp.eq.s32.totalorder %v1323_v61, 0  ;;  %s1797_s29 = sshll.u32 %s1872_s10, 4  ;;  %s1798_s29 = int_to_ptr.vmem [resolvable:$false] %s1797_s29 }
  0xc4   : > { %987 = vmatpush1.msra.mxu0 %v490_v52  ;;  %1076 = vmatpush1.msra.mxu1 %v492_v9  ;;  %v1335_v24 = vsel %vm1331_vm2, 1, %v1871_v1  ;;  %v1359_v28 = vsel %vm1327_vm6, 1, %v1871_v1  ;;  %v588_v9 = vsub.s32 3, %v2184_v48  ;;  %s1799_s14 = scalar_lea.vmem %s1798_s29, 1024  ;;  %p1800_p12 = scmp.lt.s32.totalorder %s2294_s3, %s1798_s29 }
  0xc5   : > { %988 = vmatprep.subr.mxu0 %v485_v10  ;;  %1077 = vmatprep.subr.mxu1 %v487_v12  ;;  %p1801_p7 = scmp.lt.s32.totalorder %s1799_s14, %s1793_s19 }
  0xc6   : > { %989 = vmatpush1.msra.mxu0 %v484_v13  ;;  %1078 = vmatpush1.msra.mxu1 %v486_v14  ;;  %v589_v16 = vrot.slane %v2194_v53, %v588_v9 }
  0xc7   : > { %990 = vmatprep.subr.mxu0 %v479_v17  ;;  %1079 = vmatprep.subr.mxu1 %v481_v18  ;;  %p1802_p9 = por %p1801_p7, %p1800_p12 }
  0xc8   : > { %991 = vmatpush1.msra.mxu0 %v478_v19  ;;  %1024 = vmatprep.mubr.f32.mxu0 %v1870_v0 }
  0xc9   : > { %1080 = vmatpush1.msra.mxu1 %v480_v20  ;;  %1113 = vmatprep.mubr.f32.mxu1 %v1870_v0  ;;  %p1803_p13 = pnand %p1802_p9, %p1796_p6 }
  0xca   : > { %1025 = vmatmul.mubr.f32.vlgmr.msra.gmra.mxu0 %v2110_v11  ;;  %1114 = vmatmul.mubr.f32.vlgmr.msra.gmra.mxu1 %v2110_v11 }
  0xcb   : > { %1030 = vmatprep.mubr.f32.mxu0 %v1870_v0  ;;  %1119 = vmatprep.mubr.f32.mxu1 %v1870_v0 }
  0xcc   : > { %1343 = vperm.xlu1 %1632, %v1334_v4   ;;  %1337 = vperm.xlu0 %1631, %v1332_v23  }
  0xce   : > { %1031 = vmatmul.mubr.f32.gmra.mxu0 %v2117_v21  ;;  %1120 = vmatmul.mubr.f32.gmra.mxu1 %v2117_v21 }
  0xcf   : > { %1036 = vmatprep.mubr.f32.mxu0 %v1870_v0  ;;  %1125 = vmatprep.mubr.f32.mxu1 %v1870_v0 }
  0xd0   : > { %1346 = vperm.xlu1 %1632, %v1335_v24   ;;  %1340 = vperm.xlu0 %1631, %v1333_v25  }
  0xd2   : > { %1037 = vmatmul.mubr.f32.gmra.mxu0 %v2122_v29  ;;  %1126 = vmatmul.mubr.f32.gmra.mxu1 %v2122_v29 }
  0xd3   : > { %1042 = vmatprep.mubr.f32.mxu0 %v1870_v0  ;;  %1131 = vmatprep.mubr.f32.mxu1 %v1870_v0 }
  0xd4   : > { %1364 = vperm.xlu1 %1632, %v1357_v26   ;;  %1361 = vperm.xlu0 %1631, %v1356_v27   ;;  %v580_v26 = vsub.s32 1, %v2184_v48 }
  0xd6   : > { %1043 = vmatmul.mubr.f32.gmra.mxu0 %v2127_v38  ;;  %1132 = vmatmul.mubr.f32.gmra.mxu1 %v2127_v38 }
  0xd8   : > { %1370 = vperm.xlu1 %1632, %v1359_v28   ;;  %1367 = vperm.xlu0 %1631, %v1358_v30  }
 0x13a   : > { %v670_v33 = vpop.f32.mrf.mxu0 }
 0x13b   : > { %v2166_v31 = vpop.f32.mrf.mxu1  ;;  %v671_v60 = vadd.f32 %v670_v33, %v577_v56  ;;  %v592_v33 = vsub.s32 4, %v2184_v48 }
 0x13c   : > { %v2170_v35 = vpop.f32.mrf.mxu0 }
 0x13d   : > { %v761_v32 = vpop.f32.mrf.mxu1 }
 0x13e   : > { %v762_v4 = vadd.f32 %v761_v32, %v589_v16  ;;  %v581_v32 = vrot.slane %v2194_v53, %v580_v26 }
 0x14e   : > { %v676_v36 = vpop.f32.mrf.mxu0 }
 0x14f   : > { %v677_v43 = vadd.f32 %v676_v36, %v577_v56 }
 0x150   : > { %v2174_v39 = vpop.f32.mrf.mxu0 }
 0x151   : > { %v2168_v34 = vpop.f32.mrf.mxu1 }
 0x153   : > { %v767_v0 = vpop.f32.mrf.mxu1 }
 0x154   : > { %v682_v40 = vpop.f32.mrf.mxu0  ;;  %v768_v30 = vadd.f32 %v767_v0, %v589_v16 }
 0x155   : > { %v683_v52 = vadd.f32 %v682_v40, %v577_v56 }
 0x156   : > { %v2180_v42 = vpop.f32.mrf.mxu0 }
 0x157   : > { %v2172_v37 = vpop.f32.mrf.mxu1 }
 0x159   : > { %v2176_v1 = vpop.f32.mrf.mxu1 }
 0x15a   : > { %v688_v46 = vpop.f32.mrf.mxu0 }
 0x15b   : > { %v689_v15 = vadd.f32 %v688_v46, %v577_v56  ;;  %v593_v56 = vrot.slane %v2194_v53, %v592_v33 }
 0x15c   : > { %v2186_v49 = vpop.f32.mrf.mxu0 }
 0x15d   : > { %v2178_v41 = vpop.f32.mrf.mxu1 }
 0x15f   : > { %v2182_v44 = vpop.f32.mrf.mxu1 }
 0x162   : > { %v937_v47 = vpop.f32.mrf.mxu1  ;;  %v2196_v54 = vpop.f32.mrf.mxu0 }
 0x163   : > { %v1139_v63 = vadd.f32 %v937_v47, %v671_v60 }
 0x164   : > { %v2188_v50 = vpop.f32.mrf.mxu1  ;;  %v2199_v57 = vpop.f32.mrf.mxu0 }
 0x165   : > { %v1531_v5 = vmul.f32 -1.442695, %v1139_v63 }
 0x167   : > { %1633 = vpow2.f32 %v1531_v5  ;;  %v673_v5 = vadd.f32 %v2170_v35, %v581_v32  ;;  %v679_v35 = vadd.f32 %v2174_v39, %v581_v32 }
 0x168   : > { %v943_v55 = vpop.f32.mrf.mxu1 }
 0x169   : > { %v1140_v6 = vadd.f32 %v943_v55, %v677_v43  ;;  %v774_v55 = vadd.f32 %v2176_v1, %v589_v16 }
 0x16a   : > { %v2201_v58 = vpop.f32.mrf.mxu1 }
 0x16b   : > { %v1532_v10 = vmul.f32 -1.442695, %v1140_v6  ;;  %v780_v6 = vadd.f32 %v2182_v44, %v589_v16  ;;  %v1168_v26 = vadd.f32 %v2201_v58, %v679_v35  ;;  %v1539_v58 = vld [vmem:[%s2350_s6] ss:$0 sm:$0xff]  ;;  %v1548_v35 = vld [vmem:[%s2350_s6 + $0x1] ss:$0 sm:$0xff] }
 0x16d   : > { %v949_v2 = vpop.f32.mrf.mxu1  ;;  %1635 = vpow2.f32 %v1532_v10  ;;  %v849_v10 = vadd.f32 %v2196_v54, %v593_v56 }
 0x16e   : > { %v1141_v12 = vadd.f32 %v949_v2, %v683_v52 }
 0x16f   : > { %v2209_v7 = vpop.f32.mrf.mxu1 }
 0x170   : > { %v1533_v17 = vmul.f32 -1.442695, %v1141_v12 }
 0x172   : > { %v955_v13 = vpop.f32.mrf.mxu1  ;;  %1637 = vpow2.f32 %v1533_v17 }
 0x173   : > { %v1142_v18 = vadd.f32 %v955_v13, %v689_v15  ;;  %v1167_v15 = vadd.f32 %v2188_v50, %v673_v5  ;;  %v685_v50 = vadd.f32 %v2180_v42, %v581_v32 }
 0x174   : > { %v2217_v19 = vpop.f32.mrf.mxu1  ;;  %v1634_v40 = vpop.eup %1633 }
 0x175   : > { %v1534_v23 = vmul.f32 -1.442695, %v1142_v18  ;;  %v1155_v60 = vadd.f32 1.0, %v1634_v40  ;;  %v1535_v54 = vmul.f32 -1.442695, %v1167_v15 }
 0x177   : > { %1639 = vpow2.f32 %v1534_v23 }
 0x178   : > { %v2203_v59 = vpop.f32.mrf.mxu0 }
 0x179   : > { %v855_v16 = vadd.f32 %v2203_v59, %v593_v56  ;;  %v1169_v59 = vadd.f32 %v2209_v7, %v685_v50 }
 0x17a   : > { %v2205_v62 = vpop.f32.mrf.mxu0  ;;  %v1636_v0 = vpop.eup %1635 }
 0x17b   : > { %v1156_v1 = vadd.f32 1.0, %v1636_v0 }
 0x17d   : > { %v2207_v3 = vpop.f32.mrf.mxu0 }
 0x17e   : > { %v861_v40 = vadd.f32 %v2207_v3, %v593_v56 }
 0x17f   : > { %v2211_v8 = vpop.f32.mrf.mxu0  ;;  %v1638_v13 = vpop.eup %1637 }
 0x180   : > { %v1157_v44 = vadd.f32 1.0, %v1638_v13 }
 0x182   : > { %v2214_v14 = vpop.f32.mrf.mxu0 }
 0x183   : > { %v867_v3 = vadd.f32 %v2214_v14, %v593_v56  ;;  %v596_v14 = vsub.s32 5, %v2184_v48 }
 0x184   : > { %v2219_v20 = vpop.f32.mrf.mxu0 }
 0x18a   : > { %v2221_v61 = vpop.f32.mrf.mxu0  ;;  %v1115_v22 = vpop.f32.mrf.mxu1 }
 0x18b   : > { %v1258_v18 = vadd.f32 %v1115_v22, %v849_v10  ;;  %v1201_v7 = vadd.f32 %v1539_v58, %v2221_v61 }
 0x18c   : > { %v1028_v24 = vpop.f32.mrf.mxu0  ;;  %v2224_v27 = vpop.f32.mrf.mxu1 }
 0x18d   : > { %v1230_v25 = vadd.f32 %v1028_v24, %v762_v4 }
 0x18e   : > { %v2226_v28 = vpop.f32.mrf.mxu0  ;;  %v1121_v47 = vpop.f32.mrf.mxu1 }
 0x18f   : > { %v1540_v36 = vmul.f32 -1.442695, %v1230_v25  ;;  %v1640_v25 = vpop.eup %1639  ;;  %v1259_v33 = vadd.f32 %v1121_v47, %v855_v16  ;;  %v584_v47 = vsub.s32 2, %v2184_v48  ;;  %v1202_v13 = vadd.f32 %v1539_v58, %v2226_v28 }
 0x190   : > { %v1034_v45 = vpop.f32.mrf.mxu0  ;;  %v2236_v52 = vpop.f32.mrf.mxu1  ;;  %v1158_v39 = vadd.f32 1.0, %v1640_v25  ;;  %v597_v48 = vrot.slane %v2194_v53, %v596_v14 }
 0x191   : > { %v1231_v46 = vadd.f32 %v1034_v45, %v768_v30  ;;  %1641 = vpow2.f32 %v1540_v36  ;;  %v1544_v30 = vmul.f32 -1.442695, %v1258_v18  ;;  %v1536_v45 = vmul.f32 -1.442695, %v1168_v26 }
 0x192   : > { %v2230_v51 = vpop.f32.mrf.mxu0  ;;  %v1127_v23 = vpop.f32.mrf.mxu1  ;;  %v1545_v42 = vmul.f32 -1.442695, %v1259_v33  ;;  %v585_v10 = vrot.slane %v2194_v53, %v584_v47 }
 0x193   : > { %v1541_v63 = vmul.f32 -1.442695, %v1231_v46  ;;  %v1203_v28 = vadd.f32 %v1539_v58, %v2230_v51 }
 0x194   : > { %v1040_v2 = vpop.f32.mrf.mxu0  ;;  %v2246_v36 = vpop.f32.mrf.mxu1 }
 0x195   : > { %v1232_v43 = vadd.f32 %v1040_v2, %v774_v55  ;;  %1643 = vpow2.f32 %v1541_v63  ;;  %v1260_v55 = vadd.f32 %v1127_v23, %v861_v40  ;;  %v772_v40 = vadd.f32 %v2172_v37, %v585_v10 }
 0x196   : > { %v2238_v9 = vpop.f32.mrf.mxu0  ;;  %1645 = vrcp.f32 %v1155_v60  ;;  %v691_v60 = vadd.f32 %v2186_v49, %v581_v32  ;;  %v1133_v63 = vpop.f32.mrf.mxu1 }
 0x197   : > { %v1542_v12 = vmul.f32 -1.442695, %v1232_v43  ;;  %v1537_v43 = vmul.f32 -1.442695, %v1169_v59  ;;  %v1204_v50 = vadd.f32 %v1539_v58, %v2238_v9 }
 0x198   : > { %v1046_v17 = vpop.f32.mrf.mxu0  ;;  %v1170_v5 = vadd.f32 %v2217_v19, %v691_v60  ;;  %v857_v60 = vadd.f32 %v2205_v62, %v597_v48 }
 0x199   : > { %v1233_v4 = vadd.f32 %v1046_v17, %v780_v6  ;;  %1647 = vpow2.f32 %v1542_v12  ;;  %v1261_v12 = vadd.f32 %v1133_v63, %v867_v3  ;;  %v760_v17 = vadd.f32 %v2166_v31, %v585_v10 }
 0x19a   : > { %1649 = vrcp.f32 %v1156_v1  ;;  %v1546_v1 = vmul.f32 -1.442695, %v1260_v55  ;;  %v1538_v61 = vmul.f32 -1.442695, %v1170_v5  ;;  %v766_v31 = vadd.f32 %v2168_v34, %v585_v10 }
 0x19b   : > { %v1543_v24 = vmul.f32 -1.442695, %v1233_v4  ;;  %v1547_v19 = vmul.f32 -1.442695, %v1261_v12  ;;  %v863_v5 = vadd.f32 %v2211_v8, %v597_v48 }
 0x19d   : > { %1651 = vpow2.f32 %v1543_v24 }
 0x19e   : > { %v1642_v22 = vpop.eup %1641  ;;  %1653 = vrcp.f32 %v1157_v44 }
 0x19f   : > { %1655 = vpow2.f32 %v1535_v54  ;;  %v1246_v46 = vadd.f32 1.0, %v1642_v22  ;;  %v1292_v54 = vadd.f32 %v1548_v35, %v2224_v27  ;;  %v851_v22 = vadd.f32 %v2199_v57, %v597_v48 }
 0x1a0   : > { %1657 = vpow2.f32 %v1544_v30  ;;  %v1293_v27 = vadd.f32 %v1548_v35, %v2236_v52  ;;  %v778_v57 = vadd.f32 %v2178_v41, %v585_v10  ;;  %v1338_v41 = vpop.permute.xlu0 %1337 }
 0x1a1   : > { %1659 = vrcp.f32 %v1246_v46  ;;  %vm1348_vm8 = vcmp.eq.s32.totalorder %v1338_v41, 1 }
 0x1a2   : > { %v1644_v0 = vpop.eup %1643  ;;  %1661 = vrcp.f32 %v1158_v39 }
 0x1a3   : > { %v1646_v2 = vpop.eup %1645  ;;  %1663 = vpow2.f32 %v1536_v45  ;;  %v1247_v6 = vadd.f32 1.0, %v1644_v0 }
 0x1a4   : > { %1665 = vpow2.f32 %v1545_v42  ;;  %v1205_v32 = vmul.f32 %v1646_v2, %v1201_v7  ;;  %v1294_v7 = vadd.f32 %v1548_v35, %v2246_v36 }
 0x1a5   : > { %1667 = vrcp.f32 %v1247_v6 }
 0x1a6   : > { %v1648_v49 = vpop.eup %1647  ;;  %1669 = vpow2.f32 %v1537_v43  ;;  %v1209_v4 = vadd.f32 %v1205_v32, %v760_v17  ;;  %v1135_v43 = vpop.f32.mrf.mxu1 }
 0x1a7   : > { %v1650_v15 = vpop.eup %1649  ;;  %v1248_v56 = vadd.f32 1.0, %v1648_v49  ;;  %1671 = vpow2.f32 %v1546_v1  ;;  %v1295_v32 = vadd.f32 %v1548_v35, %v1135_v43  ;;  %v1344_v17 = vpop.permute.xlu1 %1343 }
 0x1a8   : > { %v1206_v23 = vmul.f32 %v1650_v15, %v1202_v13  ;;  %v869_v15 = vadd.f32 %v2219_v20, %v597_v48  ;;  %vm1350_vm12 = vcmp.eq.s32.totalorder %v1344_v17, 1 }
 0x1a9   : > { %1673 = vrcp.f32 %v1248_v56 }
 0x1aa   : > { %v1652_v18 = vpop.eup %1651  ;;  %1675 = vpow2.f32 %v1538_v61  ;;  %v1210_v30 = vadd.f32 %v1206_v23, %v766_v31 }
 0x1ab   : > { %v1654_v44 = vpop.eup %1653  ;;  %v1249_v16 = vadd.f32 1.0, %v1652_v18  ;;  %1677 = vpow2.f32 %v1547_v19  ;;  %v1341_v19 = vpop.permute.xlu0 %1340 }
 0x1ac   : > { %v1656_v24 = vpop.eup %1655  ;;  %v1207_v33 = vmul.f32 %v1654_v44, %v1203_v28  ;;  %vm1349_vm10 = vcmp.eq.s32.totalorder %v1341_v19, 1 }
 0x1ad   : > { %v1658_v25 = vpop.eup %1657  ;;  %1679 = vrcp.f32 %v1249_v16  ;;  %v1183_v45 = vadd.f32 1.0, %v1656_v24 }
 0x1ae   : > { %v1660_v26 = vpop.eup %1659  ;;  %1681 = vtanh.f32 %v1209_v4  ;;  %v1274_v59 = vadd.f32 1.0, %v1658_v25  ;;  %v1211_v42 = vadd.f32 %v1207_v33, %v772_v40  ;;  %v1347_v25 = vpop.permute.xlu1 %1346 }
 0x1af   : > { %v1662_v51 = vpop.eup %1661  ;;  %v1296_v53 = vmul.f32 %v1660_v26, %v1292_v54  ;;  %1683 = vtanh.f32 %v1210_v30  ;;  %v1362_v54 = vpop.permute.xlu0 %1361  ;;  %vm1351_vm14 = vcmp.eq.s32.totalorder %v1347_v25, 1 }
 0x1b0   : > { %v1664_v39 = vpop.eup %1663  ;;  %v1208_v55 = vmul.f32 %v1662_v51, %v1204_v50  ;;  %vm1372_vm9 = vcmp.eq.s32.totalorder %v1362_v54, 1 }
 0x1b1   : > { %v1666_v34 = vpop.eup %1665  ;;  %v1300_v46 = vadd.f32 %v1296_v53, %v851_v22  ;;  %v1184_v63 = vadd.f32 1.0, %v1664_v39 }
 0x1b2   : > { %v1668_v47 = vpop.eup %1667  ;;  %v1275_v0 = vadd.f32 1.0, %v1666_v34  ;;  %v1212_v2 = vadd.f32 %v1208_v55, %v778_v57 }
 0x1b3   : > { %1685 = vtanh.f32 %v1300_v46  ;;  %v1297_v9 = vmul.f32 %v1668_v47, %v1293_v27  ;;  %v1670_v58 = vpop.eup %1669  ;;  %v1365_v47 = vpop.permute.xlu1 %1364 }
 0x1b4   : > { %1687 = vrcp.f32 %v1183_v45  ;;  %v1672_v37 = vpop.eup %1671  ;;  %v1185_v1 = vadd.f32 1.0, %v1670_v58  ;;  %vm1373_vm11 = vcmp.eq.s32.totalorder %v1365_v47, 1 }
 0x1b5   : > { %1689 = vrcp.f32 %v1274_v59  ;;  %v1301_v3 = vadd.f32 %v1297_v9, %v857_v60  ;;  %v1276_v12 = vadd.f32 1.0, %v1672_v37 }
 0x1b6   : > { %v1674_v52 = vpop.eup %1673  ;;  %1691 = vtanh.f32 %v1211_v42 }
 0x1b7   : > { %1693 = vtanh.f32 %v1301_v3  ;;  %v1298_v62 = vmul.f32 %v1674_v52, %v1294_v7  ;;  %v1676_v6 = vpop.eup %1675 }
 0x1b8   : > { %1695 = vrcp.f32 %v1184_v63  ;;  %v1678_v10 = vpop.eup %1677  ;;  %v1186_v8 = vadd.f32 1.0, %v1676_v6  ;;  %v1368_v63 = vpop.permute.xlu0 %1367 }
 0x1b9   : > { %1697 = vrcp.f32 %v1275_v0  ;;  %v1302_v49 = vadd.f32 %v1298_v62, %v863_v5  ;;  %v1277_v61 = vadd.f32 1.0, %v1678_v10  ;;  %vm1374_vm13 = vcmp.eq.s32.totalorder %v1368_v63, 1  ;;  %v1371_v62 = vpop.permute.xlu1 %1370 }
 0x1ba   : > { %v1680_v13 = vpop.eup %1679  ;;  %1699 = vtanh.f32 %v1212_v2  ;;  %vm1375_vm15 = vcmp.eq.s32.totalorder %v1371_v62, 1 }
 0x1bb   : > { %v1682_v36 = vpop.eup %1681  ;;  %1701 = vtanh.f32 %v1302_v49  ;;  %v1299_v14 = vmul.f32 %v1680_v13, %v1295_v32 }
 0x1bc   : > { %1703 = vrcp.f32 %v1185_v1  ;;  %v1217_v18 = vsub.f32 %v2110_v11, %v1682_v36  ;;  %v1684_v4 = vpop.eup %1683 }
 0x1bd   : > { %1705 = vrcp.f32 %v1276_v12  ;;  %v1303_v56 = vadd.f32 %v1299_v14, %v869_v15  ;;  %v1218_v44 = vsub.f32 %v2117_v21, %v1684_v4 }
 0x1bf   : > { %1707 = vtanh.f32 %v1303_v56 }
 0x1c0   : > { %v1686_v23 = vpop.eup %1685  ;;  %1709 = vrcp.f32 %v1186_v8 }
 0x1c1   : > { %v1688_v35 = vpop.eup %1687  ;;  %1711 = vrcp.f32 %v1277_v61  ;;  %v1308_v28 = vsub.f32 %v2110_v11, %v1686_v23 }
 0x1c2   : > { %v1690_v20 = vpop.eup %1689  ;;  %v1221_v48 = vmul.f32 %v1688_v35, %v1217_v18 }
 0x1c3   : > { %v1692_v16 = vpop.eup %1691  ;;  %v1312_v24 = vmul.f32 %v1690_v20, %v1308_v28 }
 0x1c4   : > { %v1694_v31 = vpop.eup %1693  ;;  %v1225_v22 = vadd.f32 %v1682_v36, %v1221_v48  ;;  %v1219_v11 = vsub.f32 %v2122_v29, %v1692_v16 }
 0x1c5   : > { %v1696_v26 = vpop.eup %1695  ;;  %v1316_v30 = vadd.f32 %v1686_v23, %v1312_v24  ;;  %v1309_v33 = vsub.f32 %v2117_v21, %v1694_v31 }
 0x1c6   : > { %v1698_v50 = vpop.eup %1697  ;;  %v1222_v51 = vmul.f32 %v1696_v26, %v1218_v44 }
 0x1c7   : > { %v1700_v53 = vpop.eup %1699  ;;  %v1352_v39 = vsel %vm1348_vm8, %v1316_v30, 0.0  ;;  %v1313_v40 = vmul.f32 %v1698_v50, %v1309_v33 }
 0x1c8   : > { %v1702_v45 = vpop.eup %1701  ;;  %v1376_v34 = vsel %vm1372_vm9, %v1225_v22, %v1352_v39  ;;  %v1226_v42 = vadd.f32 %v1684_v4, %v1222_v51  ;;  %v1220_v55 = vsub.f32 %v2127_v38, %v1700_v53 }
 0x1c9   : > { %v1704_v59 = vpop.eup %1703  ;;  %v1310_v46 = vsub.f32 %v2122_v29, %v1702_v45  ;;  %v1317_v27 = vadd.f32 %v1694_v31, %v1313_v40  ;;  %1380 = vst [vmem:[%s2286_s18] sm:$0xff] %v1376_v34 }
 0x1ca   : > { %v1706_v21 = vpop.eup %1705  ;;  %v1223_v60 = vmul.f32 %v1704_v59, %v1219_v11 }
 0x1cb   : > { %v1314_v9 = vmul.f32 %v1706_v21, %v1310_v46  ;;  %v1353_v58 = vsel %vm1349_vm10, %v1317_v27, 0.0 }
 0x1cc   : > { %v1708_v29 = vpop.eup %1707  ;;  %v1377_v57 = vsel %vm1373_vm11, %v1226_v42, %v1353_v58  ;;  %v1227_v2 = vadd.f32 %v1692_v16, %v1223_v60 }
 0x1cd   : > { %v1710_v37 = vpop.eup %1709  ;;  %v1318_v0 = vadd.f32 %v1702_v45, %v1314_v9  ;;  %v1311_v3 = vsub.f32 %v2127_v38, %v1708_v29  ;;  %1381 = vst [vmem:[%s2286_s18 + $0x8] sm:$0xff] %v1377_v57 }
 0x1ce   : > { %v1712_v7 = vpop.eup %1711  ;;  %v1224_v52 = vmul.f32 %v1710_v37, %v1220_v55 }
 0x1cf   : > { %v1354_v43 = vsel %vm1350_vm12, %v1318_v0, 0.0  ;;  %v1315_v5 = vmul.f32 %v1712_v7, %v1311_v3 }
 0x1d0   : > { %v1378_v6 = vsel %vm1374_vm13, %v1227_v2, %v1354_v43  ;;  %v1228_v38 = vadd.f32 %v1700_v53, %v1224_v52 }
 0x1d1   : > { %v1319_v1 = vadd.f32 %v1708_v29, %v1315_v5  ;;  %1382 = vst [vmem:[%s2286_s18 + $0x10] sm:$0xff] %v1378_v6 }
 0x1d3   : > { %v1355_v41 = vsel %vm1351_vm14, %v1319_v1, 0.0 }
 0x1d4   : > { %v1379_v10 = vsel %vm1375_vm15, %v1228_v38, %v1355_v41 }
 0x1d5   : > { %1383 = vst [vmem:[%s2286_s18 + $0x18] sm:$0xff] %v1379_v10 }
 0x1d6   : > { %1806 = shalt.err (!%p1803_p13)
}
 0x1d7   : > { %s1807_s16 = scalar_lea.hbm %s2300_s13, 512  ;;  %s1811_s9 = scalar_lea.hbm %s2351_s7, 1024 }
 0x1d8   : > { %p1808_p5 = scmp.ne.s32.totalorder %s2300_s13, %s1807_s16  ;;  %p1812_p8 = scmp.lt.s32.totalorder %s2300_s13, %s2351_s7 }
 0x1d9   : > { %p1813_p3 = scmp.lt.s32.totalorder %s1811_s9, %s1807_s16 }
 0x1da   : > { %p1809_p0 = pnand %p1808_p5, %p2370_p1 }
 0x1db   : > { %p1814_p11 = por %p1813_p3, %p1812_p8 }
 0x1dc   : > { %p1810_p4 = pneg %p1809_p0 }
 0x1de   : > { %p1815_p10 = pnand %p1814_p11, %p1810_p4 }
 0x1e0   : > { %1818 = shalt.err (!%p1815_p10)
}
 0x1e1   : > { %s1873_s21 = smov 128   ;;  %s1874_s22 = smov 8  }
 0x1e2   : > { %1566 = dma.vmem_to_hbm [thread:$0]  (%p2370_p1), %s2294_s3, 512, %s2300_s13, %s1385_s28, %s1873_s21, %s1873_s21, %s1874_s22  }
 0x1e3 PF: > { %s1413_s19 = sand.u32 1, %s1849_s24   ;;  %p2371_p2 = scmp.ne.s32.totalorder %s2358_s8, 0 }
 0x1e4   : > { %p2372_p6 = scmp.ge.s32.totalorder %s1861_s27, 2  ;;  %s1414_s10 = scalar_lea.sflag [#allocation4], %s1413_s19 }
 0x1e6   : > { %p1580_p12 = pnand %p2372_p6, %p2371_p2 }
 0x1e8   : > { %p1581_p7 = pneg %p1580_p12 }
 0x1ea   : > { %1844 = dma.done.wait (%p1581_p7), %s1414_s10, 512  }
 0x1eb   : > { %1846 = vsyncadd (%p1581_p7), %s1414_s10, 4294966784  ;;  %p21_p9 = scmp.ge.s32.totalorder %s1987_s23, 4   ;;  %s2373_s24 = smov %s1853_s25 }
 0x1ec   : > { %s2374_s25 = smov %s1857_s26  ;;  %s2375_s26 = smov %s2003_s12 }
 0x1ed   : > { %s2376_s27 = smov %s1987_s23  ;;  %23 = sbr.rel (!%p21_p9) target bundleno = 8 (0x8), region = 107 }
 0x1f2   :  { %1419 = vsyncpa [#allocation3], 1 }
 0x1f3   :  { %1421 = vsyncpa [#allocation3 + $0x1], 1 }
 0x1f4   :  { %1422 = vsyncpa [#allocation6], 1 }
 0x1f5   :  { %1423 = vsyncpa [#allocation4], 1 }
 0x1f6   :  { %1425 = vsyncpa [#allocation4 + $0x1], 1 }

// kernel: tpu_custom_call.1
= control target key start
LH: loop header
LB: loop body
LE: loop exit
PB: predicated region body
PF: predicated region fallthrough
CT: control target
= control target key end

     0   :  { %s2344_s0 = inlined_call_operand.vmem [shape: f32[64,128], index: 0, kind: input, shape index: {}]   ;;  %s2345_s1 = inlined_call_operand.hbm [shape: f32[64,128], index: 1, kind: input, shape index: {}]   ;;  %s2346_s2 = inlined_call_operand.vmem [shape: s32[64,1], index: 2, kind: input, shape index: {}]   ;;  %s2347_s3 = inlined_call_operand.hbm [shape: f32[128,768], index: 3, kind: input, shape index: {}]   ;;  %s2348_s4 = inlined_call_operand.hbm [shape: f32[128,768], index: 4, kind: input, shape index: {}]   ;;  %s2349_s5 = inlined_call_operand.vmem [shape: f32[1,768], index: 5, kind: input, shape index: {}]   ;;  %s2350_s6 = inlined_call_operand.vmem [shape: f32[1,256], index: 6, kind: input, shape index: {}]   ;;  %s2351_s7 = inlined_call_operand.hbm [shape: f32[64,128], index: 7, kind: output, shape index: {}]  }
   0x1   :  { %2356 = sst [smem:[#allocation12_spill]] %s2347_s3 }
   0x2   :  { %12 = vsyncpa [#allocation3], 0 }
   0x3   :  { %14 = vsyncpa [#allocation3 + $0x1], 0 }
   0x4   :  { %15 = vsyncpa [#allocation6], 0 }
   0x5   :  { %16 = vsyncpa [#allocation4], 0 }
   0x6   :  { %18 = vsyncpa [#allocation4 + $0x1], 0  ;;  %s1915_s24 = smov 0   ;;  %s1917_s25 = smov 0  }
   0x7   :  { %s1919_s26 = smov 0   ;;  %s1921_s27 = smov 0  }
   0x8 LB: > { %s1936_s28 = sadd.s32 4294967295, %s1861_s27   ;;  %s1514_s29 = sadd.s32 4294967294, %s1861_s27   ;;  %s1861_s27 = sphi %s1921_s27, %s2376_s27   ;;  %s1857_s26 = sphi %s1919_s26, %s2375_s26   ;;  %s1853_s25 = sphi %s1917_s25, %s2374_s25   ;;  %s1849_s24 = sphi %s1915_s24, %s2373_s24  }
   0x9   : > { %p70_p0 = scmp.ne.s32.totalorder %s1853_s25, %s1849_s24  ;;  %p2352_p1 = scmp.eq.s32.totalorder %s1936_s28, 0 }
   0xa   : > { %p210_p3 = scmp.eq.s32.totalorder %s1514_s29, 1  ;;  %p1515_p5 = scmp.ge.s32.totalorder %s1861_s27, 1 }
   0xb   : > { %p1945_p4 = por %p2352_p1, %p70_p0  ;;  %p217_p7 = scmp.lt.s32.totalorder %s1861_s27, 3 }
   0xc   : > { %p1950_p6 = por %p210_p3, %p70_p0  ;;  %s1863_s10 = smov [#allocation5]  }
   0xd   : > { %s2357_s30 = scalar_select %p1945_p4, 1, 0 }
   0xe   : > { %s2358_s8 = scalar_select %p1950_p6, 1, 0 }
   0xf   : > { %p1955_p8 = pnand %p1515_p5, %p217_p7  ;;  %s229_s11 = sshll.u32 %s1863_s10, 4  ;;  %s230_s11 = int_to_ptr.vmem [resolvable:$true] %s229_s11 }
  0x10   : > { %s1864_s13 = smov [#allocation7]   ;;  %s1724_s15 = scalar_lea.vmem %s230_s11, 12288 }
  0x11   : > { %s2359_s9 = scalar_select %p1955_p8, 1, 0 }
  0x12   : > { %p1568_p9 = pneg %p1955_p8  ;;  %s242_s14 = sshll.u32 %s1864_s13, 4  ;;  %s243_s14 = int_to_ptr.vmem [resolvable:$true] %s242_s14 }
  0x13   : > { %p1725_p13 = scmp.ne.s32.totalorder %s230_s11, %s1724_s15  ;;  %p1732_p5 = scmp.lt.s32.totalorder %s230_s11, %s230_s11 }
  0x14   : > { %p1964_p11 = pnand %p1568_p9, %p2352_p1  ;;  %p1733_p7 = scmp.lt.s32.totalorder %s1724_s15, %s1724_s15 }
  0x16   : > { %p1715_p12 = pneg %p1964_p11  ;;  %p1734_p10 = por %p1733_p7, %p1732_p5 }
  0x18   : > { %p1727_p0 = pnand %p1725_p13, %p1715_p12 }
  0x1a   : > { %p1728_p3 = pneg %p1727_p0 }
  0x1c   : > { %p1735_p9 = pnand %p1734_p10, %p1728_p3 }
  0x1e   : > { %1738 = shalt.err (!%p1735_p9)
}
  0x1f   : > { %s1865_s16 = smov 768   ;;  %s1866_s17 = smov 48  }
  0x20   : > { %s2361_s3 = sld [smem:[#allocation12_spill]]  ;;  %s1750_s20 = scalar_lea.vmem %s243_s14, 12288 }
  0x21   : > { %p1751_p1 = scmp.ne.s32.totalorder %s243_s14, %s1750_s20  ;;  %p1758_p2 = scmp.lt.s32.totalorder %s243_s14, %s243_s14 }
  0x22   : > { %p1759_p6 = scmp.lt.s32.totalorder %s1750_s20, %s1750_s20 }
  0x23   : > { %p1753_p13 = pnand %p1751_p1, %p1715_p12 }
  0x24   : > { %p1760_p5 = por %p1759_p6, %p1758_p2 }
  0x25   : > { %p1754_p0 = pneg %p1753_p13 }
  0x26   : > { %1571 = dma.hbm_to_vmem [thread:$0]  (!%p1964_p11), %s2361_s3, 12288, %s230_s11, [#allocation6], %s1865_s16, %s1865_s16, %s1866_s17  }
  0x27   : > { %p1761_p10 = pnand %p1760_p5, %p1754_p0 }
  0x29   : > { %1764 = shalt.err (!%p1761_p10)
}
  0x2a   : > { %1574 = dma.hbm_to_vmem [thread:$0]  (!%p1964_p11), %s2348_s4, 12288, %s243_s14, [#allocation6], %s1865_s16, %s1865_s16, %s1866_s17  }
  0x2b   : > { %s1987_s23 = sadd.s32 1, %s1861_s27   ;;  %s57_s29 = sadd.s32 1, %s1857_s26 }
  0x2c   : > { %s54_s10 = ssub.s32 %s1861_s27, %s1987_s23  ;;  %p64_p1 = scmp.ne.s32.totalorder %s1857_s26, %s1853_s25 }
  0x2d   : > { %p55_p2 = scmp.eq.s32.totalorder %s54_s10, 0  ;;  %p65_p6 = scmp.eq.s32.totalorder %s1861_s27, 0 }
  0x2e   : > { %p2362_p12 = scmp.eq.s32.totalorder %s1936_s28, 1  ;;  %p1585_p7 = scmp.lt.s32.totalorder %s1861_s27, 2 }
  0x2f   : > { %s2003_s12 = scalar_select %p55_p2, %s1857_s26, %s57_s29  }
  0x30   : > { %p1997_p3 = por %p2362_p12, %p64_p1  ;;  %p66_p9 = por %p65_p6, %p64_p1 }
  0x31   : > { %s271_s13 = sand.u32 1, %s1857_s26   ;;  %s1554_s14 = sshll.u32 %s1861_s27, 9 }
  0x32   : > { %s2363_s11 = scalar_select %p1997_p3, 1, 0 }
  0x33   : > { %s1519_s15 = sshll.u32 %s271_s13, 5  ;;  %s2010_s18 = scalar_lea.hbm %s2345_s1, %s1554_s14 }
  0x34   : > { %s275_s19 = scalar_lea.vmem [#allocation2], %s1519_s15  ;;  %p2014_p11 = pnand %p1585_p7, %p66_p9 }
  0x35   : > { %s282_s20 = sshll.u32 %s275_s19, 4  ;;  %s2018_s22 = scalar_lea.sflag [#allocation3], %s271_s13  ;;  %s2012_s20 = int_to_ptr.vmem [resolvable:$true] %s282_s20 }
  0x36   : > { %s1765_s29 = scalar_lea.hbm %s2010_s18, 512  ;;  %p1767_p0 = pneg %p2014_p11 }
  0x37   : > { %p1766_p13 = scmp.ne.s32.totalorder %s2010_s18, %s1765_s29  ;;  %s1770_s15 = scalar_lea.hbm %s2345_s1, 1024 }
  0x38   : > { %p1771_p1 = scmp.lt.s32.totalorder %s2010_s18, %s2345_s1  ;;  %p1772_p2 = scmp.lt.s32.totalorder %s1770_s15, %s1765_s29 }
  0x39   : > { %p1768_p5 = pnand %p1767_p0, %p1766_p13 }
  0x3a   : > { %p1773_p6 = por %p1772_p2, %p1771_p1 }
  0x3b   : > { %p1769_p10 = pneg %p1768_p5 }
  0x3d   : > { %p1774_p12 = pnand %p1773_p6, %p1769_p10 }
  0x3f   : > { %1777 = shalt.err (!%p1774_p12)
}
  0x40   : > { %s1778_s13 = scalar_lea.vmem %s2012_s20, 512  ;;  %s1867_s19 = smov [#allocation2]  }
  0x41   : > { %p1779_p7 = scmp.ne.s32.totalorder %s2012_s20, %s1778_s13  ;;  %s1783_s3 = sshll.u32 %s1867_s19, 4  ;;  %s1784_s3 = int_to_ptr.vmem [resolvable:$false] %s1783_s3 }
  0x42   : > { %s1785_s10 = scalar_lea.vmem %s1784_s3, 1024  ;;  %p1786_p5 = scmp.lt.s32.totalorder %s2012_s20, %s1784_s3 }
  0x43   : > { %p1781_p9 = pnand %p1779_p7, %p1767_p0  ;;  %p1787_p3 = scmp.lt.s32.totalorder %s1785_s10, %s1778_s13 }
  0x45   : > { %p1782_p13 = pneg %p1781_p9  ;;  %p1788_p4 = por %p1787_p3, %p1786_p5 }
  0x47   : > { %p1789_p8 = pnand %p1788_p4, %p1782_p13 }
  0x49   : > { %1792 = shalt.err (!%p1789_p8)
}
  0x4a   : > { %s1868_s29 = smov 128   ;;  %s1869_s14 = smov 8  }
  0x4b   : > { %1578 = dma.hbm_to_vmem [thread:$0]  (!%p2014_p11), %s2010_s18, 512, %s2012_s20, %s2018_s22, %s1868_s29, %s1868_s29, %s1869_s14  }
  0x4c   : > { %p2365_p0 = scmp.ne.s32.totalorder %s2359_s9, 0 }
  0x4d   : > { %s2042_s15 = sand.u32 (!%p2365_p0), 1, %s1853_s25   ;;  %p2366_p4 = scmp.ne.s32.totalorder (!%p2365_p0), %s2357_s30, 0 }
  0x4e   : > { %303 = sbr.rel (%p2365_p0) target bundleno = 483 (0x1e3), region = 48  ;;  %s1523_s3 = sshll.u32 (!%p2365_p0), %s2042_s15, 5 }
  0x4f   : > { %s306_s16 = scalar_lea.sflag (!%p2365_p0), [#allocation3], %s2042_s15  ;;  %s2048_s17 = scalar_lea.vmem (!%p2365_p0), [#allocation2], %s1523_s3 }
  0x53   : > { %1836 = dma.done.wait (%p2366_p4), %s306_s16, 512  }
  0x54   : > { %1838 = vsyncadd (%p2366_p4), %s306_s16, 4294966784  ;;  %p2367_p8 = scmp.eq.s32.totalorder %s1936_s28, 0 }
  0x56   : > { %1840 = dma.done.wait (%p2367_p8), [#allocation6], 24576   ;;  %p2368_p3 = pmov %p2367_p8 }
  0x57   : > { %v1870_v0 = vmov 0.0   ;;  %v1871_v1 = vmov 0   ;;  %v471_v2 = vld [vmem:[#allocation5 + $0x2d8] sm:$0xff]  ;;  %v473_v3 = vld [vmem:[#allocation5 + $0x2e8] sm:$0xff]  ;;  %v470_v4 = vld [vmem:[#allocation5 + $0x2d0] sm:$0xff]  ;;  %s1527_s30 = sshll.u32 %s1936_s28, 2 }
  0x58   : > { %1842 = vsyncadd (%p2368_p3), [#allocation6], 4294942720  ;;  %668 = vmatprep.mubr.f32.mxu0 %v1870_v0  ;;  %757 = vmatprep.mubr.f32.mxu1 %v1870_v0  ;;  %v472_v5 = vld [vmem:[#allocation5 + $0x2e0] sm:$0xff]  ;;  %v465_v6 = vld [vmem:[#allocation5 + $0x2a8] sm:$0xff]  ;;  %p2065_p11 = scmp.lt.s32.totalorder %s1527_s30, 7  ;;  %s1555_s20 = sshll.u32 %s1936_s28, 9 }
  0x59   : > { %1632 = vset.pattern.permute.xlu1 %v1871_v1  ;;  %1631 = vset.pattern.permute.xlu0 %v1871_v1  ;;  %v467_v7 = vld [vmem:[#allocation5 + $0x2b8] sm:$0xff]  ;;  %v464_v8 = vld [vmem:[#allocation5 + $0x2a0] sm:$0xff]  ;;  %v466_v9 = vld [vmem:[#allocation5 + $0x2b0] sm:$0xff]  ;;  %s2300_s13 = scalar_lea.hbm %s2351_s7, %s1555_s20  ;;  %s1385_s28 = scalar_lea.sflag [#allocation4], %s2042_s15 }
  0x5a   : > { %604 = vmatprep.subr.mxu0 %v471_v2  ;;  %693 = vmatprep.subr.mxu1 %v473_v3  ;;  %v459_v10 = vld [vmem:[#allocation5 + $0x278] sm:$0xff]  ;;  %v461_v11 = vld [vmem:[#allocation5 + $0x288] sm:$0xff]  ;;  %v458_v12 = vld [vmem:[#allocation5 + $0x270] sm:$0xff]  ;;  %s2378_s30 = smov (!%p2065_p11, %s1527_s30), 7  ;;  %p2370_p1 = scmp.ne.s32.totalorder %s2363_s11, 0 }
  0x5b   : > { %605 = vmatpush1.msra.mxu0 %v470_v4  ;;  %694 = vmatpush1.msra.mxu1 %v472_v5  ;;  %v460_v13 = vld [vmem:[#allocation5 + $0x280] sm:$0xff]  ;;  %v453_v14 = vld [vmem:[#allocation5 + $0x248] sm:$0xff]  ;;  %v455_v15 = vld [vmem:[#allocation5 + $0x258] sm:$0xff]  ;;  %s1528_s18 = sshll.u32 %s2378_s30, 3 }
  0x5c   : > { %606 = vmatprep.subr.mxu0 %v465_v6  ;;  %695 = vmatprep.subr.mxu1 %v467_v7  ;;  %v452_v16 = vld [vmem:[#allocation5 + $0x240] sm:$0xff]  ;;  %v454_v17 = vld [vmem:[#allocation5 + $0x250] sm:$0xff]  ;;  %v447_v18 = vld [vmem:[#allocation5 + $0x218] sm:$0xff]  ;;  %s2081_s22 = scalar_lea.vmem %s2344_s0, %s1528_s18  ;;  %s369_s10 = scalar_lea.vmem %s2346_s2, %s1528_s18 }
  0x5d   : > { %607 = vmatpush1.msra.mxu0 %v464_v8  ;;  %696 = vmatpush1.msra.mxu1 %v466_v9  ;;  %v449_v19 = vld [vmem:[#allocation5 + $0x228] sm:$0xff]  ;;  %v446_v20 = vld [vmem:[#allocation5 + $0x210] sm:$0xff]  ;;  %v448_v21 = vld [vmem:[#allocation5 + $0x220] sm:$0xff]  ;;  %s2286_s18 = scalar_lea.vmem [#allocation8], %s1523_s3 }
  0x5e   : > { %608 = vmatprep.subr.mxu0 %v459_v10  ;;  %697 = vmatprep.subr.mxu1 %v461_v11  ;;  %v441_v22 = vld [vmem:[#allocation5 + $0x1e8] sm:$0xff]  ;;  %v443_v23 = vld [vmem:[#allocation5 + $0x1f8] sm:$0xff]  ;;  %v440_v24 = vld [vmem:[#allocation5 + $0x1e0] sm:$0xff]  ;;  %s1398_s3 = sshll.u32 %s2286_s18, 4  ;;  %s2294_s3 = int_to_ptr.vmem [resolvable:$true] %s1398_s3 }
  0x5f   : > { %609 = vmatpush1.msra.mxu0 %v458_v12  ;;  %698 = vmatpush1.msra.mxu1 %v460_v13  ;;  %v442_v25 = vld [vmem:[#allocation5 + $0x1f0] sm:$0xff]  ;;  %v435_v26 = vld [vmem:[#allocation5 + $0x1b8] sm:$0xff]  ;;  %v437_v27 = vld [vmem:[#allocation5 + $0x1c8] sm:$0xff]  ;;  %s1793_s19 = scalar_lea.vmem %s2294_s3, 512 }
  0x60   : > { %610 = vmatprep.subr.mxu0 %v453_v14  ;;  %699 = vmatprep.subr.mxu1 %v455_v15  ;;  %v434_v28 = vld [vmem:[#allocation5 + $0x1b0] sm:$0xff]  ;;  %v436_v29 = vld [vmem:[#allocation5 + $0x1c0] sm:$0xff]  ;;  %v429_v30 = vld [vmem:[#allocation5 + $0x188] sm:$0xff]  ;;  %p1794_p10 = scmp.ne.s32.totalorder %s2294_s3, %s1793_s19 }
  0x61   : > { %611 = vmatpush1.msra.mxu0 %v452_v16  ;;  %700 = vmatpush1.msra.mxu1 %v454_v17  ;;  %v431_v31 = vld [vmem:[#allocation5 + $0x198] sm:$0xff]  ;;  %v428_v32 = vld [vmem:[#allocation5 + $0x180] sm:$0xff]  ;;  %v430_v33 = vld [vmem:[#allocation5 + $0x190] sm:$0xff] }
  0x62   : > { %612 = vmatprep.subr.mxu0 %v447_v18  ;;  %701 = vmatprep.subr.mxu1 %v449_v19  ;;  %v423_v34 = vld [vmem:[#allocation5 + $0x158] sm:$0xff]  ;;  %v425_v35 = vld [vmem:[#allocation5 + $0x168] sm:$0xff]  ;;  %v422_v36 = vld [vmem:[#allocation5 + $0x150] sm:$0xff]  ;;  %p1795_p2 = pnand %p1794_p10, %p2370_p1 }
  0x63   : > { %613 = vmatpush1.msra.mxu0 %v446_v20  ;;  %702 = vmatpush1.msra.mxu1 %v448_v21  ;;  %v424_v37 = vld [vmem:[#allocation5 + $0x160] sm:$0xff]  ;;  %v417_v38 = vld [vmem:[#allocation5 + $0x128] sm:$0xff]  ;;  %v419_v39 = vld [vmem:[#allocation5 + $0x138] sm:$0xff] }
  0x64   : > { %614 = vmatprep.subr.mxu0 %v441_v22  ;;  %703 = vmatprep.subr.mxu1 %v443_v23  ;;  %v416_v40 = vld [vmem:[#allocation5 + $0x120] sm:$0xff]  ;;  %v418_v41 = vld [vmem:[#allocation5 + $0x130] sm:$0xff]  ;;  %v411_v42 = vld [vmem:[#allocation5 + $0xf8] sm:$0xff]  ;;  %p1796_p6 = pneg %p1795_p2 }
  0x65   : > { %615 = vmatpush1.msra.mxu0 %v440_v24  ;;  %704 = vmatpush1.msra.mxu1 %v442_v25  ;;  %v413_v43 = vld [vmem:[#allocation5 + $0x108] sm:$0xff]  ;;  %v410_v44 = vld [vmem:[#allocation5 + $0xf0] sm:$0xff]  ;;  %v412_v45 = vld [vmem:[#allocation5 + $0x100] sm:$0xff] }
  0x66   : > { %616 = vmatprep.subr.mxu0 %v435_v26  ;;  %705 = vmatprep.subr.mxu1 %v437_v27  ;;  %v405_v46 = vld [vmem:[#allocation5 + $0xc8] sm:$0xff]  ;;  %v407_v47 = vld [vmem:[#allocation5 + $0xd8] sm:$0xff]  ;;  %v404_v48 = vld [vmem:[#allocation5 + $0xc0] sm:$0xff] }
  0x67   : > { %617 = vmatpush1.msra.mxu0 %v434_v28  ;;  %706 = vmatpush1.msra.mxu1 %v436_v29  ;;  %v406_v49 = vld [vmem:[#allocation5 + $0xd0] sm:$0xff]  ;;  %v399_v50 = vld [vmem:[#allocation5 + $0x98] sm:$0xff]  ;;  %v401_v51 = vld [vmem:[#allocation5 + $0xa8] sm:$0xff] }
  0x68   : > { %618 = vmatprep.subr.mxu0 %v429_v30  ;;  %707 = vmatprep.subr.mxu1 %v431_v31  ;;  %v398_v52 = vld [vmem:[#allocation5 + $0x90] sm:$0xff]  ;;  %v400_v53 = vld [vmem:[#allocation5 + $0xa0] sm:$0xff]  ;;  %v393_v54 = vld [vmem:[#allocation5 + $0x68] sm:$0xff] }
  0x69   : > { %619 = vmatpush1.msra.mxu0 %v428_v32  ;;  %708 = vmatpush1.msra.mxu1 %v430_v33  ;;  %v395_v55 = vld [vmem:[#allocation5 + $0x78] sm:$0xff]  ;;  %v392_v56 = vld [vmem:[#allocation5 + $0x60] sm:$0xff]  ;;  %v394_v57 = vld [vmem:[#allocation5 + $0x70] sm:$0xff] }
  0x6a   : > { %620 = vmatprep.subr.mxu0 %v423_v34  ;;  %709 = vmatprep.subr.mxu1 %v425_v35  ;;  %v387_v58 = vld [vmem:[#allocation5 + $0x38] sm:$0xff]  ;;  %v389_v59 = vld [vmem:[#allocation5 + $0x48] sm:$0xff]  ;;  %v386_v60 = vld [vmem:[#allocation5 + $0x30] sm:$0xff] }
  0x6b   : > { %621 = vmatpush1.msra.mxu0 %v422_v36  ;;  %710 = vmatpush1.msra.mxu1 %v424_v37  ;;  %v388_v61 = vld [vmem:[#allocation5 + $0x40] sm:$0xff]  ;;  %v381_v62 = vld [vmem:[#allocation5 + $0x8] sm:$0xff]  ;;  %v383_v63 = vld [vmem:[#allocation5 + $0x18] sm:$0xff] }
  0x6c   : > { %622 = vmatprep.subr.mxu0 %v417_v38  ;;  %711 = vmatprep.subr.mxu1 %v419_v39  ;;  %v380_v2 = vld [vmem:[#allocation5] sm:$0xff]  ;;  %v382_v3 = vld [vmem:[#allocation5 + $0x10] sm:$0xff]  ;;  %v475_v5 = vld [vmem:[#allocation5 + $0x2f8] sm:$0xff] }
  0x6d   : > { %623 = vmatpush1.msra.mxu0 %v416_v40  ;;  %712 = vmatpush1.msra.mxu1 %v418_v41  ;;  %v2084_v4 = vld [vmem:[%s2081_s22] sm:$0xff]  ;;  %v567_v6 = vld [vmem:[#allocation7 + $0x2d8] sm:$0xff]  ;;  %v474_v7 = vld [vmem:[#allocation5 + $0x2f0] sm:$0xff] }
  0x6e   : > { %624 = vmatprep.subr.mxu0 %v411_v42  ;;  %713 = vmatprep.subr.mxu1 %v413_v43  ;;  %v566_v8 = vld [vmem:[#allocation7 + $0x2d0] sm:$0xff]  ;;  %v469_v9 = vld [vmem:[#allocation5 + $0x2c8] sm:$0xff]  ;;  %v468_v11 = vld [vmem:[#allocation5 + $0x2c0] sm:$0xff] }
  0x6f   : > { %625 = vmatpush1.msra.mxu0 %v410_v44  ;;  %714 = vmatpush1.msra.mxu1 %v412_v45  ;;  %v561_v10 = vld [vmem:[#allocation7 + $0x2a8] sm:$0xff]  ;;  %v560_v12 = vld [vmem:[#allocation7 + $0x2a0] sm:$0xff]  ;;  %v463_v13 = vld [vmem:[#allocation5 + $0x298] sm:$0xff] }
  0x70   : > { %626 = vmatprep.subr.mxu0 %v405_v46  ;;  %715 = vmatprep.subr.mxu1 %v407_v47  ;;  %v555_v14 = vld [vmem:[#allocation7 + $0x278] sm:$0xff]  ;;  %v462_v15 = vld [vmem:[#allocation5 + $0x290] sm:$0xff]  ;;  %v457_v17 = vld [vmem:[#allocation5 + $0x268] sm:$0xff] }
  0x71   : > { %627 = vmatpush1.msra.mxu0 %v404_v48  ;;  %716 = vmatpush1.msra.mxu1 %v406_v49  ;;  %v554_v16 = vld [vmem:[#allocation7 + $0x270] sm:$0xff]  ;;  %v549_v18 = vld [vmem:[#allocation7 + $0x248] sm:$0xff]  ;;  %v456_v19 = vld [vmem:[#allocation5 + $0x260] sm:$0xff] }
  0x72   : > { %628 = vmatprep.subr.mxu0 %v399_v50  ;;  %717 = vmatprep.subr.mxu1 %v401_v51  ;;  %v548_v20 = vld [vmem:[#allocation7 + $0x240] sm:$0xff]  ;;  %v451_v21 = vld [vmem:[#allocation5 + $0x238] sm:$0xff]  ;;  %v450_v23 = vld [vmem:[#allocation5 + $0x230] sm:$0xff] }
  0x73   : > { %629 = vmatpush1.msra.mxu0 %v398_v52  ;;  %718 = vmatpush1.msra.mxu1 %v400_v53  ;;  %v543_v22 = vld [vmem:[#allocation7 + $0x218] sm:$0xff]  ;;  %v542_v24 = vld [vmem:[#allocation7 + $0x210] sm:$0xff]  ;;  %v445_v25 = vld [vmem:[#allocation5 + $0x208] sm:$0xff] }
  0x74   : > { %630 = vmatprep.subr.mxu0 %v393_v54  ;;  %719 = vmatprep.subr.mxu1 %v395_v55  ;;  %v537_v26 = vld [vmem:[#allocation7 + $0x1e8] sm:$0xff]  ;;  %v444_v27 = vld [vmem:[#allocation5 + $0x200] sm:$0xff]  ;;  %v439_v29 = vld [vmem:[#allocation5 + $0x1d8] sm:$0xff] }
  0x75   : > { %631 = vmatpush1.msra.mxu0 %v392_v56  ;;  %720 = vmatpush1.msra.mxu1 %v394_v57  ;;  %v536_v28 = vld [vmem:[#allocation7 + $0x1e0] sm:$0xff]  ;;  %v531_v30 = vld [vmem:[#allocation7 + $0x1b8] sm:$0xff]  ;;  %v438_v31 = vld [vmem:[#allocation5 + $0x1d0] sm:$0xff] }
  0x76   : > { %632 = vmatprep.subr.mxu0 %v387_v58  ;;  %721 = vmatprep.subr.mxu1 %v389_v59  ;;  %v530_v32 = vld [vmem:[#allocation7 + $0x1b0] sm:$0xff]  ;;  %v433_v33 = vld [vmem:[#allocation5 + $0x1a8] sm:$0xff]  ;;  %v432_v35 = vld [vmem:[#allocation5 + $0x1a0] sm:$0xff] }
  0x77   : > { %633 = vmatpush1.msra.mxu0 %v386_v60  ;;  %722 = vmatpush1.msra.mxu1 %v388_v61  ;;  %v525_v34 = vld [vmem:[#allocation7 + $0x188] sm:$0xff]  ;;  %v524_v36 = vld [vmem:[#allocation7 + $0x180] sm:$0xff]  ;;  %v427_v37 = vld [vmem:[#allocation5 + $0x178] sm:$0xff] }
  0x78   : > { %634 = vmatprep.subr.mxu0 %v381_v62  ;;  %723 = vmatprep.subr.mxu1 %v383_v63  ;;  %v519_v38 = vld [vmem:[#allocation7 + $0x158] sm:$0xff]  ;;  %v426_v39 = vld [vmem:[#allocation5 + $0x170] sm:$0xff]  ;;  %v421_v41 = vld [vmem:[#allocation5 + $0x148] sm:$0xff] }
  0x79   : > { %635 = vmatpush1.msra.mxu0 %v380_v2  ;;  %724 = vmatpush1.msra.mxu1 %v382_v3  ;;  %v518_v40 = vld [vmem:[#allocation7 + $0x150] sm:$0xff]  ;;  %v513_v42 = vld [vmem:[#allocation7 + $0x128] sm:$0xff]  ;;  %v420_v44 = vld [vmem:[#allocation5 + $0x140] sm:$0xff] }
  0x7a   : > { %669 = vmatmul.mubr.f32.vlgmr.msra.gmra.mxu0 %v2084_v4  ;;  %782 = vmatprep.subr.mxu0 %v475_v5  ;;  %v2089_v43 = vld [vmem:[%s2081_s22 + $0x8] sm:$0xff]  ;;  %v512_v45 = vld [vmem:[#allocation7 + $0x120] sm:$0xff]  ;;  %v415_v46 = vld [vmem:[#allocation5 + $0x118] sm:$0xff] }
  0x7b   : > { %871 = vmatprep.subr.mxu1 %v567_v6  ;;  %758 = vmatmul.mubr.f32.vlgmr.msra.gmra.mxu1 %v2084_v4  ;;  %v507_v47 = vld [vmem:[#allocation7 + $0xf8] sm:$0xff]  ;;  %v414_v48 = vld [vmem:[#allocation5 + $0x110] sm:$0xff]  ;;  %v409_v50 = vld [vmem:[#allocation5 + $0xe8] sm:$0xff] }
  0x7c   : > { %783 = vmatpush1.msra.mxu0 %v474_v7  ;;  %872 = vmatpush1.msra.mxu1 %v566_v8  ;;  %v506_v49 = vld [vmem:[#allocation7 + $0xf0] sm:$0xff]  ;;  %v501_v51 = vld [vmem:[#allocation7 + $0xc8] sm:$0xff]  ;;  %v408_v53 = vld [vmem:[#allocation5 + $0xe0] sm:$0xff] }
  0x7d   : > { %784 = vmatprep.subr.mxu0 %v469_v9  ;;  %873 = vmatprep.subr.mxu1 %v561_v10  ;;  %v2096_v52 = vld [vmem:[%s2081_s22 + $0x10] sm:$0xff]  ;;  %v500_v54 = vld [vmem:[#allocation7 + $0xc0] sm:$0xff]  ;;  %v403_v55 = vld [vmem:[#allocation5 + $0xb8] sm:$0xff] }
  0x7e   : > { %785 = vmatpush1.msra.mxu0 %v468_v11  ;;  %874 = vmatpush1.msra.mxu1 %v560_v12  ;;  %v495_v56 = vld [vmem:[#allocation7 + $0x98] sm:$0xff]  ;;  %v402_v57 = vld [vmem:[#allocation5 + $0xb0] sm:$0xff]  ;;  %v397_v59 = vld [vmem:[#allocation5 + $0x88] sm:$0xff] }
  0x7f   : > { %786 = vmatprep.subr.mxu0 %v463_v13  ;;  %875 = vmatprep.subr.mxu1 %v555_v14  ;;  %v494_v58 = vld [vmem:[#allocation7 + $0x90] sm:$0xff]  ;;  %v489_v60 = vld [vmem:[#allocation7 + $0x68] sm:$0xff]  ;;  %v2103_v61 = vld [vmem:[%s2081_s22 + $0x18] sm:$0xff] }
  0x80   : > { %787 = vmatpush1.msra.mxu0 %v462_v15  ;;  %876 = vmatpush1.msra.mxu1 %v554_v16  ;;  %v396_v62 = vld [vmem:[#allocation5 + $0x80] sm:$0xff]  ;;  %v391_v2 = vld [vmem:[#allocation5 + $0x58] sm:$0xff]  ;;  %v390_v5 = vld [vmem:[#allocation5 + $0x50] sm:$0xff] }
  0x81   : > { %788 = vmatprep.subr.mxu0 %v457_v17  ;;  %877 = vmatprep.subr.mxu1 %v549_v18  ;;  %v488_v63 = vld [vmem:[#allocation7 + $0x60] sm:$0xff]  ;;  %v483_v3 = vld [vmem:[#allocation7 + $0x38] sm:$0xff]  ;;  %v482_v6 = vld [vmem:[#allocation7 + $0x30] sm:$0xff] }
  0x82   : > { %789 = vmatpush1.msra.mxu0 %v456_v19  ;;  %878 = vmatpush1.msra.mxu1 %v548_v20  ;;  %v385_v7 = vld [vmem:[#allocation5 + $0x28] sm:$0xff]  ;;  %v384_v9 = vld [vmem:[#allocation5 + $0x20] sm:$0xff]  ;;  %v571_v13 = vld [vmem:[#allocation7 + $0x2f8] sm:$0xff] }
  0x83   : > { %790 = vmatprep.subr.mxu0 %v451_v21  ;;  %879 = vmatprep.subr.mxu1 %v543_v22  ;;  %v477_v8 = vld [vmem:[#allocation7 + $0x8] sm:$0xff]  ;;  %v476_v10 = vld [vmem:[#allocation7] sm:$0xff]  ;;  %v570_v15 = vld [vmem:[#allocation7 + $0x2f0] sm:$0xff] }
  0x84   : > { %791 = vmatpush1.msra.mxu0 %v450_v23  ;;  %880 = vmatpush1.msra.mxu1 %v542_v24  ;;  %v2110_v11 = vld [vmem:[%s2048_s17] sm:$0xff]  ;;  %v569_v12 = vld [vmem:[#allocation7 + $0x2e8] sm:$0xff]  ;;  %v563_v16 = vld [vmem:[#allocation7 + $0x2b8] sm:$0xff] }
  0x85   : > { %792 = vmatprep.subr.mxu0 %v445_v25  ;;  %881 = vmatprep.subr.mxu1 %v537_v26  ;;  %v568_v14 = vld [vmem:[#allocation7 + $0x2e0] sm:$0xff]  ;;  %v565_v17 = vld [vmem:[#allocation7 + $0x2c8] sm:$0xff]  ;;  %v562_v18 = vld [vmem:[#allocation7 + $0x2b0] sm:$0xff] }
  0x86   : > { %793 = vmatpush1.msra.mxu0 %v444_v27  ;;  %882 = vmatpush1.msra.mxu1 %v536_v28  ;;  %v564_v19 = vld [vmem:[#allocation7 + $0x2c0] sm:$0xff]  ;;  %v557_v20 = vld [vmem:[#allocation7 + $0x288] sm:$0xff]  ;;  %v559_v22 = vld [vmem:[#allocation7 + $0x298] sm:$0xff] }
  0x87   : > { %794 = vmatprep.subr.mxu0 %v439_v29  ;;  %883 = vmatprep.subr.mxu1 %v531_v30  ;;  %v2117_v21 = vld [vmem:[%s2048_s17 + $0x8] sm:$0xff]  ;;  %v558_v23 = vld [vmem:[#allocation7 + $0x290] sm:$0xff]  ;;  %v551_v24 = vld [vmem:[#allocation7 + $0x258] sm:$0xff] }
  0x88   : > { %795 = vmatpush1.msra.mxu0 %v438_v31  ;;  %884 = vmatpush1.msra.mxu1 %v530_v32  ;;  %v553_v25 = vld [vmem:[#allocation7 + $0x268] sm:$0xff]  ;;  %v550_v26 = vld [vmem:[#allocation7 + $0x250] sm:$0xff]  ;;  %v552_v27 = vld [vmem:[#allocation7 + $0x260] sm:$0xff] }
  0x89   : > { %796 = vmatprep.subr.mxu0 %v433_v33  ;;  %885 = vmatprep.subr.mxu1 %v525_v34  ;;  %v545_v28 = vld [vmem:[#allocation7 + $0x228] sm:$0xff]  ;;  %v2122_v29 = vld [vmem:[%s2048_s17 + $0x10] sm:$0xff]  ;;  %v547_v30 = vld [vmem:[#allocation7 + $0x238] sm:$0xff] }
  0x8a   : > { %797 = vmatpush1.msra.mxu0 %v432_v35  ;;  %886 = vmatpush1.msra.mxu1 %v524_v36  ;;  %v544_v31 = vld [vmem:[#allocation7 + $0x220] sm:$0xff]  ;;  %v546_v32 = vld [vmem:[#allocation7 + $0x230] sm:$0xff]  ;;  %v539_v33 = vld [vmem:[#allocation7 + $0x1f8] sm:$0xff] }
  0x8b   : > { %798 = vmatprep.subr.mxu0 %v427_v37  ;;  %887 = vmatprep.subr.mxu1 %v519_v38  ;;  %v541_v34 = vld [vmem:[#allocation7 + $0x208] sm:$0xff]  ;;  %v538_v35 = vld [vmem:[#allocation7 + $0x1f0] sm:$0xff]  ;;  %v540_v36 = vld [vmem:[#allocation7 + $0x200] sm:$0xff] }
  0x8c   : > { %799 = vmatpush1.msra.mxu0 %v426_v39  ;;  %888 = vmatpush1.msra.mxu1 %v518_v40  ;;  %v533_v37 = vld [vmem:[#allocation7 + $0x1c8] sm:$0xff]  ;;  %v2127_v38 = vld [vmem:[%s2048_s17 + $0x18] sm:$0xff]  ;;  %v532_v40 = vld [vmem:[#allocation7 + $0x1c0] sm:$0xff] }
  0x8d   : > { %674 = vmatprep.mubr.f32.mxu0 %v1870_v0  ;;  %800 = vmatprep.subr.mxu0 %v421_v41  ;;  %v535_v39 = vld [vmem:[#allocation7 + $0x1d8] sm:$0xff]  ;;  %v534_v41 = vld [vmem:[#allocation7 + $0x1d0] sm:$0xff] }
  0x8e   : > { %889 = vmatprep.subr.mxu1 %v513_v42  ;;  %675 = vmatmul.mubr.f32.gmra.mxu0 %v2089_v43  ;;  %v527_v42 = vld [vmem:[#allocation7 + $0x198] sm:$0xff] }
  0x8f   : > { %763 = vmatprep.mubr.f32.mxu1 %v1870_v0  ;;  %801 = vmatpush1.msra.mxu0 %v420_v44  ;;  %v529_v44 = vld [vmem:[#allocation7 + $0x1a8] sm:$0xff] }
  0x90   : > { %890 = vmatpush1.msra.mxu1 %v512_v45  ;;  %802 = vmatprep.subr.mxu0 %v415_v46  ;;  %v526_v45 = vld [vmem:[#allocation7 + $0x190] sm:$0xff]  ;;  %v528_v46 = vld [vmem:[#allocation7 + $0x1a0] sm:$0xff] }
  0x91   : > { %764 = vmatmul.mubr.f32.gmra.mxu1 %v2089_v43  ;;  %891 = vmatprep.subr.mxu1 %v507_v47  ;;  %v521_v47 = vld [vmem:[#allocation7 + $0x168] sm:$0xff] }
  0x92   : > { %803 = vmatpush1.msra.mxu0 %v414_v48  ;;  %892 = vmatpush1.msra.mxu1 %v506_v49  ;;  %v523_v48 = vld [vmem:[#allocation7 + $0x178] sm:$0xff]  ;;  %v520_v49 = vld [vmem:[#allocation7 + $0x160] sm:$0xff] }
  0x93   : > { %680 = vmatprep.mubr.f32.mxu0 %v1870_v0  ;;  %804 = vmatprep.subr.mxu0 %v409_v50  ;;  %v522_v50 = vld [vmem:[#allocation7 + $0x170] sm:$0xff] }
  0x94   : > { %893 = vmatprep.subr.mxu1 %v501_v51  ;;  %681 = vmatmul.mubr.f32.gmra.mxu0 %v2096_v52  ;;  %v515_v51 = vld [vmem:[#allocation7 + $0x138] sm:$0xff] }
  0x95   : > { %769 = vmatprep.mubr.f32.mxu1 %v1870_v0  ;;  %805 = vmatpush1.msra.mxu0 %v408_v53  ;;  %v517_v53 = vld [vmem:[#allocation7 + $0x148] sm:$0xff] }
  0x96   : > { %894 = vmatpush1.msra.mxu1 %v500_v54  ;;  %806 = vmatprep.subr.mxu0 %v403_v55  ;;  %v514_v54 = vld [vmem:[#allocation7 + $0x130] sm:$0xff]  ;;  %v516_v55 = vld [vmem:[#allocation7 + $0x140] sm:$0xff] }
  0x97   : > { %770 = vmatmul.mubr.f32.gmra.mxu1 %v2096_v52  ;;  %895 = vmatprep.subr.mxu1 %v495_v56  ;;  %v509_v56 = vld [vmem:[#allocation7 + $0x108] sm:$0xff] }
  0x98   : > { %807 = vmatpush1.msra.mxu0 %v402_v57  ;;  %896 = vmatpush1.msra.mxu1 %v494_v58  ;;  %v511_v57 = vld [vmem:[#allocation7 + $0x118] sm:$0xff]  ;;  %v508_v58 = vld [vmem:[#allocation7 + $0x100] sm:$0xff] }
  0x99   : > { %686 = vmatprep.mubr.f32.mxu0 %v1870_v0  ;;  %808 = vmatprep.subr.mxu0 %v397_v59  ;;  %v510_v59 = vld [vmem:[#allocation7 + $0x110] sm:$0xff] }
  0x9a   : > { %897 = vmatprep.subr.mxu1 %v489_v60  ;;  %687 = vmatmul.mubr.f32.gmra.mxu0 %v2103_v61  ;;  %v503_v60 = vld [vmem:[#allocation7 + $0xd8] sm:$0xff] }
  0x9b   : > { %775 = vmatprep.mubr.f32.mxu1 %v1870_v0  ;;  %809 = vmatpush1.msra.mxu0 %v396_v62  ;;  %v505_v62 = vld [vmem:[#allocation7 + $0xe8] sm:$0xff] }
  0x9c   : > { %898 = vmatpush1.msra.mxu1 %v488_v63  ;;  %810 = vmatprep.subr.mxu0 %v391_v2  ;;  %v502_v63 = vld [vmem:[#allocation7 + $0xd0] sm:$0xff]  ;;  %v504_v2 = vld [vmem:[#allocation7 + $0xe0] sm:$0xff] }
  0x9d   : > { %776 = vmatmul.mubr.f32.gmra.mxu1 %v2103_v61  ;;  %899 = vmatprep.subr.mxu1 %v483_v3  ;;  %v499_v3 = vld [vmem:[#allocation7 + $0xb8] sm:$0xff] }
  0x9e   : > { %811 = vmatpush1.msra.mxu0 %v390_v5  ;;  %900 = vmatpush1.msra.mxu1 %v482_v6  ;;  %v496_v5 = vld [vmem:[#allocation7 + $0xa0] sm:$0xff]  ;;  %v498_v6 = vld [vmem:[#allocation7 + $0xb0] sm:$0xff] }
  0x9f   : > { %812 = vmatprep.subr.mxu0 %v385_v7  ;;  %901 = vmatprep.subr.mxu1 %v477_v8  ;;  %v491_v7 = vld [vmem:[#allocation7 + $0x78] sm:$0xff]  ;;  %v493_v8 = vld [vmem:[#allocation7 + $0x88] sm:$0xff] }
  0xa0   : > { %813 = vmatpush1.msra.mxu0 %v384_v9  ;;  %846 = vmatprep.mubr.f32.mxu0 %v1870_v0  ;;  %v492_v9 = vld [vmem:[#allocation7 + $0x80] sm:$0xff] }
  0xa1   : > { %902 = vmatpush1.msra.mxu1 %v476_v10  ;;  %935 = vmatprep.mubr.f32.mxu1 %v1870_v0  ;;  %v485_v10 = vld [vmem:[#allocation7 + $0x48] sm:$0xff] }
  0xa2   : > { %847 = vmatmul.mubr.f32.vlgmr.msra.gmra.mxu0 %v2084_v4  ;;  %936 = vmatmul.mubr.f32.vlgmr.msra.gmra.mxu1 %v2110_v11  ;;  %v556_v4 = vld [vmem:[#allocation7 + $0x280] sm:$0xff] }
  0xa3   : > { %960 = vmatprep.subr.mxu0 %v569_v12  ;;  %1049 = vmatprep.subr.mxu1 %v571_v13  ;;  %v487_v12 = vld [vmem:[#allocation7 + $0x58] sm:$0xff]  ;;  %v484_v13 = vld [vmem:[#allocation7 + $0x40] sm:$0xff] }
  0xa4   : > { %961 = vmatpush1.msra.mxu0 %v568_v14  ;;  %1050 = vmatpush1.msra.mxu1 %v570_v15  ;;  %v486_v14 = vld [vmem:[#allocation7 + $0x50] sm:$0xff] }
  0xa5   : > { %962 = vmatprep.subr.mxu0 %v563_v16  ;;  %1051 = vmatprep.subr.mxu1 %v565_v17  ;;  %v1322_v15 = vld [vmem:[%s369_s10 + $0x10] sm:$0xff]  ;;  %v1320_v16 = vld [vmem:[%s369_s10] sm:$0xff]  ;;  %v479_v17 = vld [vmem:[#allocation7 + $0x18] sm:$0xff] }
  0xa6   : > { %941 = vmatprep.mubr.f32.mxu1 %v1870_v0  ;;  %963 = vmatpush1.msra.mxu0 %v562_v18  ;;  %v481_v18 = vld [vmem:[#allocation7 + $0x28] sm:$0xff]  ;;  %vm1330_vm0 = vcmp.eq.s32.totalorder %v1322_v15, 1  ;;  %vm1328_vm1 = vcmp.eq.s32.totalorder %v1320_v16, 1  ;;  %vm1324_vm5 = vcmp.eq.s32.totalorder %v1320_v16, 0  ;;  %vm1326_vm7 = vcmp.eq.s32.totalorder %v1322_v15, 0 }
  0xa7   : > { %1052 = vmatpush1.msra.mxu1 %v564_v19  ;;  %964 = vmatprep.subr.mxu0 %v557_v20  ;;  %v478_v19 = vld [vmem:[#allocation7 + $0x10] sm:$0xff]  ;;  %v480_v20 = vld [vmem:[#allocation7 + $0x20] sm:$0xff] }
  0xa8   : > { %942 = vmatmul.mubr.f32.gmra.mxu1 %v2117_v21  ;;  %1053 = vmatprep.subr.mxu1 %v559_v22  ;;  %v1321_v22 = vld [vmem:[%s369_s10 + $0x8] sm:$0xff] }
  0xa9   : > { %965 = vmatpush1.msra.mxu0 %v556_v4  ;;  %1054 = vmatpush1.msra.mxu1 %v558_v23  ;;  %v1334_v4 = vsel %vm1330_vm0, 1, %v1871_v1  ;;  %v1332_v23 = vsel %vm1328_vm1, 1, %v1871_v1  ;;  %vm1329_vm3 = vcmp.eq.s32.totalorder %v1321_v22, 1  ;;  %vm1325_vm4 = vcmp.eq.s32.totalorder %v1321_v22, 0 }
  0xaa   : > { %966 = vmatprep.subr.mxu0 %v551_v24  ;;  %1055 = vmatprep.subr.mxu1 %v553_v25  ;;  %v1333_v25 = vsel %vm1329_vm3, 1, %v1871_v1 }
  0xab   : > { %947 = vmatprep.mubr.f32.mxu1 %v1870_v0  ;;  %967 = vmatpush1.msra.mxu0 %v550_v26  ;;  %v1357_v26 = vsel %vm1325_vm4, 1, %v1871_v1 }
  0xac   : > { %1056 = vmatpush1.msra.mxu1 %v552_v27  ;;  %968 = vmatprep.subr.mxu0 %v545_v28  ;;  %v1356_v27 = vsel %vm1324_vm5, 1, %v1871_v1 }
  0xad   : > { %948 = vmatmul.mubr.f32.gmra.mxu1 %v2122_v29  ;;  %1057 = vmatprep.subr.mxu1 %v547_v30  ;;  %v1358_v30 = vsel %vm1326_vm7, 1, %v1871_v1 }
  0xae   : > { %969 = vmatpush1.msra.mxu0 %v544_v31  ;;  %1058 = vmatpush1.msra.mxu1 %v546_v32 }
  0xaf   : > { %970 = vmatprep.subr.mxu0 %v539_v33  ;;  %1059 = vmatprep.subr.mxu1 %v541_v34 }
  0xb0   : > { %953 = vmatprep.mubr.f32.mxu1 %v1870_v0  ;;  %971 = vmatpush1.msra.mxu0 %v538_v35 }
  0xb1   : > { %1060 = vmatpush1.msra.mxu1 %v540_v36  ;;  %972 = vmatprep.subr.mxu0 %v533_v37 }
  0xb2   : > { %954 = vmatmul.mubr.f32.gmra.mxu1 %v2127_v38  ;;  %1061 = vmatprep.subr.mxu1 %v535_v39 }
  0xb3   : > { %973 = vmatpush1.msra.mxu0 %v532_v40  ;;  %1062 = vmatpush1.msra.mxu1 %v534_v41 }
  0xb4   : > { %974 = vmatprep.subr.mxu0 %v527_v42  ;;  %1063 = vmatprep.subr.mxu1 %v529_v44 }
  0xb5   : > { %975 = vmatpush1.msra.mxu0 %v526_v45  ;;  %1064 = vmatpush1.msra.mxu1 %v528_v46  ;;  %v574_v45 = vlaneseq }
  0xb6   : > { %976 = vmatprep.subr.mxu0 %v521_v47  ;;  %1065 = vmatprep.subr.mxu1 %v523_v48 }
  0xb7   : > { %852 = vmatprep.mubr.f32.mxu0 %v1870_v0  ;;  %977 = vmatpush1.msra.mxu0 %v520_v49  ;;  %v2184_v48 = vshrl.u32 %v574_v45, 7 }
  0xb8   : > { %1066 = vmatpush1.msra.mxu1 %v522_v50  ;;  %853 = vmatmul.mubr.f32.gmra.mxu0 %v2089_v43  ;;  %v497_v43 = vld [vmem:[#allocation7 + $0xa8] sm:$0xff] }
  0xb9   : > { %978 = vmatprep.subr.mxu0 %v515_v51  ;;  %1067 = vmatprep.subr.mxu1 %v517_v53  ;;  %v576_v51 = vsub.s32 0, %v2184_v48  ;;  %v2194_v53 = vld [vmem:[%s2349_s5] sm:$0x3f] }
  0xba   : > { %979 = vmatpush1.msra.mxu0 %v514_v54  ;;  %1068 = vmatpush1.msra.mxu1 %v516_v55 }
  0xbb   : > { %980 = vmatprep.subr.mxu0 %v509_v56  ;;  %1069 = vmatprep.subr.mxu1 %v511_v57  ;;  %v577_v56 = vrot.slane %v2194_v53, %v576_v51 }
  0xbc   : > { %858 = vmatprep.mubr.f32.mxu0 %v1870_v0  ;;  %981 = vmatpush1.msra.mxu0 %v508_v58 }
  0xbd   : > { %1070 = vmatpush1.msra.mxu1 %v510_v59  ;;  %859 = vmatmul.mubr.f32.gmra.mxu0 %v2096_v52  ;;  %v490_v52 = vld [vmem:[#allocation7 + $0x70] sm:$0xff] }
  0xbe   : > { %982 = vmatprep.subr.mxu0 %v503_v60  ;;  %1071 = vmatprep.subr.mxu1 %v505_v62 }
  0xbf   : > { %983 = vmatpush1.msra.mxu0 %v502_v63  ;;  %1072 = vmatpush1.msra.mxu1 %v504_v2 }
  0xc0   : > { %984 = vmatprep.subr.mxu0 %v497_v43  ;;  %1073 = vmatprep.subr.mxu1 %v499_v3 }
  0xc1   : > { %864 = vmatprep.mubr.f32.mxu0 %v1870_v0  ;;  %985 = vmatpush1.msra.mxu0 %v496_v5 }
  0xc2   : > { %1074 = vmatpush1.msra.mxu1 %v498_v6  ;;  %865 = vmatmul.mubr.f32.gmra.mxu0 %v2103_v61  ;;  %v1323_v61 = vld [vmem:[%s369_s10 + $0x18] sm:$0xff]  ;;  %s1872_s10 = smov [#allocation8]  }
  0xc3   : > { %986 = vmatprep.subr.mxu0 %v491_v7  ;;  %1075 = vmatprep.subr.mxu1 %v493_v8  ;;  %vm1331_vm2 = vcmp.eq.s32.totalorder %v1323_v61, 1  ;;  %vm1327_vm6 = vcmp.eq.s32.totalorder %v1323_v61, 0  ;;  %s1797_s29 = sshll.u32 %s1872_s10, 4  ;;  %s1798_s29 = int_to_ptr.vmem [resolvable:$false] %s1797_s29 }
  0xc4   : > { %987 = vmatpush1.msra.mxu0 %v490_v52  ;;  %1076 = vmatpush1.msra.mxu1 %v492_v9  ;;  %v1335_v24 = vsel %vm1331_vm2, 1, %v1871_v1  ;;  %v1359_v28 = vsel %vm1327_vm6, 1, %v1871_v1  ;;  %v588_v9 = vsub.s32 3, %v2184_v48  ;;  %s1799_s14 = scalar_lea.vmem %s1798_s29, 1024  ;;  %p1800_p12 = scmp.lt.s32.totalorder %s2294_s3, %s1798_s29 }
  0xc5   : > { %988 = vmatprep.subr.mxu0 %v485_v10  ;;  %1077 = vmatprep.subr.mxu1 %v487_v12  ;;  %p1801_p7 = scmp.lt.s32.totalorder %s1799_s14, %s1793_s19 }
  0xc6   : > { %989 = vmatpush1.msra.mxu0 %v484_v13  ;;  %1078 = vmatpush1.msra.mxu1 %v486_v14  ;;  %v589_v16 = vrot.slane %v2194_v53, %v588_v9 }
  0xc7   : > { %990 = vmatprep.subr.mxu0 %v479_v17  ;;  %1079 = vmatprep.subr.mxu1 %v481_v18  ;;  %p1802_p9 = por %p1801_p7, %p1800_p12 }
  0xc8   : > { %991 = vmatpush1.msra.mxu0 %v478_v19  ;;  %1024 = vmatprep.mubr.f32.mxu0 %v1870_v0 }
  0xc9   : > { %1080 = vmatpush1.msra.mxu1 %v480_v20  ;;  %1113 = vmatprep.mubr.f32.mxu1 %v1870_v0  ;;  %p1803_p13 = pnand %p1802_p9, %p1796_p6 }
  0xca   : > { %1025 = vmatmul.mubr.f32.vlgmr.msra.gmra.mxu0 %v2110_v11  ;;  %1114 = vmatmul.mubr.f32.vlgmr.msra.gmra.mxu1 %v2110_v11 }
  0xcb   : > { %1030 = vmatprep.mubr.f32.mxu0 %v1870_v0  ;;  %1119 = vmatprep.mubr.f32.mxu1 %v1870_v0 }
  0xcc   : > { %1343 = vperm.xlu1 %1632, %v1334_v4   ;;  %1337 = vperm.xlu0 %1631, %v1332_v23  }
  0xce   : > { %1031 = vmatmul.mubr.f32.gmra.mxu0 %v2117_v21  ;;  %1120 = vmatmul.mubr.f32.gmra.mxu1 %v2117_v21 }
  0xcf   : > { %1036 = vmatprep.mubr.f32.mxu0 %v1870_v0  ;;  %1125 = vmatprep.mubr.f32.mxu1 %v1870_v0 }
  0xd0   : > { %1346 = vperm.xlu1 %1632, %v1335_v24   ;;  %1340 = vperm.xlu0 %1631, %v1333_v25  }
  0xd2   : > { %1037 = vmatmul.mubr.f32.gmra.mxu0 %v2122_v29  ;;  %1126 = vmatmul.mubr.f32.gmra.mxu1 %v2122_v29 }
  0xd3   : > { %1042 = vmatprep.mubr.f32.mxu0 %v1870_v0  ;;  %1131 = vmatprep.mubr.f32.mxu1 %v1870_v0 }
  0xd4   : > { %1364 = vperm.xlu1 %1632, %v1357_v26   ;;  %1361 = vperm.xlu0 %1631, %v1356_v27   ;;  %v580_v26 = vsub.s32 1, %v2184_v48 }
  0xd6   : > { %1043 = vmatmul.mubr.f32.gmra.mxu0 %v2127_v38  ;;  %1132 = vmatmul.mubr.f32.gmra.mxu1 %v2127_v38 }
  0xd8   : > { %1370 = vperm.xlu1 %1632, %v1359_v28   ;;  %1367 = vperm.xlu0 %1631, %v1358_v30  }
 0x13a   : > { %v670_v33 = vpop.f32.mrf.mxu0 }
 0x13b   : > { %v2166_v31 = vpop.f32.mrf.mxu1  ;;  %v671_v60 = vadd.f32 %v670_v33, %v577_v56  ;;  %v592_v33 = vsub.s32 4, %v2184_v48 }
 0x13c   : > { %v2170_v35 = vpop.f32.mrf.mxu0 }
 0x13d   : > { %v761_v32 = vpop.f32.mrf.mxu1 }
 0x13e   : > { %v762_v4 = vadd.f32 %v761_v32, %v589_v16  ;;  %v581_v32 = vrot.slane %v2194_v53, %v580_v26 }
 0x14e   : > { %v676_v36 = vpop.f32.mrf.mxu0 }
 0x14f   : > { %v677_v43 = vadd.f32 %v676_v36, %v577_v56 }
 0x150   : > { %v2174_v39 = vpop.f32.mrf.mxu0 }
 0x151   : > { %v2168_v34 = vpop.f32.mrf.mxu1 }
 0x153   : > { %v767_v0 = vpop.f32.mrf.mxu1 }
 0x154   : > { %v682_v40 = vpop.f32.mrf.mxu0  ;;  %v768_v30 = vadd.f32 %v767_v0, %v589_v16 }
 0x155   : > { %v683_v52 = vadd.f32 %v682_v40, %v577_v56 }
 0x156   : > { %v2180_v42 = vpop.f32.mrf.mxu0 }
 0x157   : > { %v2172_v37 = vpop.f32.mrf.mxu1 }
 0x159   : > { %v2176_v1 = vpop.f32.mrf.mxu1 }
 0x15a   : > { %v688_v46 = vpop.f32.mrf.mxu0 }
 0x15b   : > { %v689_v15 = vadd.f32 %v688_v46, %v577_v56  ;;  %v593_v56 = vrot.slane %v2194_v53, %v592_v33 }
 0x15c   : > { %v2186_v49 = vpop.f32.mrf.mxu0 }
 0x15d   : > { %v2178_v41 = vpop.f32.mrf.mxu1 }
 0x15f   : > { %v2182_v44 = vpop.f32.mrf.mxu1 }
 0x162   : > { %v937_v47 = vpop.f32.mrf.mxu1  ;;  %v2196_v54 = vpop.f32.mrf.mxu0 }
 0x163   : > { %v1139_v63 = vadd.f32 %v937_v47, %v671_v60 }
 0x164   : > { %v2188_v50 = vpop.f32.mrf.mxu1  ;;  %v2199_v57 = vpop.f32.mrf.mxu0 }
 0x165   : > { %v1531_v5 = vmul.f32 -1.442695, %v1139_v63 }
 0x167   : > { %1633 = vpow2.f32 %v1531_v5  ;;  %v673_v5 = vadd.f32 %v2170_v35, %v581_v32  ;;  %v679_v35 = vadd.f32 %v2174_v39, %v581_v32 }
 0x168   : > { %v943_v55 = vpop.f32.mrf.mxu1 }
 0x169   : > { %v1140_v6 = vadd.f32 %v943_v55, %v677_v43  ;;  %v774_v55 = vadd.f32 %v2176_v1, %v589_v16 }
 0x16a   : > { %v2201_v58 = vpop.f32.mrf.mxu1 }
 0x16b   : > { %v1532_v10 = vmul.f32 -1.442695, %v1140_v6  ;;  %v780_v6 = vadd.f32 %v2182_v44, %v589_v16  ;;  %v1168_v26 = vadd.f32 %v2201_v58, %v679_v35  ;;  %v1539_v58 = vld [vmem:[%s2350_s6] ss:$0 sm:$0xff]  ;;  %v1548_v35 = vld [vmem:[%s2350_s6 + $0x1] ss:$0 sm:$0xff] }
 0x16d   : > { %v949_v2 = vpop.f32.mrf.mxu1  ;;  %1635 = vpow2.f32 %v1532_v10  ;;  %v849_v10 = vadd.f32 %v2196_v54, %v593_v56 }
 0x16e   : > { %v1141_v12 = vadd.f32 %v949_v2, %v683_v52 }
 0x16f   : > { %v2209_v7 = vpop.f32.mrf.mxu1 }
 0x170   : > { %v1533_v17 = vmul.f32 -1.442695, %v1141_v12 }
 0x172   : > { %v955_v13 = vpop.f32.mrf.mxu1  ;;  %1637 = vpow2.f32 %v1533_v17 }
 0x173   : > { %v1142_v18 = vadd.f32 %v955_v13, %v689_v15  ;;  %v1167_v15 = vadd.f32 %v2188_v50, %v673_v5  ;;  %v685_v50 = vadd.f32 %v2180_v42, %v581_v32 }
 0x174   : > { %v2217_v19 = vpop.f32.mrf.mxu1  ;;  %v1634_v40 = vpop.eup %1633 }
 0x175   : > { %v1534_v23 = vmul.f32 -1.442695, %v1142_v18  ;;  %v1155_v60 = vadd.f32 1.0, %v1634_v40  ;;  %v1535_v54 = vmul.f32 -1.442695, %v1167_v15 }
 0x177   : > { %1639 = vpow2.f32 %v1534_v23 }
 0x178   : > { %v2203_v59 = vpop.f32.mrf.mxu0 }
 0x179   : > { %v855_v16 = vadd.f32 %v2203_v59, %v593_v56  ;;  %v1169_v59 = vadd.f32 %v2209_v7, %v685_v50 }
 0x17a   : > { %v2205_v62 = vpop.f32.mrf.mxu0  ;;  %v1636_v0 = vpop.eup %1635 }
 0x17b   : > { %v1156_v1 = vadd.f32 1.0, %v1636_v0 }
 0x17d   : > { %v2207_v3 = vpop.f32.mrf.mxu0 }
 0x17e   : > { %v861_v40 = vadd.f32 %v2207_v3, %v593_v56 }
 0x17f   : > { %v2211_v8 = vpop.f32.mrf.mxu0  ;;  %v1638_v13 = vpop.eup %1637 }
 0x180   : > { %v1157_v44 = vadd.f32 1.0, %v1638_v13 }
 0x182   : > { %v2214_v14 = vpop.f32.mrf.mxu0 }
 0x183   : > { %v867_v3 = vadd.f32 %v2214_v14, %v593_v56  ;;  %v596_v14 = vsub.s32 5, %v2184_v48 }
 0x184   : > { %v2219_v20 = vpop.f32.mrf.mxu0 }
 0x18a   : > { %v2221_v61 = vpop.f32.mrf.mxu0  ;;  %v1115_v22 = vpop.f32.mrf.mxu1 }
 0x18b   : > { %v1258_v18 = vadd.f32 %v1115_v22, %v849_v10  ;;  %v1201_v7 = vadd.f32 %v1539_v58, %v2221_v61 }
 0x18c   : > { %v1028_v24 = vpop.f32.mrf.mxu0  ;;  %v2224_v27 = vpop.f32.mrf.mxu1 }
 0x18d   : > { %v1230_v25 = vadd.f32 %v1028_v24, %v762_v4 }
 0x18e   : > { %v2226_v28 = vpop.f32.mrf.mxu0  ;;  %v1121_v47 = vpop.f32.mrf.mxu1 }
 0x18f   : > { %v1540_v36 = vmul.f32 -1.442695, %v1230_v25  ;;  %v1640_v25 = vpop.eup %1639  ;;  %v1259_v33 = vadd.f32 %v1121_v47, %v855_v16  ;;  %v584_v47 = vsub.s32 2, %v2184_v48  ;;  %v1202_v13 = vadd.f32 %v1539_v58, %v2226_v28 }
 0x190   : > { %v1034_v45 = vpop.f32.mrf.mxu0  ;;  %v2236_v52 = vpop.f32.mrf.mxu1  ;;  %v1158_v39 = vadd.f32 1.0, %v1640_v25  ;;  %v597_v48 = vrot.slane %v2194_v53, %v596_v14 }
 0x191   : > { %v1231_v46 = vadd.f32 %v1034_v45, %v768_v30  ;;  %1641 = vpow2.f32 %v1540_v36  ;;  %v1544_v30 = vmul.f32 -1.442695, %v1258_v18  ;;  %v1536_v45 = vmul.f32 -1.442695, %v1168_v26 }
 0x192   : > { %v2230_v51 = vpop.f32.mrf.mxu0  ;;  %v1127_v23 = vpop.f32.mrf.mxu1  ;;  %v1545_v42 = vmul.f32 -1.442695, %v1259_v33  ;;  %v585_v10 = vrot.slane %v2194_v53, %v584_v47 }
 0x193   : > { %v1541_v63 = vmul.f32 -1.442695, %v1231_v46  ;;  %v1203_v28 = vadd.f32 %v1539_v58, %v2230_v51 }
 0x194   : > { %v1040_v2 = vpop.f32.mrf.mxu0  ;;  %v2246_v36 = vpop.f32.mrf.mxu1 }
 0x195   : > { %v1232_v43 = vadd.f32 %v1040_v2, %v774_v55  ;;  %1643 = vpow2.f32 %v1541_v63  ;;  %v1260_v55 = vadd.f32 %v1127_v23, %v861_v40  ;;  %v772_v40 = vadd.f32 %v2172_v37, %v585_v10 }
 0x196   : > { %v2238_v9 = vpop.f32.mrf.mxu0  ;;  %1645 = vrcp.f32 %v1155_v60  ;;  %v691_v60 = vadd.f32 %v2186_v49, %v581_v32  ;;  %v1133_v63 = vpop.f32.mrf.mxu1 }
 0x197   : > { %v1542_v12 = vmul.f32 -1.442695, %v1232_v43  ;;  %v1537_v43 = vmul.f32 -1.442695, %v1169_v59  ;;  %v1204_v50 = vadd.f32 %v1539_v58, %v2238_v9 }
 0x198   : > { %v1046_v17 = vpop.f32.mrf.mxu0  ;;  %v1170_v5 = vadd.f32 %v2217_v19, %v691_v60  ;;  %v857_v60 = vadd.f32 %v2205_v62, %v597_v48 }
 0x199   : > { %v1233_v4 = vadd.f32 %v1046_v17, %v780_v6  ;;  %1647 = vpow2.f32 %v1542_v12  ;;  %v1261_v12 = vadd.f32 %v1133_v63, %v867_v3  ;;  %v760_v17 = vadd.f32 %v2166_v31, %v585_v10 }
 0x19a   : > { %1649 = vrcp.f32 %v1156_v1  ;;  %v1546_v1 = vmul.f32 -1.442695, %v1260_v55  ;;  %v1538_v61 = vmul.f32 -1.442695, %v1170_v5  ;;  %v766_v31 = vadd.f32 %v2168_v34, %v585_v10 }
 0x19b   : > { %v1543_v24 = vmul.f32 -1.442695, %v1233_v4  ;;  %v1547_v19 = vmul.f32 -1.442695, %v1261_v12  ;;  %v863_v5 = vadd.f32 %v2211_v8, %v597_v48 }
 0x19d   : > { %1651 = vpow2.f32 %v1543_v24 }
 0x19e   : > { %v1642_v22 = vpop.eup %1641  ;;  %1653 = vrcp.f32 %v1157_v44 }
 0x19f   : > { %1655 = vpow2.f32 %v1535_v54  ;;  %v1246_v46 = vadd.f32 1.0, %v1642_v22  ;;  %v1292_v54 = vadd.f32 %v1548_v35, %v2224_v27  ;;  %v851_v22 = vadd.f32 %v2199_v57, %v597_v48 }
 0x1a0   : > { %1657 = vpow2.f32 %v1544_v30  ;;  %v1293_v27 = vadd.f32 %v1548_v35, %v2236_v52  ;;  %v778_v57 = vadd.f32 %v2178_v41, %v585_v10  ;;  %v1338_v41 = vpop.permute.xlu0 %1337 }
 0x1a1   : > { %1659 = vrcp.f32 %v1246_v46  ;;  %vm1348_vm8 = vcmp.eq.s32.totalorder %v1338_v41, 1 }
 0x1a2   : > { %v1644_v0 = vpop.eup %1643  ;;  %1661 = vrcp.f32 %v1158_v39 }
 0x1a3   : > { %v1646_v2 = vpop.eup %1645  ;;  %1663 = vpow2.f32 %v1536_v45  ;;  %v1247_v6 = vadd.f32 1.0, %v1644_v0 }
 0x1a4   : > { %1665 = vpow2.f32 %v1545_v42  ;;  %v1205_v32 = vmul.f32 %v1646_v2, %v1201_v7  ;;  %v1294_v7 = vadd.f32 %v1548_v35, %v2246_v36 }
 0x1a5   : > { %1667 = vrcp.f32 %v1247_v6 }
 0x1a6   : > { %v1648_v49 = vpop.eup %1647  ;;  %1669 = vpow2.f32 %v1537_v43  ;;  %v1209_v4 = vadd.f32 %v1205_v32, %v760_v17  ;;  %v1135_v43 = vpop.f32.mrf.mxu1 }
 0x1a7   : > { %v1650_v15 = vpop.eup %1649  ;;  %v1248_v56 = vadd.f32 1.0, %v1648_v49  ;;  %1671 = vpow2.f32 %v1546_v1  ;;  %v1295_v32 = vadd.f32 %v1548_v35, %v1135_v43  ;;  %v1344_v17 = vpop.permute.xlu1 %1343 }
 0x1a8   : > { %v1206_v23 = vmul.f32 %v1650_v15, %v1202_v13  ;;  %v869_v15 = vadd.f32 %v2219_v20, %v597_v48  ;;  %vm1350_vm12 = vcmp.eq.s32.totalorder %v1344_v17, 1 }
 0x1a9   : > { %1673 = vrcp.f32 %v1248_v56 }
 0x1aa   : > { %v1652_v18 = vpop.eup %1651  ;;  %1675 = vpow2.f32 %v1538_v61  ;;  %v1210_v30 = vadd.f32 %v1206_v23, %v766_v31 }
 0x1ab   : > { %v1654_v44 = vpop.eup %1653  ;;  %v1249_v16 = vadd.f32 1.0, %v1652_v18  ;;  %1677 = vpow2.f32 %v1547_v19  ;;  %v1341_v19 = vpop.permute.xlu0 %1340 }
 0x1ac   : > { %v1656_v24 = vpop.eup %1655  ;;  %v1207_v33 = vmul.f32 %v1654_v44, %v1203_v28  ;;  %vm1349_vm10 = vcmp.eq.s32.totalorder %v1341_v19, 1 }
 0x1ad   : > { %v1658_v25 = vpop.eup %1657  ;;  %1679 = vrcp.f32 %v1249_v16  ;;  %v1183_v45 = vadd.f32 1.0, %v1656_v24 }
 0x1ae   : > { %v1660_v26 = vpop.eup %1659  ;;  %1681 = vtanh.f32 %v1209_v4  ;;  %v1274_v59 = vadd.f32 1.0, %v1658_v25  ;;  %v1211_v42 = vadd.f32 %v1207_v33, %v772_v40  ;;  %v1347_v25 = vpop.permute.xlu1 %1346 }
 0x1af   : > { %v1662_v51 = vpop.eup %1661  ;;  %v1296_v53 = vmul.f32 %v1660_v26, %v1292_v54  ;;  %1683 = vtanh.f32 %v1210_v30  ;;  %v1362_v54 = vpop.permute.xlu0 %1361  ;;  %vm1351_vm14 = vcmp.eq.s32.totalorder %v1347_v25, 1 }
 0x1b0   : > { %v1664_v39 = vpop.eup %1663  ;;  %v1208_v55 = vmul.f32 %v1662_v51, %v1204_v50  ;;  %vm1372_vm9 = vcmp.eq.s32.totalorder %v1362_v54, 1 }
 0x1b1   : > { %v1666_v34 = vpop.eup %1665  ;;  %v1300_v46 = vadd.f32 %v1296_v53, %v851_v22  ;;  %v1184_v63 = vadd.f32 1.0, %v1664_v39 }
 0x1b2   : > { %v1668_v47 = vpop.eup %1667  ;;  %v1275_v0 = vadd.f32 1.0, %v1666_v34  ;;  %v1212_v2 = vadd.f32 %v1208_v55, %v778_v57 }
 0x1b3   : > { %1685 = vtanh.f32 %v1300_v46  ;;  %v1297_v9 = vmul.f32 %v1668_v47, %v1293_v27  ;;  %v1670_v58 = vpop.eup %1669  ;;  %v1365_v47 = vpop.permute.xlu1 %1364 }
 0x1b4   : > { %1687 = vrcp.f32 %v1183_v45  ;;  %v1672_v37 = vpop.eup %1671  ;;  %v1185_v1 = vadd.f32 1.0, %v1670_v58  ;;  %vm1373_vm11 = vcmp.eq.s32.totalorder %v1365_v47, 1 }
 0x1b5   : > { %1689 = vrcp.f32 %v1274_v59  ;;  %v1301_v3 = vadd.f32 %v1297_v9, %v857_v60  ;;  %v1276_v12 = vadd.f32 1.0, %v1672_v37 }
 0x1b6   : > { %v1674_v52 = vpop.eup %1673  ;;  %1691 = vtanh.f32 %v1211_v42 }
 0x1b7   : > { %1693 = vtanh.f32 %v1301_v3  ;;  %v1298_v62 = vmul.f32 %v1674_v52, %v1294_v7  ;;  %v1676_v6 = vpop.eup %1675 }
 0x1b8   : > { %1695 = vrcp.f32 %v1184_v63  ;;  %v1678_v10 = vpop.eup %1677  ;;  %v1186_v8 = vadd.f32 1.0, %v1676_v6  ;;  %v1368_v63 = vpop.permute.xlu0 %1367 }
 0x1b9   : > { %1697 = vrcp.f32 %v1275_v0  ;;  %v1302_v49 = vadd.f32 %v1298_v62, %v863_v5  ;;  %v1277_v61 = vadd.f32 1.0, %v1678_v10  ;;  %vm1374_vm13 = vcmp.eq.s32.totalorder %v1368_v63, 1  ;;  %v1371_v62 = vpop.permute.xlu1 %1370 }
 0x1ba   : > { %v1680_v13 = vpop.eup %1679  ;;  %1699 = vtanh.f32 %v1212_v2  ;;  %vm1375_vm15 = vcmp.eq.s32.totalorder %v1371_v62, 1 }
 0x1bb   : > { %v1682_v36 = vpop.eup %1681  ;;  %1701 = vtanh.f32 %v1302_v49  ;;  %v1299_v14 = vmul.f32 %v1680_v13, %v1295_v32 }
 0x1bc   : > { %1703 = vrcp.f32 %v1185_v1  ;;  %v1217_v18 = vsub.f32 %v2110_v11, %v1682_v36  ;;  %v1684_v4 = vpop.eup %1683 }
 0x1bd   : > { %1705 = vrcp.f32 %v1276_v12  ;;  %v1303_v56 = vadd.f32 %v1299_v14, %v869_v15  ;;  %v1218_v44 = vsub.f32 %v2117_v21, %v1684_v4 }
 0x1bf   : > { %1707 = vtanh.f32 %v1303_v56 }
 0x1c0   : > { %v1686_v23 = vpop.eup %1685  ;;  %1709 = vrcp.f32 %v1186_v8 }
 0x1c1   : > { %v1688_v35 = vpop.eup %1687  ;;  %1711 = vrcp.f32 %v1277_v61  ;;  %v1308_v28 = vsub.f32 %v2110_v11, %v1686_v23 }
 0x1c2   : > { %v1690_v20 = vpop.eup %1689  ;;  %v1221_v48 = vmul.f32 %v1688_v35, %v1217_v18 }
 0x1c3   : > { %v1692_v16 = vpop.eup %1691  ;;  %v1312_v24 = vmul.f32 %v1690_v20, %v1308_v28 }
 0x1c4   : > { %v1694_v31 = vpop.eup %1693  ;;  %v1225_v22 = vadd.f32 %v1682_v36, %v1221_v48  ;;  %v1219_v11 = vsub.f32 %v2122_v29, %v1692_v16 }
 0x1c5   : > { %v1696_v26 = vpop.eup %1695  ;;  %v1316_v30 = vadd.f32 %v1686_v23, %v1312_v24  ;;  %v1309_v33 = vsub.f32 %v2117_v21, %v1694_v31 }
 0x1c6   : > { %v1698_v50 = vpop.eup %1697  ;;  %v1222_v51 = vmul.f32 %v1696_v26, %v1218_v44 }
 0x1c7   : > { %v1700_v53 = vpop.eup %1699  ;;  %v1352_v39 = vsel %vm1348_vm8, %v1316_v30, 0.0  ;;  %v1313_v40 = vmul.f32 %v1698_v50, %v1309_v33 }
 0x1c8   : > { %v1702_v45 = vpop.eup %1701  ;;  %v1376_v34 = vsel %vm1372_vm9, %v1225_v22, %v1352_v39  ;;  %v1226_v42 = vadd.f32 %v1684_v4, %v1222_v51  ;;  %v1220_v55 = vsub.f32 %v2127_v38, %v1700_v53 }
 0x1c9   : > { %v1704_v59 = vpop.eup %1703  ;;  %v1310_v46 = vsub.f32 %v2122_v29, %v1702_v45  ;;  %v1317_v27 = vadd.f32 %v1694_v31, %v1313_v40  ;;  %1380 = vst [vmem:[%s2286_s18] sm:$0xff] %v1376_v34 }
 0x1ca   : > { %v1706_v21 = vpop.eup %1705  ;;  %v1223_v60 = vmul.f32 %v1704_v59, %v1219_v11 }
 0x1cb   : > { %v1314_v9 = vmul.f32 %v1706_v21, %v1310_v46  ;;  %v1353_v58 = vsel %vm1349_vm10, %v1317_v27, 0.0 }
 0x1cc   : > { %v1708_v29 = vpop.eup %1707  ;;  %v1377_v57 = vsel %vm1373_vm11, %v1226_v42, %v1353_v58  ;;  %v1227_v2 = vadd.f32 %v1692_v16, %v1223_v60 }
 0x1cd   : > { %v1710_v37 = vpop.eup %1709  ;;  %v1318_v0 = vadd.f32 %v1702_v45, %v1314_v9  ;;  %v1311_v3 = vsub.f32 %v2127_v38, %v1708_v29  ;;  %1381 = vst [vmem:[%s2286_s18 + $0x8] sm:$0xff] %v1377_v57 }
 0x1ce   : > { %v1712_v7 = vpop.eup %1711  ;;  %v1224_v52 = vmul.f32 %v1710_v37, %v1220_v55 }
 0x1cf   : > { %v1354_v43 = vsel %vm1350_vm12, %v1318_v0, 0.0  ;;  %v1315_v5 = vmul.f32 %v1712_v7, %v1311_v3 }
 0x1d0   : > { %v1378_v6 = vsel %vm1374_vm13, %v1227_v2, %v1354_v43  ;;  %v1228_v38 = vadd.f32 %v1700_v53, %v1224_v52 }
 0x1d1   : > { %v1319_v1 = vadd.f32 %v1708_v29, %v1315_v5  ;;  %1382 = vst [vmem:[%s2286_s18 + $0x10] sm:$0xff] %v1378_v6 }
 0x1d3   : > { %v1355_v41 = vsel %vm1351_vm14, %v1319_v1, 0.0 }
 0x1d4   : > { %v1379_v10 = vsel %vm1375_vm15, %v1228_v38, %v1355_v41 }
 0x1d5   : > { %1383 = vst [vmem:[%s2286_s18 + $0x18] sm:$0xff] %v1379_v10 }
 0x1d6   : > { %1806 = shalt.err (!%p1803_p13)
}
 0x1d7   : > { %s1807_s16 = scalar_lea.hbm %s2300_s13, 512  ;;  %s1811_s9 = scalar_lea.hbm %s2351_s7, 1024 }
 0x1d8   : > { %p1808_p5 = scmp.ne.s32.totalorder %s2300_s13, %s1807_s16  ;;  %p1812_p8 = scmp.lt.s32.totalorder %s2300_s13, %s2351_s7 }
 0x1d9   : > { %p1813_p3 = scmp.lt.s32.totalorder %s1811_s9, %s1807_s16 }
 0x1da   : > { %p1809_p0 = pnand %p1808_p5, %p2370_p1 }
 0x1db   : > { %p1814_p11 = por %p1813_p3, %p1812_p8 }
 0x1dc   : > { %p1810_p4 = pneg %p1809_p0 }
 0x1de   : > { %p1815_p10 = pnand %p1814_p11, %p1810_p4 }
 0x1e0   : > { %1818 = shalt.err (!%p1815_p10)
}
 0x1e1   : > { %s1873_s21 = smov 128   ;;  %s1874_s22 = smov 8  }
 0x1e2   : > { %1566 = dma.vmem_to_hbm [thread:$0]  (%p2370_p1), %s2294_s3, 512, %s2300_s13, %s1385_s28, %s1873_s21, %s1873_s21, %s1874_s22  }
 0x1e3 PF: > { %s1413_s19 = sand.u32 1, %s1849_s24   ;;  %p2371_p2 = scmp.ne.s32.totalorder %s2358_s8, 0 }
 0x1e4   : > { %p2372_p6 = scmp.ge.s32.totalorder %s1861_s27, 2  ;;  %s1414_s10 = scalar_lea.sflag [#allocation4], %s1413_s19 }
 0x1e6   : > { %p1580_p12 = pnand %p2372_p6, %p2371_p2 }
 0x1e8   : > { %p1581_p7 = pneg %p1580_p12 }
 0x1ea   : > { %1844 = dma.done.wait (%p1581_p7), %s1414_s10, 512  }
 0x1eb   : > { %1846 = vsyncadd (%p1581_p7), %s1414_s10, 4294966784  ;;  %p21_p9 = scmp.ge.s32.totalorder %s1987_s23, 4   ;;  %s2373_s24 = smov %s1853_s25 }
 0x1ec   : > { %s2374_s25 = smov %s1857_s26  ;;  %s2375_s26 = smov %s2003_s12 }
 0x1ed   : > { %s2376_s27 = smov %s1987_s23  ;;  %23 = sbr.rel (!%p21_p9) target bundleno = 8 (0x8), region = 107 }
 0x1f2   :  { %1419 = vsyncpa [#allocation3], 1 }
 0x1f3   :  { %1421 = vsyncpa [#allocation3 + $0x1], 1 }
 0x1f4   :  { %1422 = vsyncpa [#allocation6], 1 }
 0x1f5   :  { %1423 = vsyncpa [#allocation4], 1 }
 0x1f6   :  { %1425 = vsyncpa [#allocation4 + $0x1], 1 }

</bundles_post_ra>
